<compile_context>
chip_gen: v5e
topology: v5e:2x2
jax: 0.10.0
libtpu: 0.0.40
codegen_flags: <defaults>
</compile_context>

<pallas_src>
import functools
import numpy as np

import jax
import jax.numpy as jnp
from jax.experimental import pallas as pl
from jax.experimental.pallas import tpu as pltpu


LEAKY_SLOPE = 0.2
LANE_BLOCK = 128          # lanes (B*Tout) per grid step; raise for big shapes


def _round_up(v, m):
    return ((v + m - 1) // m) * m


def get_padding(kernel_size, dilation=1):
    return int((kernel_size * dilation - dilation) / 2)


# ----------------------------------------------------------------------------
# Pallas kernel: grouped  W_g (Cg x K) @ X_g (K x M)  + bias_g,
#                optional per-group LeakyReLU, summed over groups.
# ----------------------------------------------------------------------------
def _grouped_mm_kernel(x_ref, w_ref, b_ref, o_ref, *, n_groups, act_each, slope):
    acc = None
    for g in range(n_groups):                       # static unroll (n <= 3)
        z = jnp.dot(w_ref[g], x_ref[g], preferred_element_type=jnp.float32)
        z = z + b_ref[g]                            # (Cg, 1) -> lane broadcast
        if act_each:
            z = jnp.where(z >= 0.0, z, slope * z)
        acc = z if acc is None else acc + z
    o_ref[...] = acc


def grouped_matmul(xg, wg, bg, act_each):
    """xg: (n, Kp, M) bf16, wg: (n, Cg, Kp) bf16, bg: (n, Cg, 1) f32.

    Returns (Cg, Mp) f32 with Mp = round_up(M, LANE_BLOCK)."""
    n, kp, m = xg.shape
    cg = wg.shape[1]
    mp = _round_up(m, LANE_BLOCK)
    if mp != m:
        xg = jnp.pad(xg, ((0, 0), (0, 0), (0, mp - m)))

    kernel = functools.partial(_grouped_mm_kernel, n_groups=n,
                               act_each=act_each, slope=LEAKY_SLOPE)
    # NOTE(v6e/v7x): at these tiny shapes VMEM is ample; if shapes grow, sweep
    # LANE_BLOCK (128 -> 512) and set vmem_limit_bytes (cap lower on v7x).
    return pl.pallas_call(
        kernel,
        out_shape=jax.ShapeDtypeStruct((cg, mp), jnp.float32),
        grid=(mp // LANE_BLOCK,),
        in_specs=[
            pl.BlockSpec((n, kp, LANE_BLOCK), lambda j: (0, 0, j)),
            pl.BlockSpec((n, cg, kp), lambda j: (0, 0, 0)),   # resident weights
            pl.BlockSpec((n, cg, 1), lambda j: (0, 0, 0)),    # resident bias
        ],
        out_specs=pl.BlockSpec((cg, LANE_BLOCK), lambda j: (0, j)),
        compiler_params=pltpu.CompilerParams(
            dimension_semantics=("parallel",)),
    )(xg, wg, bg)


# ----------------------------------------------------------------------------
# Conv1d (grouped) = transpose-free im2col (glue) + one Pallas grouped matmul.
# Activations live in (C, B, T) layout.
# ----------------------------------------------------------------------------
def conv_apply(spec, x):
    """spec: packed conv spec (see pack_conv).  x: (Cin, B, T) f32.

    Returns (Cout, B, Tout) f32 = sum_g act(conv_g(x) + b_g)  (act optional)."""
    cin, bsz, t = x.shape
    s = spec["stride"]
    kdp = spec["kdp"]
    k0, d0, p0 = kdp[0]
    tout = (t + 2 * p0 - d0 * (k0 - 1) - 1) // s + 1
    pmax = max(p for _, _, p in kdp)

    xp = jnp.pad(x, ((0, 0), (0, 0), (pmax, pmax))).astype(jnp.bfloat16)

    kseg = spec["kseg"]
    groups = []
    for (k, d, p) in kdp:
        cols = []
        for kk in range(k):
            off = pmax - p + kk * d
            end = off + (tout - 1) * s + 1
            cols.append(jax.lax.slice(xp, (0, 0, off), (cin, bsz, end), (1, 1, s)))
        # (Cin, k, B, Tout) -> (Cin*k, B*Tout): no transpose needed.
        blk = jnp.stack(cols, axis=1).reshape(cin * k, bsz * tout)
        if cin * k < kseg:
            blk = jnp.pad(blk, ((0, kseg - cin * k), (0, 0)))
        groups.append(blk)
    xg = jnp.stack(groups, axis=0)                     # (n, Kseg, B*Tout)

    out = grouped_matmul(xg, spec["w"], spec["b"], spec["act"])
    cout = spec["cout"]
    return out[:cout, :bsz * tout].reshape(cout, bsz, tout)


# ----------------------------------------------------------------------------
# Parameter packing (done ONCE, outside the forward pass / jit).
# ----------------------------------------------------------------------------
def pack_conv(ws, bs, kds, pads, stride, act):
    """ws: list of (Cout, Cin, K_i) f32; bs: list of (Cout,) f32."""
    cout, cin, _ = ws[0].shape
    n = len(ws)
    kdp = tuple((k, d, p) for (k, d), p in zip(kds, pads))
    if n > 1:
        # Branch outputs are summed -> all branches must share Tout.
        ref = 2 * kdp[0][2] - kdp[0][1] * (kdp[0][0] - 1)
        assert all(2 * p - d * (k - 1) == ref for (k, d, p) in kdp)
        assert stride == 1
    kseg = _round_up(max(cin * k for (k, _, _) in kdp), 16)
    cg = _round_up(cout, 8)
    wg = jnp.zeros((n, cg, kseg), jnp.float32)
    bg = jnp.zeros((n, cg, 1), jnp.float32)
    for i, (w, b, (k, d, p)) in enumerate(zip(ws, bs, kdp)):
        wg = wg.at[i, :cout, :cin * k].set(w.reshape(cout, cin * k))
        bg = bg.at[i, :cout, 0].set(b)
    return dict(w=wg.astype(jnp.bfloat16), b=bg, kdp=kdp,
                cout=cout, stride=stride, act=act, kseg=kseg)


def prepare_sbd_params(params, h):
    packed = []
    for block_p, ks, ds, ss in zip(params, h["sbd_kernel_sizes"],
                                   h["sbd_dilations"], h["sbd_strides"]):
        blk = {"convs": [], "post": None}
        for mdc_p, k_list, d_list, s in zip(block_p["convs"], ks, ds, ss):
            ws = [w for (w, _) in mdc_p["d_convs"]]
            bs = [b for (_, b) in mdc_p["d_convs"]]
            pads = [get_padding(k, d) for k, d in zip(k_list, d_list)]
            dil = pack_conv(ws, bs, list(zip(k_list, d_list)), pads,
                            stride=1, act=True)
            pw, pb = mdc_p["post"]
            # PyTorch quirk: post_conv padding uses the LAST (k, d) of d_convs.
            post = pack_conv([pw], [pb], [(3, 1)],
                             [get_padding(k_list[-1], d_list[-1])],
                             stride=s, act=True)
            blk["convs"].append({"dil": dil, "post": post})
        pw, pb = block_p["post"]
        blk["post"] = pack_conv([pw], [pb], [(3, 1)], [3 // 2],
                                stride=1, act=False)
        packed.append(blk)
    return packed


# ----------------------------------------------------------------------------
# PQMF analysis filter bank (prototype lowpass via numpy firwin+kaiser).
# Runs as a native XLA conv (per perf review): Cin=1, K=17, strided.
# ----------------------------------------------------------------------------
def _firwin_kaiser(numtaps, cutoff, beta):
    m = np.arange(numtaps) - (numtaps - 1) / 2.0
    hf = cutoff * np.sinc(cutoff * m)
    hf *= np.kaiser(numtaps, beta)
    hf /= hf.sum()
    return hf


def pqmf_analysis_filter(N, taps, cutoff, beta):
    qmf = _firwin_kaiser(taps + 1, cutoff, beta)
    H = np.zeros((N, taps + 1), dtype=np.float64)
    for k in range(N):
        cf = (2 * k + 1) * (np.pi / (2 * N)) * (np.arange(taps + 1) - (taps - 1) / 2)
        phase = (-1) ** k * np.pi / 4
        H[k] = 2.0 * qmf * np.cos(cf + phase)
    return jnp.asarray(H[:, None, :], jnp.float32)       # (N, 1, taps+1)


def pqmf_analysis(x, H, N, taps):
    """x: (B, 1, T) -> (B, N, T//N-ish) via F.conv1d(x, H, pad=taps//2, stride=N)."""
    return jax.lax.conv_general_dilated(
        x, H, window_strides=(N,), padding=[(taps // 2, taps // 2)],
        dimension_numbers=("NCH", "OIH", "NCH"))


# ----------------------------------------------------------------------------
# SBD forward (y and y_hat batched together; weights shared per block).
# ----------------------------------------------------------------------------
def sbd_forward(packed, h, pqmf_H, f_pqmf_H, y, y_hat):
    B = y.shape[0]
    yy = jnp.concatenate([y, y_hat], axis=0)              # (2B, 1, T)

    N_s, taps_s = h["pqmf_config"]["sbd"][0], h["pqmf_config"]["sbd"][1]
    y_in = jnp.transpose(pqmf_analysis(yy, pqmf_H, N_s, taps_s), (1, 0, 2))
    y_in_f = None
    if f_pqmf_H is not None:
        N_f, taps_f = h["pqmf_config"]["fsbd"][0], h["pqmf_config"]["fsbd"][1]
        y_in_f = jnp.transpose(pqmf_analysis(yy, f_pqmf_H, N_f, taps_f), (1, 0, 2))

    y_d_rs, y_d_gs, fmap_rs, fmap_gs = [], [], [], []
    for blk, br, tr in zip(packed, h["sbd_band_ranges"], h["sbd_transpose"]):
        if tr:
            # (N_f, 2B, Tq)[band] -> internal (C=Tq, 2B, T=band)
            x = jnp.transpose(y_in_f[br[0]:br[1]], (2, 1, 0))
        else:
            x = y_in[br[0]:br[1]]                          # (C, 2B, T)

        fmap = []
        for mdc in blk["convs"]:
            x = conv_apply(mdc["dil"], x)    # fused dilated branches (+LReLU, sum)
            x = conv_apply(mdc["post"], x)   # post conv (+LReLU)
            fmap.append(x)
        x = conv_apply(blk["post"], x)       # final 1-channel conv (no act)

        # Split real/generated and restore PyTorch (B, C, T) layout.
        y_d_rs.append(jnp.transpose(x[:, :B], (1, 0, 2)))
        y_d_gs.append(jnp.transpose(x[:, B:], (1, 0, 2)))
        fmap_rs.append([jnp.transpose(f[:, :B], (1, 0, 2)) for f in fmap])
        fmap_gs.append([jnp.transpose(f[:, B:], (1, 0, 2)) for f in fmap])
    return y_d_rs, y_d_gs, fmap_rs, fmap_gs


# ----------------------------------------------------------------------------
# Deterministic parameter init (mirrors the PyTorch module structure).
# ----------------------------------------------------------------------------
def init_conv(key, cout, cin, k, scale=0.1):
    k1, k2 = jax.random.split(key)
    w = scale * jax.random.normal(k1, (cout, cin, k), jnp.float32)
    b = scale * jax.random.normal(k2, (cout,), jnp.float32)
    return w, b


def init_sbd_params(key, h):
    params = []
    for f, ks, ds, ss, br, tr in zip(h["sbd_filters"], h["sbd_kernel_sizes"],
                                     h["sbd_dilations"], h["sbd_strides"],
                                     h["sbd_band_ranges"], h["sbd_transpose"]):
        if tr:
            segment_dim = h["segment_size"] // br[1] - br[0]   # upstream precedence
        else:
            segment_dim = br[1] - br[0]
        filters_in_out = [(segment_dim, f[0])]
        for i in range(len(f) - 1):
            filters_in_out.append((f[i], f[i + 1]))
        block = {"convs": [], "post": None}
        for (cin, cout), k_list, d_list, s in zip(filters_in_out, ks, ds, ss):
            key, *sub = jax.random.split(key, len(k_list) + 2)
            d_convs = [init_conv(sub[i], cout, cin, k_list[i]) for i in range(len(k_list))]
            post = init_conv(sub[-1], cout, cout, 3)
            block["convs"].append({"d_convs": d_convs, "post": post})
        key, sub = jax.random.split(key)
        block["post"] = init_conv(sub, 1, f[-1], 3)
        params.append(block)
    return params


# ----------------------------------------------------------------------------
# Main
# ----------------------------------------------------------------------------
if __name__ == "__main__":
    h = dict(
        segment_size=256,
        pqmf_config={"sbd": [4, 16, 0.25, 9.0], "fsbd": [8, 16, 0.13, 9.0]},
        sbd_filters=[[8, 16, 16], [8, 16, 16], [8, 16, 16]],
        sbd_kernel_sizes=[[[3, 3, 3], [3, 3, 3], [3, 3, 3]],
                          [[3, 3, 3], [3, 3, 3], [3, 3, 3]],
                          [[3, 3, 3], [3, 3, 3], [3, 3, 3]]],
        sbd_dilations=[[[1, 2, 3], [1, 2, 3], [1, 2, 3]],
                       [[1, 2, 3], [1, 2, 3], [1, 2, 3]],
                       [[1, 2, 3], [2, 3, 5], [2, 3, 5]]],
        sbd_strides=[[1, 1, 2], [1, 2, 1], [1, 1, 1]],
        sbd_band_ranges=[[0, 4], [1, 3], [0, 8]],
        sbd_transpose=[False, False, True],
    )

    pqmf_H = pqmf_analysis_filter(*h["pqmf_config"]["sbd"])
    f_pqmf_H = (pqmf_analysis_filter(*h["pqmf_config"]["fsbd"])
                if True in h["sbd_transpose"] else None)

    raw_params = init_sbd_params(jax.random.PRNGKey(1), h)
    packed_params = prepare_sbd_params(raw_params, h)     # one-time pack/pad/bf16

    key = jax.random.PRNGKey(0)
    ky, kg = jax.random.split(key)
    y = jax.random.normal(ky, (2, 1, h["segment_size"]), jnp.float32)
    y_hat = jax.random.normal(kg, (2, 1, h["segment_size"]), jnp.float32)

    fwd = jax.jit(functools.partial(sbd_forward, packed_params, h, pqmf_H, f_pqmf_H))
    outs = fwd(y, y_hat)
    outs = jax.tree_util.tree_map(lambda a: a.block_until_ready(), outs)

    y_d_rs, y_d_gs, fmap_rs, fmap_gs = outs
    assert len(y_d_rs) == len(y_d_gs) == len(fmap_rs) == len(fmap_gs) == 3
    for r, g in zip(y_d_rs, y_d_gs):
        assert r.shape == g.shape and r.shape[1] == 1
    for fr, fg in zip(fmap_rs, fmap_gs):
        assert len(fr) == len(fg) == 3
    print("KERNEL_OK")
</pallas_src>

<mosaic_0001>
module attributes {stable_mosaic.version = 11 : i64} {
  func.func @_grouped_mm_kernel(%arg0: i32, %arg1: memref<3x16x128xbf16, #tpu.memory_space<vmem>>, %arg2: memref<3x8x16xbf16, #tpu.memory_space<vmem>>, %arg3: memref<3x8x1xf32, #tpu.memory_space<vmem>>, %arg4: memref<8x128xf32, #tpu.memory_space<vmem>>) attributes {dimension_semantics = [#tpu.dimension_semantics<parallel>], iteration_bounds = array<i64: 2>, scalar_prefetch = 0 : i64, scratch_operands = 0 : i64, tpu.core_type = #tpu.core_type<tc>, window_params = [{transform_indices = @transform_0, window_bounds = array<i64: 3, 16, 128>}, {pipeline_mode = #tpu.pipeline_mode<synchronous>, transform_indices = @transform_1, window_bounds = array<i64: 3, 8, 16>}, {pipeline_mode = #tpu.pipeline_mode<synchronous>, transform_indices = @transform_2, window_bounds = array<i64: 3, 8, 1>}, {transform_indices = @transform_3, window_bounds = array<i64: 8, 128>}]} {
    %c0 = arith.constant 0 : index
    %c0_0 = arith.constant 0 : index
    %c0_1 = arith.constant 0 : index
    %0 = vector.load %arg2[%c0, %c0_0, %c0_1] : memref<3x8x16xbf16, #tpu.memory_space<vmem>>, vector<1x8x16xbf16>
    %1 = vector.shape_cast %0 : vector<1x8x16xbf16> to vector<8x16xbf16>
    %c0_2 = arith.constant 0 : index
    %c0_3 = arith.constant 0 : index
    %c0_4 = arith.constant 0 : index
    %2 = vector.load %arg1[%c0_2, %c0_3, %c0_4] : memref<3x16x128xbf16, #tpu.memory_space<vmem>>, vector<1x16x128xbf16>
    %3 = vector.shape_cast %2 : vector<1x16x128xbf16> to vector<16x128xbf16>
    %cst = arith.constant dense<0.000000e+00> : vector<8x128xf32>
    %4 = tpu.matmul %1, %3, %cst {dimension_numbers = #tpu.dot_dimension_numbers<[1], [0], [0], [1], [0, 0, 1, 1], [], []>} : vector<8x16xbf16>, vector<16x128xbf16>, vector<8x128xf32> -> vector<8x128xf32>
    %c0_5 = arith.constant 0 : index
    %c0_6 = arith.constant 0 : index
    %c0_7 = arith.constant 0 : index
    %5 = vector.load %arg3[%c0_5, %c0_6, %c0_7] : memref<3x8x1xf32, #tpu.memory_space<vmem>>, vector<1x8x1xf32>
    %6 = vector.shape_cast %5 : vector<1x8x1xf32> to vector<8x1xf32>
    %7 = vector.broadcast %6 : vector<8x1xf32> to vector<8x128xf32>
    %8 = arith.addf %4, %7 : vector<8x128xf32>
    %cst_8 = arith.constant 0.000000e+00 : f32
    %9 = vector.broadcast %cst_8 : f32 to vector<8x128xf32>
    %10 = arith.cmpf oge, %8, %9 : vector<8x128xf32>
    %cst_9 = arith.constant 2.000000e-01 : f32
    %11 = vector.broadcast %cst_9 : f32 to vector<8x128xf32>
    %12 = arith.mulf %11, %8 : vector<8x128xf32>
    %13 = arith.select %10, %8, %12 : vector<8x128xi1>, vector<8x128xf32>
    %c1 = arith.constant 1 : index
    %c0_10 = arith.constant 0 : index
    %c0_11 = arith.constant 0 : index
    %14 = vector.load %arg2[%c1, %c0_10, %c0_11] : memref<3x8x16xbf16, #tpu.memory_space<vmem>>, vector<1x8x16xbf16>
    %15 = vector.shape_cast %14 : vector<1x8x16xbf16> to vector<8x16xbf16>
    %c1_12 = arith.constant 1 : index
    %c0_13 = arith.constant 0 : index
    %c0_14 = arith.constant 0 : index
    %16 = vector.load %arg1[%c1_12, %c0_13, %c0_14] : memref<3x16x128xbf16, #tpu.memory_space<vmem>>, vector<1x16x128xbf16>
    %17 = vector.shape_cast %16 : vector<1x16x128xbf16> to vector<16x128xbf16>
    %cst_15 = arith.constant dense<0.000000e+00> : vector<8x128xf32>
    %18 = tpu.matmul %15, %17, %cst_15 {dimension_numbers = #tpu.dot_dimension_numbers<[1], [0], [0], [1], [0, 0, 1, 1], [], []>} : vector<8x16xbf16>, vector<16x128xbf16>, vector<8x128xf32> -> vector<8x128xf32>
    %c1_16 = arith.constant 1 : index
    %c0_17 = arith.constant 0 : index
    %c0_18 = arith.constant 0 : index
    %19 = vector.load %arg3[%c1_16, %c0_17, %c0_18] : memref<3x8x1xf32, #tpu.memory_space<vmem>>, vector<1x8x1xf32>
    %20 = vector.shape_cast %19 : vector<1x8x1xf32> to vector<8x1xf32>
    %21 = vector.broadcast %20 : vector<8x1xf32> to vector<8x128xf32>
    %22 = arith.addf %18, %21 : vector<8x128xf32>
    %cst_19 = arith.constant 0.000000e+00 : f32
    %23 = vector.broadcast %cst_19 : f32 to vector<8x128xf32>
    %24 = arith.cmpf oge, %22, %23 : vector<8x128xf32>
    %cst_20 = arith.constant 2.000000e-01 : f32
    %25 = vector.broadcast %cst_20 : f32 to vector<8x128xf32>
    %26 = arith.mulf %25, %22 : vector<8x128xf32>
    %27 = arith.select %24, %22, %26 : vector<8x128xi1>, vector<8x128xf32>
    %28 = arith.addf %13, %27 : vector<8x128xf32>
    %c2 = arith.constant 2 : index
    %c0_21 = arith.constant 0 : index
    %c0_22 = arith.constant 0 : index
    %29 = vector.load %arg2[%c2, %c0_21, %c0_22] : memref<3x8x16xbf16, #tpu.memory_space<vmem>>, vector<1x8x16xbf16>
    %30 = vector.shape_cast %29 : vector<1x8x16xbf16> to vector<8x16xbf16>
    %c2_23 = arith.constant 2 : index
    %c0_24 = arith.constant 0 : index
    %c0_25 = arith.constant 0 : index
    %31 = vector.load %arg1[%c2_23, %c0_24, %c0_25] : memref<3x16x128xbf16, #tpu.memory_space<vmem>>, vector<1x16x128xbf16>
    %32 = vector.shape_cast %31 : vector<1x16x128xbf16> to vector<16x128xbf16>
    %cst_26 = arith.constant dense<0.000000e+00> : vector<8x128xf32>
    %33 = tpu.matmul %30, %32, %cst_26 {dimension_numbers = #tpu.dot_dimension_numbers<[1], [0], [0], [1], [0, 0, 1, 1], [], []>} : vector<8x16xbf16>, vector<16x128xbf16>, vector<8x128xf32> -> vector<8x128xf32>
    %c2_27 = arith.constant 2 : index
    %c0_28 = arith.constant 0 : index
    %c0_29 = arith.constant 0 : index
    %34 = vector.load %arg3[%c2_27, %c0_28, %c0_29] : memref<3x8x1xf32, #tpu.memory_space<vmem>>, vector<1x8x1xf32>
    %35 = vector.shape_cast %34 : vector<1x8x1xf32> to vector<8x1xf32>
    %36 = vector.broadcast %35 : vector<8x1xf32> to vector<8x128xf32>
    %37 = arith.addf %33, %36 : vector<8x128xf32>
    %cst_30 = arith.constant 0.000000e+00 : f32
    %38 = vector.broadcast %cst_30 : f32 to vector<8x128xf32>
    %39 = arith.cmpf oge, %37, %38 : vector<8x128xf32>
    %cst_31 = arith.constant 2.000000e-01 : f32
    %40 = vector.broadcast %cst_31 : f32 to vector<8x128xf32>
    %41 = arith.mulf %40, %37 : vector<8x128xf32>
    %42 = arith.select %39, %37, %41 : vector<8x128xi1>, vector<8x128xf32>
    %43 = arith.addf %28, %42 : vector<8x128xf32>
    %c0_32 = arith.constant 0 : index
    %c0_33 = arith.constant 0 : index
    %44 = vector.load %arg4[%c0_32, %c0_33] : memref<8x128xf32, #tpu.memory_space<vmem>>, vector<8x128xf32>
    tpu.vector_store %arg4[%c0_32, %c0_33], %43 {strides = array<i32>} : memref<8x128xf32, #tpu.memory_space<vmem>>, vector<8x128xf32>,
    return
  }
  func.func @transform_0(%arg0: i32) -> (i32, i32, i32) {
    %c0_i32 = arith.constant 0 : i32
    %c0_i32_0 = arith.constant 0 : i32
    %c0_i32_1 = arith.constant 0 : i32
    return %c0_i32, %c0_i32_0, %arg0 : i32, i32, i32
  }
  func.func @transform_1(%arg0: i32) -> (i32, i32, i32) {
    %c0_i32 = arith.constant 0 : i32
    %c0_i32_0 = arith.constant 0 : i32
    %c0_i32_1 = arith.constant 0 : i32
    %c0_i32_2 = arith.constant 0 : i32
    return %c0_i32, %c0_i32_0, %c0_i32_1 : i32, i32, i32
  }
  func.func @transform_2(%arg0: i32) -> (i32, i32, i32) {
    %c0_i32 = arith.constant 0 : i32
    %c0_i32_0 = arith.constant 0 : i32
    %c0_i32_1 = arith.constant 0 : i32
    %c0_i32_2 = arith.constant 0 : i32
    return %c0_i32, %c0_i32_0, %c0_i32_1 : i32, i32, i32
  }
  func.func @transform_3(%arg0: i32) -> (i32, i32) {
    %c0_i32 = arith.constant 0 : i32
    %c0_i32_0 = arith.constant 0 : i32
    return %c0_i32, %arg0 : i32, i32
  }
}

module attributes {stable_mosaic.version = 11 : i64} {
  func.func @_grouped_mm_kernel(%arg0: i32, %arg1: memref<1x32x128xbf16, #tpu.memory_space<vmem>>, %arg2: memref<1x8x32xbf16, #tpu.memory_space<vmem>>, %arg3: memref<1x8x1xf32, #tpu.memory_space<vmem>>, %arg4: memref<8x128xf32, #tpu.memory_space<vmem>>) attributes {dimension_semantics = [#tpu.dimension_semantics<parallel>], iteration_bounds = array<i64: 3>, scalar_prefetch = 0 : i64, scratch_operands = 0 : i64, tpu.core_type = #tpu.core_type<tc>, window_params = [{transform_indices = @transform_0, window_bounds = array<i64: 1, 32, 128>}, {pipeline_mode = #tpu.pipeline_mode<synchronous>, transform_indices = @transform_1, window_bounds = array<i64: 1, 8, 32>}, {pipeline_mode = #tpu.pipeline_mode<synchronous>, transform_indices = @transform_2, window_bounds = array<i64: 1, 8, 1>}, {transform_indices = @transform_3, window_bounds = array<i64: 8, 128>}]} {
    %c0 = arith.constant 0 : index
    %c0_0 = arith.constant 0 : index
    %c0_1 = arith.constant 0 : index
    %0 = vector.load %arg2[%c0, %c0_0, %c0_1] : memref<1x8x32xbf16, #tpu.memory_space<vmem>>, vector<1x8x32xbf16>
    %1 = vector.shape_cast %0 : vector<1x8x32xbf16> to vector<8x32xbf16>
    %c0_2 = arith.constant 0 : index
    %c0_3 = arith.constant 0 : index
    %c0_4 = arith.constant 0 : index
    %2 = vector.load %arg1[%c0_2, %c0_3, %c0_4] : memref<1x32x128xbf16, #tpu.memory_space<vmem>>, vector<1x32x128xbf16>
    %3 = vector.shape_cast %2 : vector<1x32x128xbf16> to vector<32x128xbf16>
    %cst = arith.constant dense<0.000000e+00> : vector<8x128xf32>
    %4 = tpu.matmul %1, %3, %cst {dimension_numbers = #tpu.dot_dimension_numbers<[1], [0], [0], [1], [0, 0, 1, 1], [], []>} : vector<8x32xbf16>, vector<32x128xbf16>, vector<8x128xf32> -> vector<8x128xf32>
    %c0_5 = arith.constant 0 : index
    %c0_6 = arith.constant 0 : index
    %c0_7 = arith.constant 0 : index
    %5 = vector.load %arg3[%c0_5, %c0_6, %c0_7] : memref<1x8x1xf32, #tpu.memory_space<vmem>>, vector<1x8x1xf32>
    %6 = vector.shape_cast %5 : vector<1x8x1xf32> to vector<8x1xf32>
    %7 = vector.broadcast %6 : vector<8x1xf32> to vector<8x128xf32>
    %8 = arith.addf %4, %7 : vector<8x128xf32>
    %cst_8 = arith.constant 0.000000e+00 : f32
    %9 = vector.broadcast %cst_8 : f32 to vector<8x128xf32>
    %10 = arith.cmpf oge, %8, %9 : vector<8x128xf32>
    %cst_9 = arith.constant 2.000000e-01 : f32
    %11 = vector.broadcast %cst_9 : f32 to vector<8x128xf32>
    %12 = arith.mulf %11, %8 : vector<8x128xf32>
    %13 = arith.select %10, %8, %12 : vector<8x128xi1>, vector<8x128xf32>
    %c0_10 = arith.constant 0 : index
    %c0_11 = arith.constant 0 : index
    %14 = vector.load %arg4[%c0_10, %c0_11] : memref<8x128xf32, #tpu.memory_space<vmem>>, vector<8x128xf32>
    tpu.vector_store %arg4[%c0_10, %c0_11], %13 {strides = array<i32>} : memref<8x128xf32, #tpu.memory_space<vmem>>, vector<8x128xf32>,
    return
  }
  func.func @transform_0(%arg0: i32) -> (i32, i32, i32) {
    %c0_i32 = arith.constant 0 : i32
    %c0_i32_0 = arith.constant 0 : i32
    %c0_i32_1 = arith.constant 0 : i32
    return %c0_i32, %c0_i32_0, %arg0 : i32, i32, i32
  }
  func.func @transform_1(%arg0: i32) -> (i32, i32, i32) {
    %c0_i32 = arith.constant 0 : i32
    %c0_i32_0 = arith.constant 0 : i32
    %c0_i32_1 = arith.constant 0 : i32
    %c0_i32_2 = arith.constant 0 : i32
    return %c0_i32, %c0_i32_0, %c0_i32_1 : i32, i32, i32
  }
  func.func @transform_2(%arg0: i32) -> (i32, i32, i32) {
    %c0_i32 = arith.constant 0 : i32
    %c0_i32_0 = arith.constant 0 : i32
    %c0_i32_1 = arith.constant 0 : i32
    %c0_i32_2 = arith.constant 0 : i32
    return %c0_i32, %c0_i32_0, %c0_i32_1 : i32, i32, i32
  }
  func.func @transform_3(%arg0: i32) -> (i32, i32) {
    %c0_i32 = arith.constant 0 : i32
    %c0_i32_0 = arith.constant 0 : i32
    return %c0_i32, %arg0 : i32, i32
  }
}

module attributes {stable_mosaic.version = 11 : i64} {
  func.func @_grouped_mm_kernel(%arg0: i32, %arg1: memref<3x32x128xbf16, #tpu.memory_space<vmem>>, %arg2: memref<3x16x32xbf16, #tpu.memory_space<vmem>>, %arg3: memref<3x16x1xf32, #tpu.memory_space<vmem>>, %arg4: memref<16x128xf32, #tpu.memory_space<vmem>>) attributes {dimension_semantics = [#tpu.dimension_semantics<parallel>], iteration_bounds = array<i64: 3>, scalar_prefetch = 0 : i64, scratch_operands = 0 : i64, tpu.core_type = #tpu.core_type<tc>, window_params = [{transform_indices = @transform_0, window_bounds = array<i64: 3, 32, 128>}, {pipeline_mode = #tpu.pipeline_mode<synchronous>, transform_indices = @transform_1, window_bounds = array<i64: 3, 16, 32>}, {pipeline_mode = #tpu.pipeline_mode<synchronous>, transform_indices = @transform_2, window_bounds = array<i64: 3, 16, 1>}, {transform_indices = @transform_3, window_bounds = array<i64: 16, 128>}]} {
    %c0 = arith.constant 0 : index
    %c0_0 = arith.constant 0 : index
    %c0_1 = arith.constant 0 : index
    %0 = vector.load %arg2[%c0, %c0_0, %c0_1] : memref<3x16x32xbf16, #tpu.memory_space<vmem>>, vector<1x16x32xbf16>
    %1 = vector.shape_cast %0 : vector<1x16x32xbf16> to vector<16x32xbf16>
    %c0_2 = arith.constant 0 : index
    %c0_3 = arith.constant 0 : index
    %c0_4 = arith.constant 0 : index
    %2 = vector.load %arg1[%c0_2, %c0_3, %c0_4] : memref<3x32x128xbf16, #tpu.memory_space<vmem>>, vector<1x32x128xbf16>
    %3 = vector.shape_cast %2 : vector<1x32x128xbf16> to vector<32x128xbf16>
    %cst = arith.constant dense<0.000000e+00> : vector<16x128xf32>
    %4 = tpu.matmul %1, %3, %cst {dimension_numbers = #tpu.dot_dimension_numbers<[1], [0], [0], [1], [0, 0, 1, 1], [], []>} : vector<16x32xbf16>, vector<32x128xbf16>, vector<16x128xf32> -> vector<16x128xf32>
    %c0_5 = arith.constant 0 : index
    %c0_6 = arith.constant 0 : index
    %c0_7 = arith.constant 0 : index
    %5 = vector.load %arg3[%c0_5, %c0_6, %c0_7] : memref<3x16x1xf32, #tpu.memory_space<vmem>>, vector<1x16x1xf32>
    %6 = vector.shape_cast %5 : vector<1x16x1xf32> to vector<16x1xf32>
    %7 = vector.broadcast %6 : vector<16x1xf32> to vector<16x128xf32>
    %8 = arith.addf %4, %7 : vector<16x128xf32>
    %cst_8 = arith.constant 0.000000e+00 : f32
    %9 = vector.broadcast %cst_8 : f32 to vector<16x128xf32>
    %10 = arith.cmpf oge, %8, %9 : vector<16x128xf32>
    %cst_9 = arith.constant 2.000000e-01 : f32
    %11 = vector.broadcast %cst_9 : f32 to vector<16x128xf32>
    %12 = arith.mulf %11, %8 : vector<16x128xf32>
    %13 = arith.select %10, %8, %12 : vector<16x128xi1>, vector<16x128xf32>
    %c1 = arith.constant 1 : index
    %c0_10 = arith.constant 0 : index
    %c0_11 = arith.constant 0 : index
    %14 = vector.load %arg2[%c1, %c0_10, %c0_11] : memref<3x16x32xbf16, #tpu.memory_space<vmem>>, vector<1x16x32xbf16>
    %15 = vector.shape_cast %14 : vector<1x16x32xbf16> to vector<16x32xbf16>
    %c1_12 = arith.constant 1 : index
    %c0_13 = arith.constant 0 : index
    %c0_14 = arith.constant 0 : index
    %16 = vector.load %arg1[%c1_12, %c0_13, %c0_14] : memref<3x32x128xbf16, #tpu.memory_space<vmem>>, vector<1x32x128xbf16>
    %17 = vector.shape_cast %16 : vector<1x32x128xbf16> to vector<32x128xbf16>
    %cst_15 = arith.constant dense<0.000000e+00> : vector<16x128xf32>
    %18 = tpu.matmul %15, %17, %cst_15 {dimension_numbers = #tpu.dot_dimension_numbers<[1], [0], [0], [1], [0, 0, 1, 1], [], []>} : vector<16x32xbf16>, vector<32x128xbf16>, vector<16x128xf32> -> vector<16x128xf32>
    %c1_16 = arith.constant 1 : index
    %c0_17 = arith.constant 0 : index
    %c0_18 = arith.constant 0 : index
    %19 = vector.load %arg3[%c1_16, %c0_17, %c0_18] : memref<3x16x1xf32, #tpu.memory_space<vmem>>, vector<1x16x1xf32>
    %20 = vector.shape_cast %19 : vector<1x16x1xf32> to vector<16x1xf32>
    %21 = vector.broadcast %20 : vector<16x1xf32> to vector<16x128xf32>
    %22 = arith.addf %18, %21 : vector<16x128xf32>
    %cst_19 = arith.constant 0.000000e+00 : f32
    %23 = vector.broadcast %cst_19 : f32 to vector<16x128xf32>
    %24 = arith.cmpf oge, %22, %23 : vector<16x128xf32>
    %cst_20 = arith.constant 2.000000e-01 : f32
    %25 = vector.broadcast %cst_20 : f32 to vector<16x128xf32>
    %26 = arith.mulf %25, %22 : vector<16x128xf32>
    %27 = arith.select %24, %22, %26 : vector<16x128xi1>, vector<16x128xf32>
    %28 = arith.addf %13, %27 : vector<16x128xf32>
    %c2 = arith.constant 2 : index
    %c0_21 = arith.constant 0 : index
    %c0_22 = arith.constant 0 : index
    %29 = vector.load %arg2[%c2, %c0_21, %c0_22] : memref<3x16x32xbf16, #tpu.memory_space<vmem>>, vector<1x16x32xbf16>
    %30 = vector.shape_cast %29 : vector<1x16x32xbf16> to vector<16x32xbf16>
    %c2_23 = arith.constant 2 : index
    %c0_24 = arith.constant 0 : index
    %c0_25 = arith.constant 0 : index
    %31 = vector.load %arg1[%c2_23, %c0_24, %c0_25] : memref<3x32x128xbf16, #tpu.memory_space<vmem>>, vector<1x32x128xbf16>
    %32 = vector.shape_cast %31 : vector<1x32x128xbf16> to vector<32x128xbf16>
    %cst_26 = arith.constant dense<0.000000e+00> : vector<16x128xf32>
    %33 = tpu.matmul %30, %32, %cst_26 {dimension_numbers = #tpu.dot_dimension_numbers<[1], [0], [0], [1], [0, 0, 1, 1], [], []>} : vector<16x32xbf16>, vector<32x128xbf16>, vector<16x128xf32> -> vector<16x128xf32>
    %c2_27 = arith.constant 2 : index
    %c0_28 = arith.constant 0 : index
    %c0_29 = arith.constant 0 : index
    %34 = vector.load %arg3[%c2_27, %c0_28, %c0_29] : memref<3x16x1xf32, #tpu.memory_space<vmem>>, vector<1x16x1xf32>
    %35 = vector.shape_cast %34 : vector<1x16x1xf32> to vector<16x1xf32>
    %36 = vector.broadcast %35 : vector<16x1xf32> to vector<16x128xf32>
    %37 = arith.addf %33, %36 : vector<16x128xf32>
    %cst_30 = arith.constant 0.000000e+00 : f32
    %38 = vector.broadcast %cst_30 : f32 to vector<16x128xf32>
    %39 = arith.cmpf oge, %37, %38 : vector<16x128xf32>
    %cst_31 = arith.constant 2.000000e-01 : f32
    %40 = vector.broadcast %cst_31 : f32 to vector<16x128xf32>
    %41 = arith.mulf %40, %37 : vector<16x128xf32>
    %42 = arith.select %39, %37, %41 : vector<16x128xi1>, vector<16x128xf32>
    %43 = arith.addf %28, %42 : vector<16x128xf32>
    %c0_32 = arith.constant 0 : index
    %c0_33 = arith.constant 0 : index
    %44 = vector.load %arg4[%c0_32, %c0_33] : memref<16x128xf32, #tpu.memory_space<vmem>>, vector<16x128xf32>
    tpu.vector_store %arg4[%c0_32, %c0_33], %43 {strides = array<i32>} : memref<16x128xf32, #tpu.memory_space<vmem>>, vector<16x128xf32>,
    return
  }
  func.func @transform_0(%arg0: i32) -> (i32, i32, i32) {
    %c0_i32 = arith.constant 0 : i32
    %c0_i32_0 = arith.constant 0 : i32
    %c0_i32_1 = arith.constant 0 : i32
    return %c0_i32, %c0_i32_0, %arg0 : i32, i32, i32
  }
  func.func @transform_1(%arg0: i32) -> (i32, i32, i32) {
    %c0_i32 = arith.constant 0 : i32
    %c0_i32_0 = arith.constant 0 : i32
    %c0_i32_1 = arith.constant 0 : i32
    %c0_i32_2 = arith.constant 0 : i32
    return %c0_i32, %c0_i32_0, %c0_i32_1 : i32, i32, i32
  }
  func.func @transform_2(%arg0: i32) -> (i32, i32, i32) {
    %c0_i32 = arith.constant 0 : i32
    %c0_i32_0 = arith.constant 0 : i32
    %c0_i32_1 = arith.constant 0 : i32
    %c0_i32_2 = arith.constant 0 : i32
    return %c0_i32, %c0_i32_0, %c0_i32_1 : i32, i32, i32
  }
  func.func @transform_3(%arg0: i32) -> (i32, i32) {
    %c0_i32 = arith.constant 0 : i32
    %c0_i32_0 = arith.constant 0 : i32
    return %c0_i32, %arg0 : i32, i32
  }
}

module attributes {stable_mosaic.version = 11 : i64} {
  func.func @_grouped_mm_kernel(%arg0: i32, %arg1: memref<1x48x128xbf16, #tpu.memory_space<vmem>>, %arg2: memref<1x16x48xbf16, #tpu.memory_space<vmem>>, %arg3: memref<1x16x1xf32, #tpu.memory_space<vmem>>, %arg4: memref<16x128xf32, #tpu.memory_space<vmem>>) attributes {dimension_semantics = [#tpu.dimension_semantics<parallel>], iteration_bounds = array<i64: 2>, scalar_prefetch = 0 : i64, scratch_operands = 0 : i64, tpu.core_type = #tpu.core_type<tc>, window_params = [{transform_indices = @transform_0, window_bounds = array<i64: 1, 48, 128>}, {pipeline_mode = #tpu.pipeline_mode<synchronous>, transform_indices = @transform_1, window_bounds = array<i64: 1, 16, 48>}, {pipeline_mode = #tpu.pipeline_mode<synchronous>, transform_indices = @transform_2, window_bounds = array<i64: 1, 16, 1>}, {transform_indices = @transform_3, window_bounds = array<i64: 16, 128>}]} {
    %c0 = arith.constant 0 : index
    %c0_0 = arith.constant 0 : index
    %c0_1 = arith.constant 0 : index
    %0 = vector.load %arg2[%c0, %c0_0, %c0_1] : memref<1x16x48xbf16, #tpu.memory_space<vmem>>, vector<1x16x48xbf16>
    %1 = vector.shape_cast %0 : vector<1x16x48xbf16> to vector<16x48xbf16>
    %c0_2 = arith.constant 0 : index
    %c0_3 = arith.constant 0 : index
    %c0_4 = arith.constant 0 : index
    %2 = vector.load %arg1[%c0_2, %c0_3, %c0_4] : memref<1x48x128xbf16, #tpu.memory_space<vmem>>, vector<1x48x128xbf16>
    %3 = vector.shape_cast %2 : vector<1x48x128xbf16> to vector<48x128xbf16>
    %cst = arith.constant dense<0.000000e+00> : vector<16x128xf32>
    %4 = tpu.matmul %1, %3, %cst {dimension_numbers = #tpu.dot_dimension_numbers<[1], [0], [0], [1], [0, 0, 1, 1], [], []>} : vector<16x48xbf16>, vector<48x128xbf16>, vector<16x128xf32> -> vector<16x128xf32>
    %c0_5 = arith.constant 0 : index
    %c0_6 = arith.constant 0 : index
    %c0_7 = arith.constant 0 : index
    %5 = vector.load %arg3[%c0_5, %c0_6, %c0_7] : memref<1x16x1xf32, #tpu.memory_space<vmem>>, vector<1x16x1xf32>
    %6 = vector.shape_cast %5 : vector<1x16x1xf32> to vector<16x1xf32>
    %7 = vector.broadcast %6 : vector<16x1xf32> to vector<16x128xf32>
    %8 = arith.addf %4, %7 : vector<16x128xf32>
    %cst_8 = arith.constant 0.000000e+00 : f32
    %9 = vector.broadcast %cst_8 : f32 to vector<16x128xf32>
    %10 = arith.cmpf oge, %8, %9 : vector<16x128xf32>
    %cst_9 = arith.constant 2.000000e-01 : f32
    %11 = vector.broadcast %cst_9 : f32 to vector<16x128xf32>
    %12 = arith.mulf %11, %8 : vector<16x128xf32>
    %13 = arith.select %10, %8, %12 : vector<16x128xi1>, vector<16x128xf32>
    %c0_10 = arith.constant 0 : index
    %c0_11 = arith.constant 0 : index
    %14 = vector.load %arg4[%c0_10, %c0_11] : memref<16x128xf32, #tpu.memory_space<vmem>>, vector<16x128xf32>
    tpu.vector_store %arg4[%c0_10, %c0_11], %13 {strides = array<i32>} : memref<16x128xf32, #tpu.memory_space<vmem>>, vector<16x128xf32>,
    return
  }
  func.func @transform_0(%arg0: i32) -> (i32, i32, i32) {
    %c0_i32 = arith.constant 0 : i32
    %c0_i32_0 = arith.constant 0 : i32
    %c0_i32_1 = arith.constant 0 : i32
    return %c0_i32, %c0_i32_0, %arg0 : i32, i32, i32
  }
  func.func @transform_1(%arg0: i32) -> (i32, i32, i32) {
    %c0_i32 = arith.constant 0 : i32
    %c0_i32_0 = arith.constant 0 : i32
    %c0_i32_1 = arith.constant 0 : i32
    %c0_i32_2 = arith.constant 0 : i32
    return %c0_i32, %c0_i32_0, %c0_i32_1 : i32, i32, i32
  }
  func.func @transform_2(%arg0: i32) -> (i32, i32, i32) {
    %c0_i32 = arith.constant 0 : i32
    %c0_i32_0 = arith.constant 0 : i32
    %c0_i32_1 = arith.constant 0 : i32
    %c0_i32_2 = arith.constant 0 : i32
    return %c0_i32, %c0_i32_0, %c0_i32_1 : i32, i32, i32
  }
  func.func @transform_3(%arg0: i32) -> (i32, i32) {
    %c0_i32 = arith.constant 0 : i32
    %c0_i32_0 = arith.constant 0 : i32
    return %c0_i32, %arg0 : i32, i32
  }
}

module attributes {stable_mosaic.version = 11 : i64} {
  func.func @_grouped_mm_kernel(%arg0: i32, %arg1: memref<3x48x128xbf16, #tpu.memory_space<vmem>>, %arg2: memref<3x16x48xbf16, #tpu.memory_space<vmem>>, %arg3: memref<3x16x1xf32, #tpu.memory_space<vmem>>, %arg4: memref<16x128xf32, #tpu.memory_space<vmem>>) attributes {dimension_semantics = [#tpu.dimension_semantics<parallel>], iteration_bounds = array<i64: 2>, scalar_prefetch = 0 : i64, scratch_operands = 0 : i64, tpu.core_type = #tpu.core_type<tc>, window_params = [{transform_indices = @transform_0, window_bounds = array<i64: 3, 48, 128>}, {pipeline_mode = #tpu.pipeline_mode<synchronous>, transform_indices = @transform_1, window_bounds = array<i64: 3, 16, 48>}, {pipeline_mode = #tpu.pipeline_mode<synchronous>, transform_indices = @transform_2, window_bounds = array<i64: 3, 16, 1>}, {transform_indices = @transform_3, window_bounds = array<i64: 16, 128>}]} {
    %c0 = arith.constant 0 : index
    %c0_0 = arith.constant 0 : index
    %c0_1 = arith.constant 0 : index
    %0 = vector.load %arg2[%c0, %c0_0, %c0_1] : memref<3x16x48xbf16, #tpu.memory_space<vmem>>, vector<1x16x48xbf16>
    %1 = vector.shape_cast %0 : vector<1x16x48xbf16> to vector<16x48xbf16>
    %c0_2 = arith.constant 0 : index
    %c0_3 = arith.constant 0 : index
    %c0_4 = arith.constant 0 : index
    %2 = vector.load %arg1[%c0_2, %c0_3, %c0_4] : memref<3x48x128xbf16, #tpu.memory_space<vmem>>, vector<1x48x128xbf16>
    %3 = vector.shape_cast %2 : vector<1x48x128xbf16> to vector<48x128xbf16>
    %cst = arith.constant dense<0.000000e+00> : vector<16x128xf32>
    %4 = tpu.matmul %1, %3, %cst {dimension_numbers = #tpu.dot_dimension_numbers<[1], [0], [0], [1], [0, 0, 1, 1], [], []>} : vector<16x48xbf16>, vector<48x128xbf16>, vector<16x128xf32> -> vector<16x128xf32>
    %c0_5 = arith.constant 0 : index
    %c0_6 = arith.constant 0 : index
    %c0_7 = arith.constant 0 : index
    %5 = vector.load %arg3[%c0_5, %c0_6, %c0_7] : memref<3x16x1xf32, #tpu.memory_space<vmem>>, vector<1x16x1xf32>
    %6 = vector.shape_cast %5 : vector<1x16x1xf32> to vector<16x1xf32>
    %7 = vector.broadcast %6 : vector<16x1xf32> to vector<16x128xf32>
    %8 = arith.addf %4, %7 : vector<16x128xf32>
    %cst_8 = arith.constant 0.000000e+00 : f32
    %9 = vector.broadcast %cst_8 : f32 to vector<16x128xf32>
    %10 = arith.cmpf oge, %8, %9 : vector<16x128xf32>
    %cst_9 = arith.constant 2.000000e-01 : f32
    %11 = vector.broadcast %cst_9 : f32 to vector<16x128xf32>
    %12 = arith.mulf %11, %8 : vector<16x128xf32>
    %13 = arith.select %10, %8, %12 : vector<16x128xi1>, vector<16x128xf32>
    %c1 = arith.constant 1 : index
    %c0_10 = arith.constant 0 : index
    %c0_11 = arith.constant 0 : index
    %14 = vector.load %arg2[%c1, %c0_10, %c0_11] : memref<3x16x48xbf16, #tpu.memory_space<vmem>>, vector<1x16x48xbf16>
    %15 = vector.shape_cast %14 : vector<1x16x48xbf16> to vector<16x48xbf16>
    %c1_12 = arith.constant 1 : index
    %c0_13 = arith.constant 0 : index
    %c0_14 = arith.constant 0 : index
    %16 = vector.load %arg1[%c1_12, %c0_13, %c0_14] : memref<3x48x128xbf16, #tpu.memory_space<vmem>>, vector<1x48x128xbf16>
    %17 = vector.shape_cast %16 : vector<1x48x128xbf16> to vector<48x128xbf16>
    %cst_15 = arith.constant dense<0.000000e+00> : vector<16x128xf32>
    %18 = tpu.matmul %15, %17, %cst_15 {dimension_numbers = #tpu.dot_dimension_numbers<[1], [0], [0], [1], [0, 0, 1, 1], [], []>} : vector<16x48xbf16>, vector<48x128xbf16>, vector<16x128xf32> -> vector<16x128xf32>
    %c1_16 = arith.constant 1 : index
    %c0_17 = arith.constant 0 : index
    %c0_18 = arith.constant 0 : index
    %19 = vector.load %arg3[%c1_16, %c0_17, %c0_18] : memref<3x16x1xf32, #tpu.memory_space<vmem>>, vector<1x16x1xf32>
    %20 = vector.shape_cast %19 : vector<1x16x1xf32> to vector<16x1xf32>
    %21 = vector.broadcast %20 : vector<16x1xf32> to vector<16x128xf32>
    %22 = arith.addf %18, %21 : vector<16x128xf32>
    %cst_19 = arith.constant 0.000000e+00 : f32
    %23 = vector.broadcast %cst_19 : f32 to vector<16x128xf32>
    %24 = arith.cmpf oge, %22, %23 : vector<16x128xf32>
    %cst_20 = arith.constant 2.000000e-01 : f32
    %25 = vector.broadcast %cst_20 : f32 to vector<16x128xf32>
    %26 = arith.mulf %25, %22 : vector<16x128xf32>
    %27 = arith.select %24, %22, %26 : vector<16x128xi1>, vector<16x128xf32>
    %28 = arith.addf %13, %27 : vector<16x128xf32>
    %c2 = arith.constant 2 : index
    %c0_21 = arith.constant 0 : index
    %c0_22 = arith.constant 0 : index
    %29 = vector.load %arg2[%c2, %c0_21, %c0_22] : memref<3x16x48xbf16, #tpu.memory_space<vmem>>, vector<1x16x48xbf16>
    %30 = vector.shape_cast %29 : vector<1x16x48xbf16> to vector<16x48xbf16>
    %c2_23 = arith.constant 2 : index
    %c0_24 = arith.constant 0 : index
    %c0_25 = arith.constant 0 : index
    %31 = vector.load %arg1[%c2_23, %c0_24, %c0_25] : memref<3x48x128xbf16, #tpu.memory_space<vmem>>, vector<1x48x128xbf16>
    %32 = vector.shape_cast %31 : vector<1x48x128xbf16> to vector<48x128xbf16>
    %cst_26 = arith.constant dense<0.000000e+00> : vector<16x128xf32>
    %33 = tpu.matmul %30, %32, %cst_26 {dimension_numbers = #tpu.dot_dimension_numbers<[1], [0], [0], [1], [0, 0, 1, 1], [], []>} : vector<16x48xbf16>, vector<48x128xbf16>, vector<16x128xf32> -> vector<16x128xf32>
    %c2_27 = arith.constant 2 : index
    %c0_28 = arith.constant 0 : index
    %c0_29 = arith.constant 0 : index
    %34 = vector.load %arg3[%c2_27, %c0_28, %c0_29] : memref<3x16x1xf32, #tpu.memory_space<vmem>>, vector<1x16x1xf32>
    %35 = vector.shape_cast %34 : vector<1x16x1xf32> to vector<16x1xf32>
    %36 = vector.broadcast %35 : vector<16x1xf32> to vector<16x128xf32>
    %37 = arith.addf %33, %36 : vector<16x128xf32>
    %cst_30 = arith.constant 0.000000e+00 : f32
    %38 = vector.broadcast %cst_30 : f32 to vector<16x128xf32>
    %39 = arith.cmpf oge, %37, %38 : vector<16x128xf32>
    %cst_31 = arith.constant 2.000000e-01 : f32
    %40 = vector.broadcast %cst_31 : f32 to vector<16x128xf32>
    %41 = arith.mulf %40, %37 : vector<16x128xf32>
    %42 = arith.select %39, %37, %41 : vector<16x128xi1>, vector<16x128xf32>
    %43 = arith.addf %28, %42 : vector<16x128xf32>
    %c0_32 = arith.constant 0 : index
    %c0_33 = arith.constant 0 : index
    %44 = vector.load %arg4[%c0_32, %c0_33] : memref<16x128xf32, #tpu.memory_space<vmem>>, vector<16x128xf32>
    tpu.vector_store %arg4[%c0_32, %c0_33], %43 {strides = array<i32>} : memref<16x128xf32, #tpu.memory_space<vmem>>, vector<16x128xf32>,
    return
  }
  func.func @transform_0(%arg0: i32) -> (i32, i32, i32) {
    %c0_i32 = arith.constant 0 : i32
    %c0_i32_0 = arith.constant 0 : i32
    %c0_i32_1 = arith.constant 0 : i32
    return %c0_i32, %c0_i32_0, %arg0 : i32, i32, i32
  }
  func.func @transform_1(%arg0: i32) -> (i32, i32, i32) {
    %c0_i32 = arith.constant 0 : i32
    %c0_i32_0 = arith.constant 0 : i32
    %c0_i32_1 = arith.constant 0 : i32
    %c0_i32_2 = arith.constant 0 : i32
    return %c0_i32, %c0_i32_0, %c0_i32_1 : i32, i32, i32
  }
  func.func @transform_2(%arg0: i32) -> (i32, i32, i32) {
    %c0_i32 = arith.constant 0 : i32
    %c0_i32_0 = arith.constant 0 : i32
    %c0_i32_1 = arith.constant 0 : i32
    %c0_i32_2 = arith.constant 0 : i32
    return %c0_i32, %c0_i32_0, %c0_i32_1 : i32, i32, i32
  }
  func.func @transform_3(%arg0: i32) -> (i32, i32) {
    %c0_i32 = arith.constant 0 : i32
    %c0_i32_0 = arith.constant 0 : i32
    return %c0_i32, %arg0 : i32, i32
  }
}

module attributes {stable_mosaic.version = 11 : i64} {
  func.func @_grouped_mm_kernel(%arg0: i32, %arg1: memref<1x48x128xbf16, #tpu.memory_space<vmem>>, %arg2: memref<1x8x48xbf16, #tpu.memory_space<vmem>>, %arg3: memref<1x8x1xf32, #tpu.memory_space<vmem>>, %arg4: memref<8x128xf32, #tpu.memory_space<vmem>>) attributes {dimension_semantics = [#tpu.dimension_semantics<parallel>], iteration_bounds = array<i64: 2>, scalar_prefetch = 0 : i64, scratch_operands = 0 : i64, tpu.core_type = #tpu.core_type<tc>, window_params = [{transform_indices = @transform_0, window_bounds = array<i64: 1, 48, 128>}, {pipeline_mode = #tpu.pipeline_mode<synchronous>, transform_indices = @transform_1, window_bounds = array<i64: 1, 8, 48>}, {pipeline_mode = #tpu.pipeline_mode<synchronous>, transform_indices = @transform_2, window_bounds = array<i64: 1, 8, 1>}, {transform_indices = @transform_3, window_bounds = array<i64: 8, 128>}]} {
    %c0 = arith.constant 0 : index
    %c0_0 = arith.constant 0 : index
    %c0_1 = arith.constant 0 : index
    %0 = vector.load %arg2[%c0, %c0_0, %c0_1] : memref<1x8x48xbf16, #tpu.memory_space<vmem>>, vector<1x8x48xbf16>
    %1 = vector.shape_cast %0 : vector<1x8x48xbf16> to vector<8x48xbf16>
    %c0_2 = arith.constant 0 : index
    %c0_3 = arith.constant 0 : index
    %c0_4 = arith.constant 0 : index
    %2 = vector.load %arg1[%c0_2, %c0_3, %c0_4] : memref<1x48x128xbf16, #tpu.memory_space<vmem>>, vector<1x48x128xbf16>
    %3 = vector.shape_cast %2 : vector<1x48x128xbf16> to vector<48x128xbf16>
    %cst = arith.constant dense<0.000000e+00> : vector<8x128xf32>
    %4 = tpu.matmul %1, %3, %cst {dimension_numbers = #tpu.dot_dimension_numbers<[1], [0], [0], [1], [0, 0, 1, 1], [], []>} : vector<8x48xbf16>, vector<48x128xbf16>, vector<8x128xf32> -> vector<8x128xf32>
    %c0_5 = arith.constant 0 : index
    %c0_6 = arith.constant 0 : index
    %c0_7 = arith.constant 0 : index
    %5 = vector.load %arg3[%c0_5, %c0_6, %c0_7] : memref<1x8x1xf32, #tpu.memory_space<vmem>>, vector<1x8x1xf32>
    %6 = vector.shape_cast %5 : vector<1x8x1xf32> to vector<8x1xf32>
    %7 = vector.broadcast %6 : vector<8x1xf32> to vector<8x128xf32>
    %8 = arith.addf %4, %7 : vector<8x128xf32>
    %c0_8 = arith.constant 0 : index
    %c0_9 = arith.constant 0 : index
    %9 = vector.load %arg4[%c0_8, %c0_9] : memref<8x128xf32, #tpu.memory_space<vmem>>, vector<8x128xf32>
    tpu.vector_store %arg4[%c0_8, %c0_9], %8 {strides = array<i32>} : memref<8x128xf32, #tpu.memory_space<vmem>>, vector<8x128xf32>,
    return
  }
  func.func @transform_0(%arg0: i32) -> (i32, i32, i32) {
    %c0_i32 = arith.constant 0 : i32
    %c0_i32_0 = arith.constant 0 : i32
    %c0_i32_1 = arith.constant 0 : i32
    return %c0_i32, %c0_i32_0, %arg0 : i32, i32, i32
  }
  func.func @transform_1(%arg0: i32) -> (i32, i32, i32) {
    %c0_i32 = arith.constant 0 : i32
    %c0_i32_0 = arith.constant 0 : i32
    %c0_i32_1 = arith.constant 0 : i32
    %c0_i32_2 = arith.constant 0 : i32
    return %c0_i32, %c0_i32_0, %c0_i32_1 : i32, i32, i32
  }
  func.func @transform_2(%arg0: i32) -> (i32, i32, i32) {
    %c0_i32 = arith.constant 0 : i32
    %c0_i32_0 = arith.constant 0 : i32
    %c0_i32_1 = arith.constant 0 : i32
    %c0_i32_2 = arith.constant 0 : i32
    return %c0_i32, %c0_i32_0, %c0_i32_1 : i32, i32, i32
  }
  func.func @transform_3(%arg0: i32) -> (i32, i32) {
    %c0_i32 = arith.constant 0 : i32
    %c0_i32_0 = arith.constant 0 : i32
    return %c0_i32, %arg0 : i32, i32
  }
}

module attributes {stable_mosaic.version = 11 : i64} {
  func.func @_grouped_mm_kernel(%arg0: i32, %arg1: memref<3x96x128xbf16, #tpu.memory_space<vmem>>, %arg2: memref<3x8x96xbf16, #tpu.memory_space<vmem>>, %arg3: memref<3x8x1xf32, #tpu.memory_space<vmem>>, %arg4: memref<8x128xf32, #tpu.memory_space<vmem>>) attributes {dimension_semantics = [#tpu.dimension_semantics<parallel>], iteration_bounds = array<i64: 1>, scalar_prefetch = 0 : i64, scratch_operands = 0 : i64, tpu.core_type = #tpu.core_type<tc>, window_params = [{transform_indices = @transform_0, window_bounds = array<i64: 3, 96, 128>}, {pipeline_mode = #tpu.pipeline_mode<synchronous>, transform_indices = @transform_1, window_bounds = array<i64: 3, 8, 96>}, {pipeline_mode = #tpu.pipeline_mode<synchronous>, transform_indices = @transform_2, window_bounds = array<i64: 3, 8, 1>}, {transform_indices = @transform_3, window_bounds = array<i64: 8, 128>}]} {
    %c0 = arith.constant 0 : index
    %c0_0 = arith.constant 0 : index
    %c0_1 = arith.constant 0 : index
    %0 = vector.load %arg2[%c0, %c0_0, %c0_1] : memref<3x8x96xbf16, #tpu.memory_space<vmem>>, vector<1x8x96xbf16>
    %1 = vector.shape_cast %0 : vector<1x8x96xbf16> to vector<8x96xbf16>
    %c0_2 = arith.constant 0 : index
    %c0_3 = arith.constant 0 : index
    %c0_4 = arith.constant 0 : index
    %2 = vector.load %arg1[%c0_2, %c0_3, %c0_4] : memref<3x96x128xbf16, #tpu.memory_space<vmem>>, vector<1x96x128xbf16>
    %3 = vector.shape_cast %2 : vector<1x96x128xbf16> to vector<96x128xbf16>
    %cst = arith.constant dense<0.000000e+00> : vector<8x128xf32>
    %4 = tpu.matmul %1, %3, %cst {dimension_numbers = #tpu.dot_dimension_numbers<[1], [0], [0], [1], [0, 0, 1, 1], [], []>} : vector<8x96xbf16>, vector<96x128xbf16>, vector<8x128xf32> -> vector<8x128xf32>
    %c0_5 = arith.constant 0 : index
    %c0_6 = arith.constant 0 : index
    %c0_7 = arith.constant 0 : index
    %5 = vector.load %arg3[%c0_5, %c0_6, %c0_7] : memref<3x8x1xf32, #tpu.memory_space<vmem>>, vector<1x8x1xf32>
    %6 = vector.shape_cast %5 : vector<1x8x1xf32> to vector<8x1xf32>
    %7 = vector.broadcast %6 : vector<8x1xf32> to vector<8x128xf32>
    %8 = arith.addf %4, %7 : vector<8x128xf32>
    %cst_8 = arith.constant 0.000000e+00 : f32
    %9 = vector.broadcast %cst_8 : f32 to vector<8x128xf32>
    %10 = arith.cmpf oge, %8, %9 : vector<8x128xf32>
    %cst_9 = arith.constant 2.000000e-01 : f32
    %11 = vector.broadcast %cst_9 : f32 to vector<8x128xf32>
    %12 = arith.mulf %11, %8 : vector<8x128xf32>
    %13 = arith.select %10, %8, %12 : vector<8x128xi1>, vector<8x128xf32>
    %c1 = arith.constant 1 : index
    %c0_10 = arith.constant 0 : index
    %c0_11 = arith.constant 0 : index
    %14 = vector.load %arg2[%c1, %c0_10, %c0_11] : memref<3x8x96xbf16, #tpu.memory_space<vmem>>, vector<1x8x96xbf16>
    %15 = vector.shape_cast %14 : vector<1x8x96xbf16> to vector<8x96xbf16>
    %c1_12 = arith.constant 1 : index
    %c0_13 = arith.constant 0 : index
    %c0_14 = arith.constant 0 : index
    %16 = vector.load %arg1[%c1_12, %c0_13, %c0_14] : memref<3x96x128xbf16, #tpu.memory_space<vmem>>, vector<1x96x128xbf16>
    %17 = vector.shape_cast %16 : vector<1x96x128xbf16> to vector<96x128xbf16>
    %cst_15 = arith.constant dense<0.000000e+00> : vector<8x128xf32>
    %18 = tpu.matmul %15, %17, %cst_15 {dimension_numbers = #tpu.dot_dimension_numbers<[1], [0], [0], [1], [0, 0, 1, 1], [], []>} : vector<8x96xbf16>, vector<96x128xbf16>, vector<8x128xf32> -> vector<8x128xf32>
    %c1_16 = arith.constant 1 : index
    %c0_17 = arith.constant 0 : index
    %c0_18 = arith.constant 0 : index
    %19 = vector.load %arg3[%c1_16, %c0_17, %c0_18] : memref<3x8x1xf32, #tpu.memory_space<vmem>>, vector<1x8x1xf32>
    %20 = vector.shape_cast %19 : vector<1x8x1xf32> to vector<8x1xf32>
    %21 = vector.broadcast %20 : vector<8x1xf32> to vector<8x128xf32>
    %22 = arith.addf %18, %21 : vector<8x128xf32>
    %cst_19 = arith.constant 0.000000e+00 : f32
    %23 = vector.broadcast %cst_19 : f32 to vector<8x128xf32>
    %24 = arith.cmpf oge, %22, %23 : vector<8x128xf32>
    %cst_20 = arith.constant 2.000000e-01 : f32
    %25 = vector.broadcast %cst_20 : f32 to vector<8x128xf32>
    %26 = arith.mulf %25, %22 : vector<8x128xf32>
    %27 = arith.select %24, %22, %26 : vector<8x128xi1>, vector<8x128xf32>
    %28 = arith.addf %13, %27 : vector<8x128xf32>
    %c2 = arith.constant 2 : index
    %c0_21 = arith.constant 0 : index
    %c0_22 = arith.constant 0 : index
    %29 = vector.load %arg2[%c2, %c0_21, %c0_22] : memref<3x8x96xbf16, #tpu.memory_space<vmem>>, vector<1x8x96xbf16>
    %30 = vector.shape_cast %29 : vector<1x8x96xbf16> to vector<8x96xbf16>
    %c2_23 = arith.constant 2 : index
    %c0_24 = arith.constant 0 : index
    %c0_25 = arith.constant 0 : index
    %31 = vector.load %arg1[%c2_23, %c0_24, %c0_25] : memref<3x96x128xbf16, #tpu.memory_space<vmem>>, vector<1x96x128xbf16>
    %32 = vector.shape_cast %31 : vector<1x96x128xbf16> to vector<96x128xbf16>
    %cst_26 = arith.constant dense<0.000000e+00> : vector<8x128xf32>
    %33 = tpu.matmul %30, %32, %cst_26 {dimension_numbers = #tpu.dot_dimension_numbers<[1], [0], [0], [1], [0, 0, 1, 1], [], []>} : vector<8x96xbf16>, vector<96x128xbf16>, vector<8x128xf32> -> vector<8x128xf32>
    %c2_27 = arith.constant 2 : index
    %c0_28 = arith.constant 0 : index
    %c0_29 = arith.constant 0 : index
    %34 = vector.load %arg3[%c2_27, %c0_28, %c0_29] : memref<3x8x1xf32, #tpu.memory_space<vmem>>, vector<1x8x1xf32>
    %35 = vector.shape_cast %34 : vector<1x8x1xf32> to vector<8x1xf32>
    %36 = vector.broadcast %35 : vector<8x1xf32> to vector<8x128xf32>
    %37 = arith.addf %33, %36 : vector<8x128xf32>
    %cst_30 = arith.constant 0.000000e+00 : f32
    %38 = vector.broadcast %cst_30 : f32 to vector<8x128xf32>
    %39 = arith.cmpf oge, %37, %38 : vector<8x128xf32>
    %cst_31 = arith.constant 2.000000e-01 : f32
    %40 = vector.broadcast %cst_31 : f32 to vector<8x128xf32>
    %41 = arith.mulf %40, %37 : vector<8x128xf32>
    %42 = arith.select %39, %37, %41 : vector<8x128xi1>, vector<8x128xf32>
    %43 = arith.addf %28, %42 : vector<8x128xf32>
    %c0_32 = arith.constant 0 : index
    %c0_33 = arith.constant 0 : index
    %44 = vector.load %arg4[%c0_32, %c0_33] : memref<8x128xf32, #tpu.memory_space<vmem>>, vector<8x128xf32>
    tpu.vector_store %arg4[%c0_32, %c0_33], %43 {strides = array<i32>} : memref<8x128xf32, #tpu.memory_space<vmem>>, vector<8x128xf32>,
    return
  }
  func.func @transform_0(%arg0: i32) -> (i32, i32, i32) {
    %c0_i32 = arith.constant 0 : i32
    %c0_i32_0 = arith.constant 0 : i32
    %c0_i32_1 = arith.constant 0 : i32
    return %c0_i32, %c0_i32_0, %arg0 : i32, i32, i32
  }
  func.func @transform_1(%arg0: i32) -> (i32, i32, i32) {
    %c0_i32 = arith.constant 0 : i32
    %c0_i32_0 = arith.constant 0 : i32
    %c0_i32_1 = arith.constant 0 : i32
    %c0_i32_2 = arith.constant 0 : i32
    return %c0_i32, %c0_i32_0, %c0_i32_1 : i32, i32, i32
  }
  func.func @transform_2(%arg0: i32) -> (i32, i32, i32) {
    %c0_i32 = arith.constant 0 : i32
    %c0_i32_0 = arith.constant 0 : i32
    %c0_i32_1 = arith.constant 0 : i32
    %c0_i32_2 = arith.constant 0 : i32
    return %c0_i32, %c0_i32_0, %c0_i32_1 : i32, i32, i32
  }
  func.func @transform_3(%arg0: i32) -> (i32, i32) {
    %c0_i32 = arith.constant 0 : i32
    %c0_i32_0 = arith.constant 0 : i32
    return %c0_i32, %arg0 : i32, i32
  }
}

module attributes {stable_mosaic.version = 11 : i64} {
  func.func @_grouped_mm_kernel(%arg0: i32, %arg1: memref<1x32x128xbf16, #tpu.memory_space<vmem>>, %arg2: memref<1x8x32xbf16, #tpu.memory_space<vmem>>, %arg3: memref<1x8x1xf32, #tpu.memory_space<vmem>>, %arg4: memref<8x128xf32, #tpu.memory_space<vmem>>) attributes {dimension_semantics = [#tpu.dimension_semantics<parallel>], iteration_bounds = array<i64: 1>, scalar_prefetch = 0 : i64, scratch_operands = 0 : i64, tpu.core_type = #tpu.core_type<tc>, window_params = [{transform_indices = @transform_0, window_bounds = array<i64: 1, 32, 128>}, {pipeline_mode = #tpu.pipeline_mode<synchronous>, transform_indices = @transform_1, window_bounds = array<i64: 1, 8, 32>}, {pipeline_mode = #tpu.pipeline_mode<synchronous>, transform_indices = @transform_2, window_bounds = array<i64: 1, 8, 1>}, {transform_indices = @transform_3, window_bounds = array<i64: 8, 128>}]} {
    %c0 = arith.constant 0 : index
    %c0_0 = arith.constant 0 : index
    %c0_1 = arith.constant 0 : index
    %0 = vector.load %arg2[%c0, %c0_0, %c0_1] : memref<1x8x32xbf16, #tpu.memory_space<vmem>>, vector<1x8x32xbf16>
    %1 = vector.shape_cast %0 : vector<1x8x32xbf16> to vector<8x32xbf16>
    %c0_2 = arith.constant 0 : index
    %c0_3 = arith.constant 0 : index
    %c0_4 = arith.constant 0 : index
    %2 = vector.load %arg1[%c0_2, %c0_3, %c0_4] : memref<1x32x128xbf16, #tpu.memory_space<vmem>>, vector<1x32x128xbf16>
    %3 = vector.shape_cast %2 : vector<1x32x128xbf16> to vector<32x128xbf16>
    %cst = arith.constant dense<0.000000e+00> : vector<8x128xf32>
    %4 = tpu.matmul %1, %3, %cst {dimension_numbers = #tpu.dot_dimension_numbers<[1], [0], [0], [1], [0, 0, 1, 1], [], []>} : vector<8x32xbf16>, vector<32x128xbf16>, vector<8x128xf32> -> vector<8x128xf32>
    %c0_5 = arith.constant 0 : index
    %c0_6 = arith.constant 0 : index
    %c0_7 = arith.constant 0 : index
    %5 = vector.load %arg3[%c0_5, %c0_6, %c0_7] : memref<1x8x1xf32, #tpu.memory_space<vmem>>, vector<1x8x1xf32>
    %6 = vector.shape_cast %5 : vector<1x8x1xf32> to vector<8x1xf32>
    %7 = vector.broadcast %6 : vector<8x1xf32> to vector<8x128xf32>
    %8 = arith.addf %4, %7 : vector<8x128xf32>
    %cst_8 = arith.constant 0.000000e+00 : f32
    %9 = vector.broadcast %cst_8 : f32 to vector<8x128xf32>
    %10 = arith.cmpf oge, %8, %9 : vector<8x128xf32>
    %cst_9 = arith.constant 2.000000e-01 : f32
    %11 = vector.broadcast %cst_9 : f32 to vector<8x128xf32>
    %12 = arith.mulf %11, %8 : vector<8x128xf32>
    %13 = arith.select %10, %8, %12 : vector<8x128xi1>, vector<8x128xf32>
    %c0_10 = arith.constant 0 : index
    %c0_11 = arith.constant 0 : index
    %14 = vector.load %arg4[%c0_10, %c0_11] : memref<8x128xf32, #tpu.memory_space<vmem>>, vector<8x128xf32>
    tpu.vector_store %arg4[%c0_10, %c0_11], %13 {strides = array<i32>} : memref<8x128xf32, #tpu.memory_space<vmem>>, vector<8x128xf32>,
    return
  }
  func.func @transform_0(%arg0: i32) -> (i32, i32, i32) {
    %c0_i32 = arith.constant 0 : i32
    %c0_i32_0 = arith.constant 0 : i32
    %c0_i32_1 = arith.constant 0 : i32
    return %c0_i32, %c0_i32_0, %arg0 : i32, i32, i32
  }
  func.func @transform_1(%arg0: i32) -> (i32, i32, i32) {
    %c0_i32 = arith.constant 0 : i32
    %c0_i32_0 = arith.constant 0 : i32
    %c0_i32_1 = arith.constant 0 : i32
    %c0_i32_2 = arith.constant 0 : i32
    return %c0_i32, %c0_i32_0, %c0_i32_1 : i32, i32, i32
  }
  func.func @transform_2(%arg0: i32) -> (i32, i32, i32) {
    %c0_i32 = arith.constant 0 : i32
    %c0_i32_0 = arith.constant 0 : i32
    %c0_i32_1 = arith.constant 0 : i32
    %c0_i32_2 = arith.constant 0 : i32
    return %c0_i32, %c0_i32_0, %c0_i32_1 : i32, i32, i32
  }
  func.func @transform_3(%arg0: i32) -> (i32, i32) {
    %c0_i32 = arith.constant 0 : i32
    %c0_i32_0 = arith.constant 0 : i32
    return %c0_i32, %arg0 : i32, i32
  }
}

module attributes {stable_mosaic.version = 11 : i64} {
  func.func @_grouped_mm_kernel(%arg0: i32, %arg1: memref<3x32x128xbf16, #tpu.memory_space<vmem>>, %arg2: memref<3x16x32xbf16, #tpu.memory_space<vmem>>, %arg3: memref<3x16x1xf32, #tpu.memory_space<vmem>>, %arg4: memref<16x128xf32, #tpu.memory_space<vmem>>) attributes {dimension_semantics = [#tpu.dimension_semantics<parallel>], iteration_bounds = array<i64: 1>, scalar_prefetch = 0 : i64, scratch_operands = 0 : i64, tpu.core_type = #tpu.core_type<tc>, window_params = [{transform_indices = @transform_0, window_bounds = array<i64: 3, 32, 128>}, {pipeline_mode = #tpu.pipeline_mode<synchronous>, transform_indices = @transform_1, window_bounds = array<i64: 3, 16, 32>}, {pipeline_mode = #tpu.pipeline_mode<synchronous>, transform_indices = @transform_2, window_bounds = array<i64: 3, 16, 1>}, {transform_indices = @transform_3, window_bounds = array<i64: 16, 128>}]} {
    %c0 = arith.constant 0 : index
    %c0_0 = arith.constant 0 : index
    %c0_1 = arith.constant 0 : index
    %0 = vector.load %arg2[%c0, %c0_0, %c0_1] : memref<3x16x32xbf16, #tpu.memory_space<vmem>>, vector<1x16x32xbf16>
    %1 = vector.shape_cast %0 : vector<1x16x32xbf16> to vector<16x32xbf16>
    %c0_2 = arith.constant 0 : index
    %c0_3 = arith.constant 0 : index
    %c0_4 = arith.constant 0 : index
    %2 = vector.load %arg1[%c0_2, %c0_3, %c0_4] : memref<3x32x128xbf16, #tpu.memory_space<vmem>>, vector<1x32x128xbf16>
    %3 = vector.shape_cast %2 : vector<1x32x128xbf16> to vector<32x128xbf16>
    %cst = arith.constant dense<0.000000e+00> : vector<16x128xf32>
    %4 = tpu.matmul %1, %3, %cst {dimension_numbers = #tpu.dot_dimension_numbers<[1], [0], [0], [1], [0, 0, 1, 1], [], []>} : vector<16x32xbf16>, vector<32x128xbf16>, vector<16x128xf32> -> vector<16x128xf32>
    %c0_5 = arith.constant 0 : index
    %c0_6 = arith.constant 0 : index
    %c0_7 = arith.constant 0 : index
    %5 = vector.load %arg3[%c0_5, %c0_6, %c0_7] : memref<3x16x1xf32, #tpu.memory_space<vmem>>, vector<1x16x1xf32>
    %6 = vector.shape_cast %5 : vector<1x16x1xf32> to vector<16x1xf32>
    %7 = vector.broadcast %6 : vector<16x1xf32> to vector<16x128xf32>
    %8 = arith.addf %4, %7 : vector<16x128xf32>
    %cst_8 = arith.constant 0.000000e+00 : f32
    %9 = vector.broadcast %cst_8 : f32 to vector<16x128xf32>
    %10 = arith.cmpf oge, %8, %9 : vector<16x128xf32>
    %cst_9 = arith.constant 2.000000e-01 : f32
    %11 = vector.broadcast %cst_9 : f32 to vector<16x128xf32>
    %12 = arith.mulf %11, %8 : vector<16x128xf32>
    %13 = arith.select %10, %8, %12 : vector<16x128xi1>, vector<16x128xf32>
    %c1 = arith.constant 1 : index
    %c0_10 = arith.constant 0 : index
    %c0_11 = arith.constant 0 : index
    %14 = vector.load %arg2[%c1, %c0_10, %c0_11] : memref<3x16x32xbf16, #tpu.memory_space<vmem>>, vector<1x16x32xbf16>
    %15 = vector.shape_cast %14 : vector<1x16x32xbf16> to vector<16x32xbf16>
    %c1_12 = arith.constant 1 : index
    %c0_13 = arith.constant 0 : index
    %c0_14 = arith.constant 0 : index
    %16 = vector.load %arg1[%c1_12, %c0_13, %c0_14] : memref<3x32x128xbf16, #tpu.memory_space<vmem>>, vector<1x32x128xbf16>
    %17 = vector.shape_cast %16 : vector<1x32x128xbf16> to vector<32x128xbf16>
    %cst_15 = arith.constant dense<0.000000e+00> : vector<16x128xf32>
    %18 = tpu.matmul %15, %17, %cst_15 {dimension_numbers = #tpu.dot_dimension_numbers<[1], [0], [0], [1], [0, 0, 1, 1], [], []>} : vector<16x32xbf16>, vector<32x128xbf16>, vector<16x128xf32> -> vector<16x128xf32>
    %c1_16 = arith.constant 1 : index
    %c0_17 = arith.constant 0 : index
    %c0_18 = arith.constant 0 : index
    %19 = vector.load %arg3[%c1_16, %c0_17, %c0_18] : memref<3x16x1xf32, #tpu.memory_space<vmem>>, vector<1x16x1xf32>
    %20 = vector.shape_cast %19 : vector<1x16x1xf32> to vector<16x1xf32>
    %21 = vector.broadcast %20 : vector<16x1xf32> to vector<16x128xf32>
    %22 = arith.addf %18, %21 : vector<16x128xf32>
    %cst_19 = arith.constant 0.000000e+00 : f32
    %23 = vector.broadcast %cst_19 : f32 to vector<16x128xf32>
    %24 = arith.cmpf oge, %22, %23 : vector<16x128xf32>
    %cst_20 = arith.constant 2.000000e-01 : f32
    %25 = vector.broadcast %cst_20 : f32 to vector<16x128xf32>
    %26 = arith.mulf %25, %22 : vector<16x128xf32>
    %27 = arith.select %24, %22, %26 : vector<16x128xi1>, vector<16x128xf32>
    %28 = arith.addf %13, %27 : vector<16x128xf32>
    %c2 = arith.constant 2 : index
    %c0_21 = arith.constant 0 : index
    %c0_22 = arith.constant 0 : index
    %29 = vector.load %arg2[%c2, %c0_21, %c0_22] : memref<3x16x32xbf16, #tpu.memory_space<vmem>>, vector<1x16x32xbf16>
    %30 = vector.shape_cast %29 : vector<1x16x32xbf16> to vector<16x32xbf16>
    %c2_23 = arith.constant 2 : index
    %c0_24 = arith.constant 0 : index
    %c0_25 = arith.constant 0 : index
    %31 = vector.load %arg1[%c2_23, %c0_24, %c0_25] : memref<3x32x128xbf16, #tpu.memory_space<vmem>>, vector<1x32x128xbf16>
    %32 = vector.shape_cast %31 : vector<1x32x128xbf16> to vector<32x128xbf16>
    %cst_26 = arith.constant dense<0.000000e+00> : vector<16x128xf32>
    %33 = tpu.matmul %30, %32, %cst_26 {dimension_numbers = #tpu.dot_dimension_numbers<[1], [0], [0], [1], [0, 0, 1, 1], [], []>} : vector<16x32xbf16>, vector<32x128xbf16>, vector<16x128xf32> -> vector<16x128xf32>
    %c2_27 = arith.constant 2 : index
    %c0_28 = arith.constant 0 : index
    %c0_29 = arith.constant 0 : index
    %34 = vector.load %arg3[%c2_27, %c0_28, %c0_29] : memref<3x16x1xf32, #tpu.memory_space<vmem>>, vector<1x16x1xf32>
    %35 = vector.shape_cast %34 : vector<1x16x1xf32> to vector<16x1xf32>
    %36 = vector.broadcast %35 : vector<16x1xf32> to vector<16x128xf32>
    %37 = arith.addf %33, %36 : vector<16x128xf32>
    %cst_30 = arith.constant 0.000000e+00 : f32
    %38 = vector.broadcast %cst_30 : f32 to vector<16x128xf32>
    %39 = arith.cmpf oge, %37, %38 : vector<16x128xf32>
    %cst_31 = arith.constant 2.000000e-01 : f32
    %40 = vector.broadcast %cst_31 : f32 to vector<16x128xf32>
    %41 = arith.mulf %40, %37 : vector<16x128xf32>
    %42 = arith.select %39, %37, %41 : vector<16x128xi1>, vector<16x128xf32>
    %43 = arith.addf %28, %42 : vector<16x128xf32>
    %c0_32 = arith.constant 0 : index
    %c0_33 = arith.constant 0 : index
    %44 = vector.load %arg4[%c0_32, %c0_33] : memref<16x128xf32, #tpu.memory_space<vmem>>, vector<16x128xf32>
    tpu.vector_store %arg4[%c0_32, %c0_33], %43 {strides = array<i32>} : memref<16x128xf32, #tpu.memory_space<vmem>>, vector<16x128xf32>,
    return
  }
  func.func @transform_0(%arg0: i32) -> (i32, i32, i32) {
    %c0_i32 = arith.constant 0 : i32
    %c0_i32_0 = arith.constant 0 : i32
    %c0_i32_1 = arith.constant 0 : i32
    return %c0_i32, %c0_i32_0, %arg0 : i32, i32, i32
  }
  func.func @transform_1(%arg0: i32) -> (i32, i32, i32) {
    %c0_i32 = arith.constant 0 : i32
    %c0_i32_0 = arith.constant 0 : i32
    %c0_i32_1 = arith.constant 0 : i32
    %c0_i32_2 = arith.constant 0 : i32
    return %c0_i32, %c0_i32_0, %c0_i32_1 : i32, i32, i32
  }
  func.func @transform_2(%arg0: i32) -> (i32, i32, i32) {
    %c0_i32 = arith.constant 0 : i32
    %c0_i32_0 = arith.constant 0 : i32
    %c0_i32_1 = arith.constant 0 : i32
    %c0_i32_2 = arith.constant 0 : i32
    return %c0_i32, %c0_i32_0, %c0_i32_1 : i32, i32, i32
  }
  func.func @transform_3(%arg0: i32) -> (i32, i32) {
    %c0_i32 = arith.constant 0 : i32
    %c0_i32_0 = arith.constant 0 : i32
    return %c0_i32, %arg0 : i32, i32
  }
}

module attributes {stable_mosaic.version = 11 : i64} {
  func.func @_grouped_mm_kernel(%arg0: i32, %arg1: memref<1x48x128xbf16, #tpu.memory_space<vmem>>, %arg2: memref<1x16x48xbf16, #tpu.memory_space<vmem>>, %arg3: memref<1x16x1xf32, #tpu.memory_space<vmem>>, %arg4: memref<16x128xf32, #tpu.memory_space<vmem>>) attributes {dimension_semantics = [#tpu.dimension_semantics<parallel>], iteration_bounds = array<i64: 1>, scalar_prefetch = 0 : i64, scratch_operands = 0 : i64, tpu.core_type = #tpu.core_type<tc>, window_params = [{transform_indices = @transform_0, window_bounds = array<i64: 1, 48, 128>}, {pipeline_mode = #tpu.pipeline_mode<synchronous>, transform_indices = @transform_1, window_bounds = array<i64: 1, 16, 48>}, {pipeline_mode = #tpu.pipeline_mode<synchronous>, transform_indices = @transform_2, window_bounds = array<i64: 1, 16, 1>}, {transform_indices = @transform_3, window_bounds = array<i64: 16, 128>}]} {
    %c0 = arith.constant 0 : index
    %c0_0 = arith.constant 0 : index
    %c0_1 = arith.constant 0 : index
    %0 = vector.load %arg2[%c0, %c0_0, %c0_1] : memref<1x16x48xbf16, #tpu.memory_space<vmem>>, vector<1x16x48xbf16>
    %1 = vector.shape_cast %0 : vector<1x16x48xbf16> to vector<16x48xbf16>
    %c0_2 = arith.constant 0 : index
    %c0_3 = arith.constant 0 : index
    %c0_4 = arith.constant 0 : index
    %2 = vector.load %arg1[%c0_2, %c0_3, %c0_4] : memref<1x48x128xbf16, #tpu.memory_space<vmem>>, vector<1x48x128xbf16>
    %3 = vector.shape_cast %2 : vector<1x48x128xbf16> to vector<48x128xbf16>
    %cst = arith.constant dense<0.000000e+00> : vector<16x128xf32>
    %4 = tpu.matmul %1, %3, %cst {dimension_numbers = #tpu.dot_dimension_numbers<[1], [0], [0], [1], [0, 0, 1, 1], [], []>} : vector<16x48xbf16>, vector<48x128xbf16>, vector<16x128xf32> -> vector<16x128xf32>
    %c0_5 = arith.constant 0 : index
    %c0_6 = arith.constant 0 : index
    %c0_7 = arith.constant 0 : index
    %5 = vector.load %arg3[%c0_5, %c0_6, %c0_7] : memref<1x16x1xf32, #tpu.memory_space<vmem>>, vector<1x16x1xf32>
    %6 = vector.shape_cast %5 : vector<1x16x1xf32> to vector<16x1xf32>
    %7 = vector.broadcast %6 : vector<16x1xf32> to vector<16x128xf32>
    %8 = arith.addf %4, %7 : vector<16x128xf32>
    %cst_8 = arith.constant 0.000000e+00 : f32
    %9 = vector.broadcast %cst_8 : f32 to vector<16x128xf32>
    %10 = arith.cmpf oge, %8, %9 : vector<16x128xf32>
    %cst_9 = arith.constant 2.000000e-01 : f32
    %11 = vector.broadcast %cst_9 : f32 to vector<16x128xf32>
    %12 = arith.mulf %11, %8 : vector<16x128xf32>
    %13 = arith.select %10, %8, %12 : vector<16x128xi1>, vector<16x128xf32>
    %c0_10 = arith.constant 0 : index
    %c0_11 = arith.constant 0 : index
    %14 = vector.load %arg4[%c0_10, %c0_11] : memref<16x128xf32, #tpu.memory_space<vmem>>, vector<16x128xf32>
    tpu.vector_store %arg4[%c0_10, %c0_11], %13 {strides = array<i32>} : memref<16x128xf32, #tpu.memory_space<vmem>>, vector<16x128xf32>,
    return
  }
  func.func @transform_0(%arg0: i32) -> (i32, i32, i32) {
    %c0_i32 = arith.constant 0 : i32
    %c0_i32_0 = arith.constant 0 : i32
    %c0_i32_1 = arith.constant 0 : i32
    return %c0_i32, %c0_i32_0, %arg0 : i32, i32, i32
  }
  func.func @transform_1(%arg0: i32) -> (i32, i32, i32) {
    %c0_i32 = arith.constant 0 : i32
    %c0_i32_0 = arith.constant 0 : i32
    %c0_i32_1 = arith.constant 0 : i32
    %c0_i32_2 = arith.constant 0 : i32
    return %c0_i32, %c0_i32_0, %c0_i32_1 : i32, i32, i32
  }
  func.func @transform_2(%arg0: i32) -> (i32, i32, i32) {
    %c0_i32 = arith.constant 0 : i32
    %c0_i32_0 = arith.constant 0 : i32
    %c0_i32_1 = arith.constant 0 : i32
    %c0_i32_2 = arith.constant 0 : i32
    return %c0_i32, %c0_i32_0, %c0_i32_1 : i32, i32, i32
  }
  func.func @transform_3(%arg0: i32) -> (i32, i32) {
    %c0_i32 = arith.constant 0 : i32
    %c0_i32_0 = arith.constant 0 : i32
    return %c0_i32, %arg0 : i32, i32
  }
}

module attributes {stable_mosaic.version = 11 : i64} {
  func.func @_grouped_mm_kernel(%arg0: i32, %arg1: memref<3x48x128xbf16, #tpu.memory_space<vmem>>, %arg2: memref<3x16x48xbf16, #tpu.memory_space<vmem>>, %arg3: memref<3x16x1xf32, #tpu.memory_space<vmem>>, %arg4: memref<16x128xf32, #tpu.memory_space<vmem>>) attributes {dimension_semantics = [#tpu.dimension_semantics<parallel>], iteration_bounds = array<i64: 1>, scalar_prefetch = 0 : i64, scratch_operands = 0 : i64, tpu.core_type = #tpu.core_type<tc>, window_params = [{transform_indices = @transform_0, window_bounds = array<i64: 3, 48, 128>}, {pipeline_mode = #tpu.pipeline_mode<synchronous>, transform_indices = @transform_1, window_bounds = array<i64: 3, 16, 48>}, {pipeline_mode = #tpu.pipeline_mode<synchronous>, transform_indices = @transform_2, window_bounds = array<i64: 3, 16, 1>}, {transform_indices = @transform_3, window_bounds = array<i64: 16, 128>}]} {
    %c0 = arith.constant 0 : index
    %c0_0 = arith.constant 0 : index
    %c0_1 = arith.constant 0 : index
    %0 = vector.load %arg2[%c0, %c0_0, %c0_1] : memref<3x16x48xbf16, #tpu.memory_space<vmem>>, vector<1x16x48xbf16>
    %1 = vector.shape_cast %0 : vector<1x16x48xbf16> to vector<16x48xbf16>
    %c0_2 = arith.constant 0 : index
    %c0_3 = arith.constant 0 : index
    %c0_4 = arith.constant 0 : index
    %2 = vector.load %arg1[%c0_2, %c0_3, %c0_4] : memref<3x48x128xbf16, #tpu.memory_space<vmem>>, vector<1x48x128xbf16>
    %3 = vector.shape_cast %2 : vector<1x48x128xbf16> to vector<48x128xbf16>
    %cst = arith.constant dense<0.000000e+00> : vector<16x128xf32>
    %4 = tpu.matmul %1, %3, %cst {dimension_numbers = #tpu.dot_dimension_numbers<[1], [0], [0], [1], [0, 0, 1, 1], [], []>} : vector<16x48xbf16>, vector<48x128xbf16>, vector<16x128xf32> -> vector<16x128xf32>
    %c0_5 = arith.constant 0 : index
    %c0_6 = arith.constant 0 : index
    %c0_7 = arith.constant 0 : index
    %5 = vector.load %arg3[%c0_5, %c0_6, %c0_7] : memref<3x16x1xf32, #tpu.memory_space<vmem>>, vector<1x16x1xf32>
    %6 = vector.shape_cast %5 : vector<1x16x1xf32> to vector<16x1xf32>
    %7 = vector.broadcast %6 : vector<16x1xf32> to vector<16x128xf32>
    %8 = arith.addf %4, %7 : vector<16x128xf32>
    %cst_8 = arith.constant 0.000000e+00 : f32
    %9 = vector.broadcast %cst_8 : f32 to vector<16x128xf32>
    %10 = arith.cmpf oge, %8, %9 : vector<16x128xf32>
    %cst_9 = arith.constant 2.000000e-01 : f32
    %11 = vector.broadcast %cst_9 : f32 to vector<16x128xf32>
    %12 = arith.mulf %11, %8 : vector<16x128xf32>
    %13 = arith.select %10, %8, %12 : vector<16x128xi1>, vector<16x128xf32>
    %c1 = arith.constant 1 : index
    %c0_10 = arith.constant 0 : index
    %c0_11 = arith.constant 0 : index
    %14 = vector.load %arg2[%c1, %c0_10, %c0_11] : memref<3x16x48xbf16, #tpu.memory_space<vmem>>, vector<1x16x48xbf16>
    %15 = vector.shape_cast %14 : vector<1x16x48xbf16> to vector<16x48xbf16>
    %c1_12 = arith.constant 1 : index
    %c0_13 = arith.constant 0 : index
    %c0_14 = arith.constant 0 : index
    %16 = vector.load %arg1[%c1_12, %c0_13, %c0_14] : memref<3x48x128xbf16, #tpu.memory_space<vmem>>, vector<1x48x128xbf16>
    %17 = vector.shape_cast %16 : vector<1x48x128xbf16> to vector<48x128xbf16>
    %cst_15 = arith.constant dense<0.000000e+00> : vector<16x128xf32>
    %18 = tpu.matmul %15, %17, %cst_15 {dimension_numbers = #tpu.dot_dimension_numbers<[1], [0], [0], [1], [0, 0, 1, 1], [], []>} : vector<16x48xbf16>, vector<48x128xbf16>, vector<16x128xf32> -> vector<16x128xf32>
    %c1_16 = arith.constant 1 : index
    %c0_17 = arith.constant 0 : index
    %c0_18 = arith.constant 0 : index
    %19 = vector.load %arg3[%c1_16, %c0_17, %c0_18] : memref<3x16x1xf32, #tpu.memory_space<vmem>>, vector<1x16x1xf32>
    %20 = vector.shape_cast %19 : vector<1x16x1xf32> to vector<16x1xf32>
    %21 = vector.broadcast %20 : vector<16x1xf32> to vector<16x128xf32>
    %22 = arith.addf %18, %21 : vector<16x128xf32>
    %cst_19 = arith.constant 0.000000e+00 : f32
    %23 = vector.broadcast %cst_19 : f32 to vector<16x128xf32>
    %24 = arith.cmpf oge, %22, %23 : vector<16x128xf32>
    %cst_20 = arith.constant 2.000000e-01 : f32
    %25 = vector.broadcast %cst_20 : f32 to vector<16x128xf32>
    %26 = arith.mulf %25, %22 : vector<16x128xf32>
    %27 = arith.select %24, %22, %26 : vector<16x128xi1>, vector<16x128xf32>
    %28 = arith.addf %13, %27 : vector<16x128xf32>
    %c2 = arith.constant 2 : index
    %c0_21 = arith.constant 0 : index
    %c0_22 = arith.constant 0 : index
    %29 = vector.load %arg2[%c2, %c0_21, %c0_22] : memref<3x16x48xbf16, #tpu.memory_space<vmem>>, vector<1x16x48xbf16>
    %30 = vector.shape_cast %29 : vector<1x16x48xbf16> to vector<16x48xbf16>
    %c2_23 = arith.constant 2 : index
    %c0_24 = arith.constant 0 : index
    %c0_25 = arith.constant 0 : index
    %31 = vector.load %arg1[%c2_23, %c0_24, %c0_25] : memref<3x48x128xbf16, #tpu.memory_space<vmem>>, vector<1x48x128xbf16>
    %32 = vector.shape_cast %31 : vector<1x48x128xbf16> to vector<48x128xbf16>
    %cst_26 = arith.constant dense<0.000000e+00> : vector<16x128xf32>
    %33 = tpu.matmul %30, %32, %cst_26 {dimension_numbers = #tpu.dot_dimension_numbers<[1], [0], [0], [1], [0, 0, 1, 1], [], []>} : vector<16x48xbf16>, vector<48x128xbf16>, vector<16x128xf32> -> vector<16x128xf32>
    %c2_27 = arith.constant 2 : index
    %c0_28 = arith.constant 0 : index
    %c0_29 = arith.constant 0 : index
    %34 = vector.load %arg3[%c2_27, %c0_28, %c0_29] : memref<3x16x1xf32, #tpu.memory_space<vmem>>, vector<1x16x1xf32>
    %35 = vector.shape_cast %34 : vector<1x16x1xf32> to vector<16x1xf32>
    %36 = vector.broadcast %35 : vector<16x1xf32> to vector<16x128xf32>
    %37 = arith.addf %33, %36 : vector<16x128xf32>
    %cst_30 = arith.constant 0.000000e+00 : f32
    %38 = vector.broadcast %cst_30 : f32 to vector<16x128xf32>
    %39 = arith.cmpf oge, %37, %38 : vector<16x128xf32>
    %cst_31 = arith.constant 2.000000e-01 : f32
    %40 = vector.broadcast %cst_31 : f32 to vector<16x128xf32>
    %41 = arith.mulf %40, %37 : vector<16x128xf32>
    %42 = arith.select %39, %37, %41 : vector<16x128xi1>, vector<16x128xf32>
    %43 = arith.addf %28, %42 : vector<16x128xf32>
    %c0_32 = arith.constant 0 : index
    %c0_33 = arith.constant 0 : index
    %44 = vector.load %arg4[%c0_32, %c0_33] : memref<16x128xf32, #tpu.memory_space<vmem>>, vector<16x128xf32>
    tpu.vector_store %arg4[%c0_32, %c0_33], %43 {strides = array<i32>} : memref<16x128xf32, #tpu.memory_space<vmem>>, vector<16x128xf32>,
    return
  }
  func.func @transform_0(%arg0: i32) -> (i32, i32, i32) {
    %c0_i32 = arith.constant 0 : i32
    %c0_i32_0 = arith.constant 0 : i32
    %c0_i32_1 = arith.constant 0 : i32
    return %c0_i32, %c0_i32_0, %arg0 : i32, i32, i32
  }
  func.func @transform_1(%arg0: i32) -> (i32, i32, i32) {
    %c0_i32 = arith.constant 0 : i32
    %c0_i32_0 = arith.constant 0 : i32
    %c0_i32_1 = arith.constant 0 : i32
    %c0_i32_2 = arith.constant 0 : i32
    return %c0_i32, %c0_i32_0, %c0_i32_1 : i32, i32, i32
  }
  func.func @transform_2(%arg0: i32) -> (i32, i32, i32) {
    %c0_i32 = arith.constant 0 : i32
    %c0_i32_0 = arith.constant 0 : i32
    %c0_i32_1 = arith.constant 0 : i32
    %c0_i32_2 = arith.constant 0 : i32
    return %c0_i32, %c0_i32_0, %c0_i32_1 : i32, i32, i32
  }
  func.func @transform_3(%arg0: i32) -> (i32, i32) {
    %c0_i32 = arith.constant 0 : i32
    %c0_i32_0 = arith.constant 0 : i32
    return %c0_i32, %arg0 : i32, i32
  }
}

module attributes {stable_mosaic.version = 11 : i64} {
  func.func @_grouped_mm_kernel(%arg0: i32, %arg1: memref<1x48x128xbf16, #tpu.memory_space<vmem>>, %arg2: memref<1x8x48xbf16, #tpu.memory_space<vmem>>, %arg3: memref<1x8x1xf32, #tpu.memory_space<vmem>>, %arg4: memref<8x128xf32, #tpu.memory_space<vmem>>) attributes {dimension_semantics = [#tpu.dimension_semantics<parallel>], iteration_bounds = array<i64: 1>, scalar_prefetch = 0 : i64, scratch_operands = 0 : i64, tpu.core_type = #tpu.core_type<tc>, window_params = [{transform_indices = @transform_0, window_bounds = array<i64: 1, 48, 128>}, {pipeline_mode = #tpu.pipeline_mode<synchronous>, transform_indices = @transform_1, window_bounds = array<i64: 1, 8, 48>}, {pipeline_mode = #tpu.pipeline_mode<synchronous>, transform_indices = @transform_2, window_bounds = array<i64: 1, 8, 1>}, {transform_indices = @transform_3, window_bounds = array<i64: 8, 128>}]} {
    %c0 = arith.constant 0 : index
    %c0_0 = arith.constant 0 : index
    %c0_1 = arith.constant 0 : index
    %0 = vector.load %arg2[%c0, %c0_0, %c0_1] : memref<1x8x48xbf16, #tpu.memory_space<vmem>>, vector<1x8x48xbf16>
    %1 = vector.shape_cast %0 : vector<1x8x48xbf16> to vector<8x48xbf16>
    %c0_2 = arith.constant 0 : index
    %c0_3 = arith.constant 0 : index
    %c0_4 = arith.constant 0 : index
    %2 = vector.load %arg1[%c0_2, %c0_3, %c0_4] : memref<1x48x128xbf16, #tpu.memory_space<vmem>>, vector<1x48x128xbf16>
    %3 = vector.shape_cast %2 : vector<1x48x128xbf16> to vector<48x128xbf16>
    %cst = arith.constant dense<0.000000e+00> : vector<8x128xf32>
    %4 = tpu.matmul %1, %3, %cst {dimension_numbers = #tpu.dot_dimension_numbers<[1], [0], [0], [1], [0, 0, 1, 1], [], []>} : vector<8x48xbf16>, vector<48x128xbf16>, vector<8x128xf32> -> vector<8x128xf32>
    %c0_5 = arith.constant 0 : index
    %c0_6 = arith.constant 0 : index
    %c0_7 = arith.constant 0 : index
    %5 = vector.load %arg3[%c0_5, %c0_6, %c0_7] : memref<1x8x1xf32, #tpu.memory_space<vmem>>, vector<1x8x1xf32>
    %6 = vector.shape_cast %5 : vector<1x8x1xf32> to vector<8x1xf32>
    %7 = vector.broadcast %6 : vector<8x1xf32> to vector<8x128xf32>
    %8 = arith.addf %4, %7 : vector<8x128xf32>
    %c0_8 = arith.constant 0 : index
    %c0_9 = arith.constant 0 : index
    %9 = vector.load %arg4[%c0_8, %c0_9] : memref<8x128xf32, #tpu.memory_space<vmem>>, vector<8x128xf32>
    tpu.vector_store %arg4[%c0_8, %c0_9], %8 {strides = array<i32>} : memref<8x128xf32, #tpu.memory_space<vmem>>, vector<8x128xf32>,
    return
  }
  func.func @transform_0(%arg0: i32) -> (i32, i32, i32) {
    %c0_i32 = arith.constant 0 : i32
    %c0_i32_0 = arith.constant 0 : i32
    %c0_i32_1 = arith.constant 0 : i32
    return %c0_i32, %c0_i32_0, %arg0 : i32, i32, i32
  }
  func.func @transform_1(%arg0: i32) -> (i32, i32, i32) {
    %c0_i32 = arith.constant 0 : i32
    %c0_i32_0 = arith.constant 0 : i32
    %c0_i32_1 = arith.constant 0 : i32
    %c0_i32_2 = arith.constant 0 : i32
    return %c0_i32, %c0_i32_0, %c0_i32_1 : i32, i32, i32
  }
  func.func @transform_2(%arg0: i32) -> (i32, i32, i32) {
    %c0_i32 = arith.constant 0 : i32
    %c0_i32_0 = arith.constant 0 : i32
    %c0_i32_1 = arith.constant 0 : i32
    %c0_i32_2 = arith.constant 0 : i32
    return %c0_i32, %c0_i32_0, %c0_i32_1 : i32, i32, i32
  }
  func.func @transform_3(%arg0: i32) -> (i32, i32) {
    %c0_i32 = arith.constant 0 : i32
    %c0_i32_0 = arith.constant 0 : i32
    return %c0_i32, %arg0 : i32, i32
  }
}

module attributes {stable_mosaic.version = 11 : i64} {
  func.func @_grouped_mm_kernel(%arg0: i32, %arg1: memref<1x48x128xbf16, #tpu.memory_space<vmem>>, %arg2: memref<1x16x48xbf16, #tpu.memory_space<vmem>>, %arg3: memref<1x16x1xf32, #tpu.memory_space<vmem>>, %arg4: memref<16x128xf32, #tpu.memory_space<vmem>>) attributes {dimension_semantics = [#tpu.dimension_semantics<parallel>], iteration_bounds = array<i64: 3>, scalar_prefetch = 0 : i64, scratch_operands = 0 : i64, tpu.core_type = #tpu.core_type<tc>, window_params = [{transform_indices = @transform_0, window_bounds = array<i64: 1, 48, 128>}, {pipeline_mode = #tpu.pipeline_mode<synchronous>, transform_indices = @transform_1, window_bounds = array<i64: 1, 16, 48>}, {pipeline_mode = #tpu.pipeline_mode<synchronous>, transform_indices = @transform_2, window_bounds = array<i64: 1, 16, 1>}, {transform_indices = @transform_3, window_bounds = array<i64: 16, 128>}]} {
    %c0 = arith.constant 0 : index
    %c0_0 = arith.constant 0 : index
    %c0_1 = arith.constant 0 : index
    %0 = vector.load %arg2[%c0, %c0_0, %c0_1] : memref<1x16x48xbf16, #tpu.memory_space<vmem>>, vector<1x16x48xbf16>
    %1 = vector.shape_cast %0 : vector<1x16x48xbf16> to vector<16x48xbf16>
    %c0_2 = arith.constant 0 : index
    %c0_3 = arith.constant 0 : index
    %c0_4 = arith.constant 0 : index
    %2 = vector.load %arg1[%c0_2, %c0_3, %c0_4] : memref<1x48x128xbf16, #tpu.memory_space<vmem>>, vector<1x48x128xbf16>
    %3 = vector.shape_cast %2 : vector<1x48x128xbf16> to vector<48x128xbf16>
    %cst = arith.constant dense<0.000000e+00> : vector<16x128xf32>
    %4 = tpu.matmul %1, %3, %cst {dimension_numbers = #tpu.dot_dimension_numbers<[1], [0], [0], [1], [0, 0, 1, 1], [], []>} : vector<16x48xbf16>, vector<48x128xbf16>, vector<16x128xf32> -> vector<16x128xf32>
    %c0_5 = arith.constant 0 : index
    %c0_6 = arith.constant 0 : index
    %c0_7 = arith.constant 0 : index
    %5 = vector.load %arg3[%c0_5, %c0_6, %c0_7] : memref<1x16x1xf32, #tpu.memory_space<vmem>>, vector<1x16x1xf32>
    %6 = vector.shape_cast %5 : vector<1x16x1xf32> to vector<16x1xf32>
    %7 = vector.broadcast %6 : vector<16x1xf32> to vector<16x128xf32>
    %8 = arith.addf %4, %7 : vector<16x128xf32>
    %cst_8 = arith.constant 0.000000e+00 : f32
    %9 = vector.broadcast %cst_8 : f32 to vector<16x128xf32>
    %10 = arith.cmpf oge, %8, %9 : vector<16x128xf32>
    %cst_9 = arith.constant 2.000000e-01 : f32
    %11 = vector.broadcast %cst_9 : f32 to vector<16x128xf32>
    %12 = arith.mulf %11, %8 : vector<16x128xf32>
    %13 = arith.select %10, %8, %12 : vector<16x128xi1>, vector<16x128xf32>
    %c0_10 = arith.constant 0 : index
    %c0_11 = arith.constant 0 : index
    %14 = vector.load %arg4[%c0_10, %c0_11] : memref<16x128xf32, #tpu.memory_space<vmem>>, vector<16x128xf32>
    tpu.vector_store %arg4[%c0_10, %c0_11], %13 {strides = array<i32>} : memref<16x128xf32, #tpu.memory_space<vmem>>, vector<16x128xf32>,
    return
  }
  func.func @transform_0(%arg0: i32) -> (i32, i32, i32) {
    %c0_i32 = arith.constant 0 : i32
    %c0_i32_0 = arith.constant 0 : i32
    %c0_i32_1 = arith.constant 0 : i32
    return %c0_i32, %c0_i32_0, %arg0 : i32, i32, i32
  }
  func.func @transform_1(%arg0: i32) -> (i32, i32, i32) {
    %c0_i32 = arith.constant 0 : i32
    %c0_i32_0 = arith.constant 0 : i32
    %c0_i32_1 = arith.constant 0 : i32
    %c0_i32_2 = arith.constant 0 : i32
    return %c0_i32, %c0_i32_0, %c0_i32_1 : i32, i32, i32
  }
  func.func @transform_2(%arg0: i32) -> (i32, i32, i32) {
    %c0_i32 = arith.constant 0 : i32
    %c0_i32_0 = arith.constant 0 : i32
    %c0_i32_1 = arith.constant 0 : i32
    %c0_i32_2 = arith.constant 0 : i32
    return %c0_i32, %c0_i32_0, %c0_i32_1 : i32, i32, i32
  }
  func.func @transform_3(%arg0: i32) -> (i32, i32) {
    %c0_i32 = arith.constant 0 : i32
    %c0_i32_0 = arith.constant 0 : i32
    return %c0_i32, %arg0 : i32, i32
  }
}

module attributes {stable_mosaic.version = 11 : i64} {
  func.func @_grouped_mm_kernel(%arg0: i32, %arg1: memref<3x48x128xbf16, #tpu.memory_space<vmem>>, %arg2: memref<3x16x48xbf16, #tpu.memory_space<vmem>>, %arg3: memref<3x16x1xf32, #tpu.memory_space<vmem>>, %arg4: memref<16x128xf32, #tpu.memory_space<vmem>>) attributes {dimension_semantics = [#tpu.dimension_semantics<parallel>], iteration_bounds = array<i64: 3>, scalar_prefetch = 0 : i64, scratch_operands = 0 : i64, tpu.core_type = #tpu.core_type<tc>, window_params = [{transform_indices = @transform_0, window_bounds = array<i64: 3, 48, 128>}, {pipeline_mode = #tpu.pipeline_mode<synchronous>, transform_indices = @transform_1, window_bounds = array<i64: 3, 16, 48>}, {pipeline_mode = #tpu.pipeline_mode<synchronous>, transform_indices = @transform_2, window_bounds = array<i64: 3, 16, 1>}, {transform_indices = @transform_3, window_bounds = array<i64: 16, 128>}]} {
    %c0 = arith.constant 0 : index
    %c0_0 = arith.constant 0 : index
    %c0_1 = arith.constant 0 : index
    %0 = vector.load %arg2[%c0, %c0_0, %c0_1] : memref<3x16x48xbf16, #tpu.memory_space<vmem>>, vector<1x16x48xbf16>
    %1 = vector.shape_cast %0 : vector<1x16x48xbf16> to vector<16x48xbf16>
    %c0_2 = arith.constant 0 : index
    %c0_3 = arith.constant 0 : index
    %c0_4 = arith.constant 0 : index
    %2 = vector.load %arg1[%c0_2, %c0_3, %c0_4] : memref<3x48x128xbf16, #tpu.memory_space<vmem>>, vector<1x48x128xbf16>
    %3 = vector.shape_cast %2 : vector<1x48x128xbf16> to vector<48x128xbf16>
    %cst = arith.constant dense<0.000000e+00> : vector<16x128xf32>
    %4 = tpu.matmul %1, %3, %cst {dimension_numbers = #tpu.dot_dimension_numbers<[1], [0], [0], [1], [0, 0, 1, 1], [], []>} : vector<16x48xbf16>, vector<48x128xbf16>, vector<16x128xf32> -> vector<16x128xf32>
    %c0_5 = arith.constant 0 : index
    %c0_6 = arith.constant 0 : index
    %c0_7 = arith.constant 0 : index
    %5 = vector.load %arg3[%c0_5, %c0_6, %c0_7] : memref<3x16x1xf32, #tpu.memory_space<vmem>>, vector<1x16x1xf32>
    %6 = vector.shape_cast %5 : vector<1x16x1xf32> to vector<16x1xf32>
    %7 = vector.broadcast %6 : vector<16x1xf32> to vector<16x128xf32>
    %8 = arith.addf %4, %7 : vector<16x128xf32>
    %cst_8 = arith.constant 0.000000e+00 : f32
    %9 = vector.broadcast %cst_8 : f32 to vector<16x128xf32>
    %10 = arith.cmpf oge, %8, %9 : vector<16x128xf32>
    %cst_9 = arith.constant 2.000000e-01 : f32
    %11 = vector.broadcast %cst_9 : f32 to vector<16x128xf32>
    %12 = arith.mulf %11, %8 : vector<16x128xf32>
    %13 = arith.select %10, %8, %12 : vector<16x128xi1>, vector<16x128xf32>
    %c1 = arith.constant 1 : index
    %c0_10 = arith.constant 0 : index
    %c0_11 = arith.constant 0 : index
    %14 = vector.load %arg2[%c1, %c0_10, %c0_11] : memref<3x16x48xbf16, #tpu.memory_space<vmem>>, vector<1x16x48xbf16>
    %15 = vector.shape_cast %14 : vector<1x16x48xbf16> to vector<16x48xbf16>
    %c1_12 = arith.constant 1 : index
    %c0_13 = arith.constant 0 : index
    %c0_14 = arith.constant 0 : index
    %16 = vector.load %arg1[%c1_12, %c0_13, %c0_14] : memref<3x48x128xbf16, #tpu.memory_space<vmem>>, vector<1x48x128xbf16>
    %17 = vector.shape_cast %16 : vector<1x48x128xbf16> to vector<48x128xbf16>
    %cst_15 = arith.constant dense<0.000000e+00> : vector<16x128xf32>
    %18 = tpu.matmul %15, %17, %cst_15 {dimension_numbers = #tpu.dot_dimension_numbers<[1], [0], [0], [1], [0, 0, 1, 1], [], []>} : vector<16x48xbf16>, vector<48x128xbf16>, vector<16x128xf32> -> vector<16x128xf32>
    %c1_16 = arith.constant 1 : index
    %c0_17 = arith.constant 0 : index
    %c0_18 = arith.constant 0 : index
    %19 = vector.load %arg3[%c1_16, %c0_17, %c0_18] : memref<3x16x1xf32, #tpu.memory_space<vmem>>, vector<1x16x1xf32>
    %20 = vector.shape_cast %19 : vector<1x16x1xf32> to vector<16x1xf32>
    %21 = vector.broadcast %20 : vector<16x1xf32> to vector<16x128xf32>
    %22 = arith.addf %18, %21 : vector<16x128xf32>
    %cst_19 = arith.constant 0.000000e+00 : f32
    %23 = vector.broadcast %cst_19 : f32 to vector<16x128xf32>
    %24 = arith.cmpf oge, %22, %23 : vector<16x128xf32>
    %cst_20 = arith.constant 2.000000e-01 : f32
    %25 = vector.broadcast %cst_20 : f32 to vector<16x128xf32>
    %26 = arith.mulf %25, %22 : vector<16x128xf32>
    %27 = arith.select %24, %22, %26 : vector<16x128xi1>, vector<16x128xf32>
    %28 = arith.addf %13, %27 : vector<16x128xf32>
    %c2 = arith.constant 2 : index
    %c0_21 = arith.constant 0 : index
    %c0_22 = arith.constant 0 : index
    %29 = vector.load %arg2[%c2, %c0_21, %c0_22] : memref<3x16x48xbf16, #tpu.memory_space<vmem>>, vector<1x16x48xbf16>
    %30 = vector.shape_cast %29 : vector<1x16x48xbf16> to vector<16x48xbf16>
    %c2_23 = arith.constant 2 : index
    %c0_24 = arith.constant 0 : index
    %c0_25 = arith.constant 0 : index
    %31 = vector.load %arg1[%c2_23, %c0_24, %c0_25] : memref<3x48x128xbf16, #tpu.memory_space<vmem>>, vector<1x48x128xbf16>
    %32 = vector.shape_cast %31 : vector<1x48x128xbf16> to vector<48x128xbf16>
    %cst_26 = arith.constant dense<0.000000e+00> : vector<16x128xf32>
    %33 = tpu.matmul %30, %32, %cst_26 {dimension_numbers = #tpu.dot_dimension_numbers<[1], [0], [0], [1], [0, 0, 1, 1], [], []>} : vector<16x48xbf16>, vector<48x128xbf16>, vector<16x128xf32> -> vector<16x128xf32>
    %c2_27 = arith.constant 2 : index
    %c0_28 = arith.constant 0 : index
    %c0_29 = arith.constant 0 : index
    %34 = vector.load %arg3[%c2_27, %c0_28, %c0_29] : memref<3x16x1xf32, #tpu.memory_space<vmem>>, vector<1x16x1xf32>
    %35 = vector.shape_cast %34 : vector<1x16x1xf32> to vector<16x1xf32>
    %36 = vector.broadcast %35 : vector<16x1xf32> to vector<16x128xf32>
    %37 = arith.addf %33, %36 : vector<16x128xf32>
    %cst_30 = arith.constant 0.000000e+00 : f32
    %38 = vector.broadcast %cst_30 : f32 to vector<16x128xf32>
    %39 = arith.cmpf oge, %37, %38 : vector<16x128xf32>
    %cst_31 = arith.constant 2.000000e-01 : f32
    %40 = vector.broadcast %cst_31 : f32 to vector<16x128xf32>
    %41 = arith.mulf %40, %37 : vector<16x128xf32>
    %42 = arith.select %39, %37, %41 : vector<16x128xi1>, vector<16x128xf32>
    %43 = arith.addf %28, %42 : vector<16x128xf32>
    %c0_32 = arith.constant 0 : index
    %c0_33 = arith.constant 0 : index
    %44 = vector.load %arg4[%c0_32, %c0_33] : memref<16x128xf32, #tpu.memory_space<vmem>>, vector<16x128xf32>
    tpu.vector_store %arg4[%c0_32, %c0_33], %43 {strides = array<i32>} : memref<16x128xf32, #tpu.memory_space<vmem>>, vector<16x128xf32>,
    return
  }
  func.func @transform_0(%arg0: i32) -> (i32, i32, i32) {
    %c0_i32 = arith.constant 0 : i32
    %c0_i32_0 = arith.constant 0 : i32
    %c0_i32_1 = arith.constant 0 : i32
    return %c0_i32, %c0_i32_0, %arg0 : i32, i32, i32
  }
  func.func @transform_1(%arg0: i32) -> (i32, i32, i32) {
    %c0_i32 = arith.constant 0 : i32
    %c0_i32_0 = arith.constant 0 : i32
    %c0_i32_1 = arith.constant 0 : i32
    %c0_i32_2 = arith.constant 0 : i32
    return %c0_i32, %c0_i32_0, %c0_i32_1 : i32, i32, i32
  }
  func.func @transform_2(%arg0: i32) -> (i32, i32, i32) {
    %c0_i32 = arith.constant 0 : i32
    %c0_i32_0 = arith.constant 0 : i32
    %c0_i32_1 = arith.constant 0 : i32
    %c0_i32_2 = arith.constant 0 : i32
    return %c0_i32, %c0_i32_0, %c0_i32_1 : i32, i32, i32
  }
  func.func @transform_3(%arg0: i32) -> (i32, i32) {
    %c0_i32 = arith.constant 0 : i32
    %c0_i32_0 = arith.constant 0 : i32
    return %c0_i32, %arg0 : i32, i32
  }
}

</mosaic_0001>

<bundles_post_ra>
// kernel: sbd_forward.28
= control target key start
LH: loop header
LB: loop body
LE: loop exit
PB: predicated region body
PF: predicated region fallthrough
CT: control target
= control target key end

     0   :  { %s513_s12 = smov 0   ;;  %s515_s13 = smov 0   ;;  %s585_s0 = inlined_call_operand.vmem [shape: bf16[3,16,256], index: 0, kind: input, shape index: {}]   ;;  %s586_s1 = inlined_call_operand.vmem [shape: bf16[3,8,16], index: 1, kind: input, shape index: {}]   ;;  %s587_s2 = inlined_call_operand.vmem [shape: f32[3,8,1], index: 2, kind: input, shape index: {}]   ;;  %s588_s3 = inlined_call_operand.vmem [shape: f32[8,256], index: 3, kind: output, shape index: {}]  }
   0x1   :  { %s517_s14 = smov 0  }
   0x2 LB: > { %s404_s15 = sadd.s32 4294967295, %s490_s14   ;;  %s530_s16 = sadd.s32 1, %s490_s14   ;;  %s490_s14 = sphi %s517_s14, %s591_s14   ;;  %s486_s13 = sphi %s515_s13, %s590_s13   ;;  %s482_s12 = sphi %s513_s12, %s589_s12  }
   0x3   : > { %s17_s17 = ssub.s32 %s490_s14, %s530_s16  ;;  %s20_s18 = sadd.s32 1, %s486_s13 }
   0x4   : > { %p18_p0 = scmp.eq.s32.totalorder %s17_s17, 0  ;;  %p27_p1 = scmp.ne.s32.totalorder %s486_s13, %s482_s12 }
   0x5   : > { %p28_p2 = scmp.eq.s32.totalorder %s490_s14, 0  ;;  %p407_p4 = scmp.ge.s32.totalorder %s490_s14, 2 }
   0x6   : > { %s539_s19 = scalar_select %p18_p0, %s486_s13, %s20_s18  }
   0x7   : > { %p29_p3 = por %p28_p2, %p27_p1  ;;  %127 = sbr.rel (%p407_p4) target bundleno = 23 (0x17), region = 24 }
   0xc   : > { %130 = sbr.rel (!%p29_p3) target bundleno = 23 (0x17), region = 28  ;;  %s132_s20 = sand.u32 (%p29_p3), 1, %s486_s13  }
   0xd   : > { %s408_s21 = sshll.u32 (%p29_p3), %s490_s14, 2  ;;  %s439_s22 = smul.u32 (%p29_p3), 24, %s132_s20 }
   0xe   : > { %s136_s25 = scalar_lea.vmem (%p29_p3), %s585_s0, %s408_s21 }
   0xf   : > { %v153_v0 = vld [vmem:[%s136_s25] sm:$0xf] (%p29_p3)  ;;  %v155_v1 = vld [vmem:[%s136_s25 + $0x8] sm:$0xf] (%p29_p3)  ;;  %v157_v2 = vld [vmem:[%s136_s25 + $0x10] sm:$0xf] (%p29_p3) }
  0x10   : > { %s134_s26 = scalar_lea.vmem (%p29_p3), [#allocation2], %s439_s22  ;;  %v159_v3 = vld [vmem:[%s136_s25 + $0x18] sm:$0xf] (%p29_p3)  ;;  %v161_v4 = vld [vmem:[%s136_s25 + $0x20] sm:$0xf] (%p29_p3) }
  0x11   : > { %154 = vst [vmem:[%s134_s26] sm:$0xf] %v153_v0  ;;  %v163_v5 = vld [vmem:[%s136_s25 + $0x28] sm:$0xf] }
  0x12   : > { %156 = vst [vmem:[%s134_s26 + $0x4] sm:$0xf] %v155_v1 }
  0x13   : > { %158 = vst [vmem:[%s134_s26 + $0x8] sm:$0xf] %v157_v2 }
  0x14   : > { %160 = vst [vmem:[%s134_s26 + $0xc] sm:$0xf] %v159_v3 }
  0x15   : > { %162 = vst [vmem:[%s134_s26 + $0x10] sm:$0xf] %v161_v4 }
  0x16   : > { %164 = vst [vmem:[%s134_s26 + $0x14] sm:$0xf] %v163_v5 }
  0x17 PF: > { %p409_p5 = scmp.ge.s32.totalorder %s490_s14, 1  ;;  %p199_p6 = scmp.lt.s32.totalorder %s490_s14, 3 }
  0x19   : > { %p200_p7 = pnand %p409_p5, %p199_p6 }
  0x1a   : > { %s206_s27 = sand.u32 (!%p200_p7), 1, %s482_s12   ;;  %p228_p8 = scmp.lt.s32.totalorder (!%p200_p7), %s404_s15, 1 }
  0x1b   : > { %203 = sbr.rel (%p200_p7) target bundleno = 179 (0xb3), region = 69 }
  0x1c   : > { %s440_s30 = smul.u32 (!%p200_p7), 24, %s206_s27 }
  0x1e   : > { %s208_s6 = scalar_lea.vmem (!%p200_p7), [#allocation2], %s440_s30 }
  0x20   : > { %v236_v6 = vld [vmem:[%s587_s2] sm:$0xff]  ;;  %v492_v7 = vmov 0   ;;  %v428_v8 = vld [vmem:[%s587_s2 + $0x10] sm:$0xff]  ;;  %vm248_vm0 = vcmask 130048   ;;  %v425_v14 = vld [vmem:[%s586_s1 + $0x8] sm:$0xf] }
  0x21   : > { %466 = vset.pattern.permute.xlu0 %v492_v7  ;;  %467 = vset.pattern.permute.xlu1 %v492_v7  ;;  %v436_v9 = vld [vmem:[%s208_s6] sm:$0xff]  ;;  %v437_v10 = vld [vmem:[%s208_s6 + $0x8] sm:$0xff]  ;;  %v438_v11 = vld [vmem:[%s208_s6 + $0x10] sm:$0xff]  ;;  %s593_s15 = smov (!%p228_p8, %s404_s15), 1 }
  0x22   : > { %239 = vperm.xlu0 %466, %v236_v6   ;;  %315 = vperm.xlu1 %467, %v428_v8   ;;  %v233_v12 = vld [vmem:[%s586_s1] sm:$0xf]  ;;  %v416_v13 = vld [vmem:[%s586_s1 + $0x4] sm:$0xf]  ;;  %v419_v15 = vld [vmem:[%s587_s2 + $0x8] sm:$0xff]  ;;  %s410_s20 = sshll.u32 %s593_s15, 3 }
  0x23   : > { %259 = vmatpush.bf16.msra.mxu0 %v436_v9  ;;  %296 = vmatpush.bf16.msra.mxu1 %v437_v10  ;;  %s231_s23 = scalar_lea.vmem %s588_s3, %s410_s20 }
  0x24   : > { %334 = vmatpush.bf16.msra.mxu2 %v438_v11 }
  0x26   : > { %415 = vmatmul.msk.bf16.vlgmr.msra.gmra.mxu0 %vm248_vm0, %v233_v12  ;;  %424 = vmatmul.msk.bf16.vlgmr.msra.gmra.mxu1 %vm248_vm0, %v416_v13 }
  0x27   : > { %433 = vmatmul.msk.bf16.vlgmr.msra.gmra.mxu2 %vm248_vm0, %v425_v14 }
  0x2a   : > { %277 = vperm.xlu0 %466, %v419_v15  }
  0x94   : > { %v240_v16 = vpop.permute.xlu0 %239  ;;  %v316_v24 = vpop.permute.xlu1 %315 }
  0x9c   : > { %v278_v17 = vpop.permute.xlu0 %277 }
  0xa3   : > { %v261_v18 = vpop.f32.mrf.mxu0  ;;  %v298_v19 = vpop.f32.mrf.mxu1 }
  0xa4   : > { %v262_v20 = vadd.f32 %v261_v18, %v240_v16  ;;  %v299_v21 = vadd.f32 %v298_v19, %v278_v17 }
  0xa6   : > { %v266_v22 = vmul.f32 0.2, %v262_v20  ;;  %v303_v23 = vmul.f32 0.2, %v299_v21  ;;  %vm265_vm1 = vcmp.ge.f32.partialorder %v262_v20, 0.0  ;;  %vm302_vm2 = vcmp.ge.f32.partialorder %v299_v21, 0.0 }
  0xa8   : > { %v267_v26 = vsel %vm265_vm1, %v262_v20, %v266_v22  ;;  %v304_v27 = vsel %vm302_vm2, %v299_v21, %v303_v23 }
  0xa9   : > { %v305_v32 = vadd.f32 %v304_v27, %v267_v26 }
  0xaa   : > { %v336_v25 = vpop.f32.mrf.mxu2 }
  0xab   : > { %v337_v28 = vadd.f32 %v336_v25, %v316_v24  ;;  %v263_v29 = vpop.f32.mrf.mxu0  ;;  %v300_v30 = vpop.f32.mrf.mxu1 }
  0xad   : > { %vm340_vm3 = vcmp.ge.f32.partialorder %v337_v28, 0.0  ;;  %v341_v31 = vmul.f32 0.2, %v337_v28 }
  0xaf   : > { %v342_v33 = vsel %vm340_vm3, %v337_v28, %v341_v31 }
  0xb0   : > { %v343_v34 = vadd.f32 %v342_v33, %v305_v32 }
  0xb2   : > { %344 = vst [vmem:[%s231_s23] sm:$0xff] %v343_v34  ;;  %v338_v35 = vpop.f32.mrf.mxu2 }
  0xb3 PF: > { %p10_p9 = scmp.ge.s32.totalorder %s530_s16, 4   ;;  %s589_s12 = smov %s486_s13 }
  0xb4   : > { %s590_s13 = smov %s539_s19  ;;  %s591_s14 = smov %s530_s16 }
  0xb5   :  { %12 = sbr.rel (!%p10_p9) target bundleno = 2 (0x2), region = 114 }

// kernel: sbd_forward.29
= control target key start
LH: loop header
LB: loop body
LE: loop exit
PB: predicated region body
PF: predicated region fallthrough
CT: control target
= control target key end

     0   :  { %s421_s12 = smov 0   ;;  %s423_s13 = smov 0   ;;  %s481_s0 = inlined_call_operand.vmem [shape: bf16[1,32,384], index: 0, kind: input, shape index: {}]   ;;  %s482_s1 = inlined_call_operand.vmem [shape: bf16[1,8,32], index: 1, kind: input, shape index: {}]   ;;  %s483_s2 = inlined_call_operand.vmem [shape: f32[1,8,1], index: 2, kind: input, shape index: {}]   ;;  %s484_s3 = inlined_call_operand.vmem [shape: f32[8,384], index: 3, kind: output, shape index: {}]  }
   0x1   :  { %s425_s14 = smov 0  }
   0x2 LB: > { %s328_s15 = sadd.s32 4294967295, %s398_s14   ;;  %s438_s16 = sadd.s32 1, %s398_s14   ;;  %s398_s14 = sphi %s425_s14, %s487_s14   ;;  %s394_s13 = sphi %s423_s13, %s486_s13   ;;  %s390_s12 = sphi %s421_s12, %s485_s12  }
   0x3   : > { %s17_s17 = ssub.s32 %s398_s14, %s438_s16  ;;  %s20_s18 = sadd.s32 1, %s394_s13 }
   0x4   : > { %p18_p0 = scmp.eq.s32.totalorder %s17_s17, 0  ;;  %p27_p1 = scmp.ne.s32.totalorder %s394_s13, %s390_s12 }
   0x5   : > { %p28_p2 = scmp.eq.s32.totalorder %s398_s14, 0  ;;  %p331_p4 = scmp.ge.s32.totalorder %s398_s14, 3 }
   0x6   : > { %s447_s19 = scalar_select %p18_p0, %s394_s13, %s20_s18  }
   0x7   : > { %p29_p3 = por %p28_p2, %p27_p1  ;;  %127 = sbr.rel (%p331_p4) target bundleno = 20 (0x14), region = 24 }
   0xc   : > { %130 = sbr.rel (!%p29_p3) target bundleno = 20 (0x14), region = 28  ;;  %s132_s20 = sand.u32 (%p29_p3), 1, %s394_s13  }
   0xd   : > { %s333_s21 = sshll.u32 (%p29_p3), %s398_s14, 2  ;;  %s332_s22 = sshll.u32 (%p29_p3), %s132_s20, 4 }
   0xe   : > { %s136_s25 = scalar_lea.vmem (%p29_p3), %s481_s0, %s333_s21  ;;  %s134_s26 = scalar_lea.vmem (%p29_p3), [#allocation2], %s332_s22 }
   0xf   : > { %v153_v0 = vld [vmem:[%s136_s25] sm:$0xf] (%p29_p3)  ;;  %v155_v1 = vld [vmem:[%s136_s25 + $0xc] sm:$0xf] (%p29_p3)  ;;  %v157_v2 = vld [vmem:[%s136_s25 + $0x18] sm:$0xf] (%p29_p3) }
  0x10   : > { %154 = vst [vmem:[%s134_s26] sm:$0xf] (%p29_p3), %v153_v0  ;;  %v159_v3 = vld [vmem:[%s136_s25 + $0x24] sm:$0xf] (%p29_p3) }
  0x11   : > { %156 = vst [vmem:[%s134_s26 + $0x4] sm:$0xf] %v155_v1 }
  0x12   : > { %158 = vst [vmem:[%s134_s26 + $0x8] sm:$0xf] %v157_v2 }
  0x13   : > { %160 = vst [vmem:[%s134_s26 + $0xc] sm:$0xf] %v159_v3 }
  0x14 PF: > { %p334_p5 = scmp.ge.s32.totalorder %s398_s14, 1  ;;  %p191_p6 = scmp.lt.s32.totalorder %s398_s14, 4 }
  0x16   : > { %p192_p7 = pnand %p334_p5, %p191_p6 }
  0x17   : > { %s198_s27 = sand.u32 (!%p192_p7), 1, %s390_s12   ;;  %p220_p8 = scmp.lt.s32.totalorder (!%p192_p7), %s328_s15, 2 }
  0x18   : > { %195 = sbr.rel (%p192_p7) target bundleno = 171 (0xab), region = 69  ;;  %s335_s30 = sshll.u32 (!%p192_p7), %s198_s27, 4 }
  0x19   : > { %s200_s4 = scalar_lea.vmem (!%p192_p7), [#allocation2], %s335_s30 }
  0x1d   : > { %v230_v4 = vld [vmem:[%s483_s2] sm:$0xff]  ;;  %v400_v5 = vmov 0   ;;  %v349_v6 = vld [vmem:[%s200_s4 + $0x8] sm:$0xff]  ;;  %vm248_vm0 = vcmask 261120   ;;  %s489_s15 = smov (!%p220_p8, %s328_s15), 2 }
  0x1e   : > { %375 = vset.pattern.permute.xlu0 %v400_v5  ;;  %258 = vmatpush.bf16.msra.mxu0 %v349_v6  ;;  %v348_v7 = vld [vmem:[%s200_s4] sm:$0xff]  ;;  %s336_s7 = sshll.u32 %s489_s15, 3 }
  0x1f   : > { %233 = vperm.xlu0 %375, %v230_v4   ;;  %v225_v8 = vld [vmem:[%s482_s1] sm:$0xf]  ;;  %s223_s10 = scalar_lea.vmem %s484_s3, %s336_s7 }
  0x22   : > { %259 = vmatpush.bf16.msra.mxu0 %v348_v7 }
  0x25   : > { %345 = vmatmul.msk.bf16.vlgmr.msra.gmra.mxu0 %vm248_vm0, %v225_v8 }
  0x91   : > { %v234_v9 = vpop.permute.xlu0 %233 }
  0xa2   : > { %v261_v10 = vpop.f32.mrf.mxu0 }
  0xa3   : > { %v262_v11 = vadd.f32 %v261_v10, %v234_v9 }
  0xa5   : > { %vm265_vm1 = vcmp.ge.f32.partialorder %v262_v11, 0.0  ;;  %v266_v12 = vmul.f32 0.2, %v262_v11 }
  0xa7   : > { %v267_v13 = vsel %vm265_vm1, %v262_v11, %v266_v12 }
  0xa8   : > { %268 = vst [vmem:[%s223_s10] sm:$0xff] %v267_v13 }
  0xaa   : > { %v263_v14 = vpop.f32.mrf.mxu0 }
  0xab PF: > { %p10_p9 = scmp.ge.s32.totalorder %s438_s16, 5   ;;  %s485_s12 = smov %s394_s13 }
  0xac   : > { %s486_s13 = smov %s447_s19  ;;  %s487_s14 = smov %s438_s16 }
  0xad   :  { %12 = sbr.rel (!%p10_p9) target bundleno = 2 (0x2), region = 108 }

// kernel: sbd_forward.30
= control target key start
LH: loop header
LB: loop body
LE: loop exit
PB: predicated region body
PF: predicated region fallthrough
CT: control target
= control target key end

     0   :  { %s692_s12 = smov 0   ;;  %s694_s13 = smov 0   ;;  %s783_s0 = inlined_call_operand.vmem [shape: bf16[3,32,384], index: 0, kind: input, shape index: {}]   ;;  %s784_s1 = inlined_call_operand.vmem [shape: bf16[3,16,32], index: 1, kind: input, shape index: {}]   ;;  %s785_s2 = inlined_call_operand.vmem [shape: f32[3,16,1], index: 2, kind: input, shape index: {}]   ;;  %s786_s3 = inlined_call_operand.vmem [shape: f32[16,384], index: 3, kind: output, shape index: {}]  }
   0x1   :  { %s696_s14 = smov 0  }
   0x2 LB: > { %s542_s15 = sadd.s32 4294967295, %s669_s14   ;;  %s709_s16 = sadd.s32 1, %s669_s14   ;;  %s669_s14 = sphi %s696_s14, %s790_s14   ;;  %s665_s13 = sphi %s694_s13, %s789_s13   ;;  %s661_s12 = sphi %s692_s12, %s788_s12  }
   0x3   : > { %s17_s17 = ssub.s32 %s669_s14, %s709_s16  ;;  %s20_s18 = sadd.s32 1, %s665_s13 }
   0x4   : > { %p18_p0 = scmp.eq.s32.totalorder %s17_s17, 0  ;;  %p27_p1 = scmp.ne.s32.totalorder %s665_s13, %s661_s12 }
   0x5   : > { %p28_p2 = scmp.eq.s32.totalorder %s669_s14, 0  ;;  %p99_p3 = scmp.eq.s32.totalorder %s542_s15, 2 }
   0x6   : > { %s720_s19 = scalar_select %p18_p0, %s665_s13, %s20_s18  }
   0x7   : > { %p29_p4 = por %p28_p2, %p27_p1  ;;  %p722_p5 = por %p99_p3, %p27_p1 }
   0x8   : > { %p545_p6 = scmp.ge.s32.totalorder %s669_s14, 3 }
   0xa   : > { %127 = sbr.rel (%p545_p6) target bundleno = 32 (0x20), region = 24 }
   0xf   : > { %130 = sbr.rel (!%p29_p4) target bundleno = 32 (0x20), region = 28  ;;  %s132_s21 = sand.u32 (%p29_p4), 1, %s665_s13  }
  0x10   : > { %s546_s22 = sshll.u32 (%p29_p4), %s669_s14, 2  ;;  %s617_s23 = smul.u32 (%p29_p4), 48, %s132_s21 }
  0x11   : > { %s136_s26 = scalar_lea.vmem (%p29_p4), %s783_s0, %s546_s22 }
  0x12   : > { %v153_v0 = vld [vmem:[%s136_s26] sm:$0xf] (%p29_p4)  ;;  %v155_v1 = vld [vmem:[%s136_s26 + $0xc] sm:$0xf] (%p29_p4)  ;;  %v157_v2 = vld [vmem:[%s136_s26 + $0x18] sm:$0xf] (%p29_p4) }
  0x13   : > { %s134_s27 = scalar_lea.vmem (%p29_p4), [#allocation2], %s617_s23  ;;  %v159_v3 = vld [vmem:[%s136_s26 + $0x24] sm:$0xf] (%p29_p4)  ;;  %v161_v4 = vld [vmem:[%s136_s26 + $0x30] sm:$0xf] (%p29_p4) }
  0x14   : > { %154 = vst [vmem:[%s134_s27] sm:$0xf] %v153_v0  ;;  %v163_v5 = vld [vmem:[%s136_s26 + $0x3c] sm:$0xf]  ;;  %v165_v6 = vld [vmem:[%s136_s26 + $0x48] sm:$0xf] }
  0x15   : > { %156 = vst [vmem:[%s134_s27 + $0x4] sm:$0xf] %v155_v1  ;;  %v167_v7 = vld [vmem:[%s136_s26 + $0x54] sm:$0xf]  ;;  %v169_v8 = vld [vmem:[%s136_s26 + $0x60] sm:$0xf] }
  0x16   : > { %158 = vst [vmem:[%s134_s27 + $0x8] sm:$0xf] %v157_v2  ;;  %v171_v9 = vld [vmem:[%s136_s26 + $0x6c] sm:$0xf]  ;;  %v173_v10 = vld [vmem:[%s136_s26 + $0x78] sm:$0xf] }
  0x17   : > { %160 = vst [vmem:[%s134_s27 + $0xc] sm:$0xf] %v159_v3  ;;  %v175_v11 = vld [vmem:[%s136_s26 + $0x84] sm:$0xf] }
  0x18   : > { %162 = vst [vmem:[%s134_s27 + $0x10] sm:$0xf] %v161_v4 }
  0x19   : > { %164 = vst [vmem:[%s134_s27 + $0x14] sm:$0xf] %v163_v5 }
  0x1a   : > { %166 = vst [vmem:[%s134_s27 + $0x18] sm:$0xf] %v165_v6 }
  0x1b   : > { %168 = vst [vmem:[%s134_s27 + $0x1c] sm:$0xf] %v167_v7 }
  0x1c   : > { %170 = vst [vmem:[%s134_s27 + $0x20] sm:$0xf] %v169_v8 }
  0x1d   : > { %172 = vst [vmem:[%s134_s27 + $0x24] sm:$0xf] %v171_v9 }
  0x1e   : > { %174 = vst [vmem:[%s134_s27 + $0x28] sm:$0xf] %v173_v10 }
  0x1f   : > { %176 = vst [vmem:[%s134_s27 + $0x2c] sm:$0xf] %v175_v11 }
  0x20 PF: > { %p547_p7 = scmp.ge.s32.totalorder %s669_s14, 1  ;;  %p223_p8 = scmp.lt.s32.totalorder %s669_s14, 4 }
  0x22   : > { %p224_p9 = pnand %p547_p7, %p223_p8 }
  0x23   : > { %s230_s28 = sand.u32 (!%p224_p9), 1, %s661_s12  }
  0x24   : > { %227 = sbr.rel (%p224_p9) target bundleno = 209 (0xd1), region = 69  ;;  %s548_s30 = sshll.u32 (!%p224_p9), %s230_s28, 4 }
  0x25   : > { %s618_s29 = smul.u32 (!%p224_p9), 48, %s230_s28  ;;  %s251_s4 = scalar_lea.vmem (!%p224_p9), [#allocation3], %s548_s30 }
  0x27   : > { %s232_s9 = scalar_lea.vmem (!%p224_p9), [#allocation2], %s618_s29 }
  0x29   : > { %v671_v12 = vmov 0   ;;  %v568_v13 = vld [vmem:[%s785_s2 + $0x10] sm:$0xff]  ;;  %v259_v14 = vld [vmem:[%s785_s2] sm:$0xff]  ;;  %v610_v16 = vld [vmem:[%s232_s9 + $0x8] sm:$0xff]  ;;  %vm288_vm0 = vcmask 261120   ;;  %s605_s12 = sshll.u32 (%p722_p5), %s542_s15, 3 }
  0x2a   : > { %645 = vset.pattern.permute.xlu1 %v671_v12  ;;  %644 = vset.pattern.permute.xlu0 %v671_v12  ;;  %v589_v15 = vld [vmem:[%s785_s2 + $0x20] sm:$0xff]  ;;  %v613_v17 = vld [vmem:[%s232_s9 + $0x18] sm:$0xff]  ;;  %v616_v18 = vld [vmem:[%s232_s9 + $0x28] sm:$0xff]  ;;  %s448_s6 = scalar_lea.vmem (%p722_p5), %s786_s3, %s605_s12 }
  0x2b   : > { %325 = vperm.xlu1 %645, %v568_v13   ;;  %263 = vperm.xlu0 %644, %v259_v14   ;;  %v609_v19 = vld [vmem:[%s232_s9] sm:$0xff]  ;;  %v612_v20 = vld [vmem:[%s232_s9 + $0x10] sm:$0xff]  ;;  %v569_v23 = vld [vmem:[%s785_s2 + $0x18] sm:$0xff] }
  0x2c   : > { %646 = vset.pattern.permute.xlu2 %v671_v12  ;;  %298 = vmatpush.bf16.msra.mxu0 %v610_v16  ;;  %v615_v21 = vld [vmem:[%s232_s9 + $0x20] sm:$0xff]  ;;  %v611_v24 = vld [vmem:[%s784_s1 + $0x8] sm:$0xff] }
  0x2d   : > { %388 = vperm.xlu2 %646, %v589_v15   ;;  %359 = vmatpush.bf16.msra.mxu1 %v613_v17  ;;  %v608_v22 = vld [vmem:[%s784_s1] sm:$0xff]  ;;  %v260_v25 = vld [vmem:[%s785_s2 + $0x8] sm:$0xff]  ;;  %v614_v27 = vld [vmem:[%s784_s1 + $0x10] sm:$0xff] }
  0x2e   : > { %422 = vmatpush.bf16.msra.mxu2 %v616_v18  ;;  %v590_v26 = vld [vmem:[%s785_s2 + $0x28] sm:$0xff] }
  0x30   : > { %299 = vmatpush.bf16.msra.mxu0 %v609_v19 }
  0x31   : > { %360 = vmatpush.bf16.msra.mxu1 %v612_v20 }
  0x32   : > { %423 = vmatpush.bf16.msra.mxu2 %v615_v21 }
  0x33   : > { %330 = vperm.xlu1 %645, %v569_v23   ;;  %268 = vperm.xlu0 %644, %v260_v25  }
  0x34   : > { %561 = vmatmul.msk.bf16.vlgmr.msra.gmra.mxu0 %vm288_vm0, %v608_v22  ;;  %582 = vmatmul.msk.bf16.vlgmr.msra.gmra.mxu1 %vm288_vm0, %v611_v24 }
  0x35   : > { %393 = vperm.xlu2 %646, %v590_v26   ;;  %603 = vmatmul.msk.bf16.vlgmr.msra.gmra.mxu2 %vm288_vm0, %v614_v27 }
  0x87   : > { %v389_v36 = vpop.permute.xlu2 %388 }
  0x8f   : > { %v394_v53 = vpop.permute.xlu2 %393 }
  0x9d   : > { %v326_v28 = vpop.permute.xlu1 %325  ;;  %v264_v29 = vpop.permute.xlu0 %263 }
  0xa5   : > { %v331_v37 = vpop.permute.xlu1 %330  ;;  %v269_v38 = vpop.permute.xlu0 %268 }
  0xb1   : > { %v301_v30 = vpop.f32.mrf.mxu0  ;;  %v362_v31 = vpop.f32.mrf.mxu1 }
  0xb2   : > { %v302_v32 = vadd.f32 %v301_v30, %v264_v29  ;;  %v363_v33 = vadd.f32 %v362_v31, %v326_v28 }
  0xb4   : > { %v308_v34 = vmul.f32 0.2, %v302_v32  ;;  %v369_v35 = vmul.f32 0.2, %v363_v33  ;;  %vm306_vm1 = vcmp.ge.f32.partialorder %v302_v32, 0.0  ;;  %vm367_vm2 = vcmp.ge.f32.partialorder %v363_v33, 0.0 }
  0xb6   : > { %v310_v40 = vsel %vm306_vm1, %v302_v32, %v308_v34  ;;  %v371_v41 = vsel %vm367_vm2, %v363_v33, %v369_v35 }
  0xb7   : > { %v373_v48 = vadd.f32 %v371_v41, %v310_v40 }
  0xb8   : > { %v425_v39 = vpop.f32.mrf.mxu2 }
  0xb9   : > { %v426_v42 = vadd.f32 %v425_v39, %v389_v36  ;;  %v303_v43 = vpop.f32.mrf.mxu0  ;;  %v364_v44 = vpop.f32.mrf.mxu1 }
  0xba   : > { %v304_v45 = vadd.f32 %v303_v43, %v269_v38  ;;  %v365_v46 = vadd.f32 %v364_v44, %v331_v37 }
  0xbb   : > { %vm430_vm3 = vcmp.ge.f32.partialorder %v426_v42, 0.0  ;;  %v432_v47 = vmul.f32 0.2, %v426_v42 }
  0xbc   : > { %v309_v50 = vmul.f32 0.2, %v304_v45  ;;  %v370_v51 = vmul.f32 0.2, %v365_v46  ;;  %vm307_vm4 = vcmp.ge.f32.partialorder %v304_v45, 0.0  ;;  %vm368_vm5 = vcmp.ge.f32.partialorder %v365_v46, 0.0 }
  0xbd   : > { %v434_v49 = vsel %vm430_vm3, %v426_v42, %v432_v47 }
  0xbe   : > { %v436_v52 = vadd.f32 %v434_v49, %v373_v48  ;;  %v311_v55 = vsel %vm307_vm4, %v304_v45, %v309_v50  ;;  %v372_v56 = vsel %vm368_vm5, %v365_v46, %v370_v51 }
  0xbf   : > { %v374_v59 = vadd.f32 %v372_v56, %v311_v55 }
  0xc0   : > { %438 = vst [vmem:[%s251_s4] sm:$0xff] %v436_v52  ;;  %v427_v54 = vpop.f32.mrf.mxu2 }
  0xc1   : > { %v428_v57 = vadd.f32 %v427_v54, %v394_v53 }
  0xc3   : > { %vm431_vm6 = vcmp.ge.f32.partialorder %v428_v57, 0.0  ;;  %v433_v58 = vmul.f32 0.2, %v428_v57 }
  0xc4   : > { %446 = sbr.rel (!%p722_p5) target bundleno = 209 (0xd1), region = 77 }
  0xc5   : > { %v435_v60 = vsel %vm431_vm6, %v428_v57, %v433_v58 }
  0xc6   : > { %v437_v61 = vadd.f32 %v435_v60, %v374_v59 }
  0xc7   : > { %v479_v62 = vld [vmem:[%s251_s4] sm:$0xff] (%p722_p5) }
  0xc8   : > { %439 = vst [vmem:[%s251_s4 + $0x8] sm:$0xff] %v437_v61 }
  0xc9   : > { %480 = vst [vmem:[%s448_s6] sm:$0xff] %v479_v62 }
  0xcf   : > { %v481_v63 = vld [vmem:[%s251_s4 + $0x8] sm:$0xff] }
  0xd0   : > { %482 = vst [vmem:[%s448_s6 + $0x18] sm:$0xff] %v481_v63 }
  0xd1 PF: > { %p10_p10 = scmp.ge.s32.totalorder %s709_s16, 5   ;;  %s788_s12 = smov %s665_s13 }
  0xd2   : > { %s789_s13 = smov %s720_s19  ;;  %s790_s14 = smov %s709_s16 }
  0xd3   :  { %12 = sbr.rel (!%p10_p10) target bundleno = 2 (0x2), region = 152 }

// kernel: sbd_forward.31
= control target key start
LH: loop header
LB: loop body
LE: loop exit
PB: predicated region body
PF: predicated region fallthrough
CT: control target
= control target key end

     0   :  { %s505_s12 = smov 0   ;;  %s507_s13 = smov 0   ;;  %s574_s0 = inlined_call_operand.vmem [shape: bf16[1,48,256], index: 0, kind: input, shape index: {}]   ;;  %s575_s1 = inlined_call_operand.vmem [shape: bf16[1,16,48], index: 1, kind: input, shape index: {}]   ;;  %s576_s2 = inlined_call_operand.vmem [shape: f32[1,16,1], index: 2, kind: input, shape index: {}]   ;;  %s577_s3 = inlined_call_operand.vmem [shape: f32[16,256], index: 3, kind: output, shape index: {}]  }
   0x1   :  { %s509_s14 = smov 0  }
   0x2 LB: > { %s400_s15 = sadd.s32 4294967295, %s482_s14   ;;  %s522_s16 = sadd.s32 1, %s482_s14   ;;  %s482_s14 = sphi %s509_s14, %s581_s14   ;;  %s478_s13 = sphi %s507_s13, %s580_s13   ;;  %s474_s12 = sphi %s505_s12, %s579_s12  }
   0x3   : > { %s17_s17 = ssub.s32 %s482_s14, %s522_s16  ;;  %s20_s18 = sadd.s32 1, %s478_s13 }
   0x4   : > { %p18_p0 = scmp.eq.s32.totalorder %s17_s17, 0  ;;  %p27_p1 = scmp.ne.s32.totalorder %s478_s13, %s474_s12 }
   0x5   : > { %p28_p2 = scmp.eq.s32.totalorder %s482_s14, 0  ;;  %p99_p3 = scmp.eq.s32.totalorder %s400_s15, 1 }
   0x6   : > { %s533_s19 = scalar_select %p18_p0, %s478_s13, %s20_s18  }
   0x7   : > { %p29_p4 = por %p28_p2, %p27_p1  ;;  %p535_p5 = por %p99_p3, %p27_p1 }
   0x8   : > { %p403_p6 = scmp.ge.s32.totalorder %s482_s14, 2 }
   0xa   : > { %127 = sbr.rel (%p403_p6) target bundleno = 26 (0x1a), region = 24 }
   0xf   : > { %130 = sbr.rel (!%p29_p4) target bundleno = 26 (0x1a), region = 28  ;;  %s132_s21 = sand.u32 (%p29_p4), 1, %s478_s13  }
  0x10   : > { %s404_s22 = sshll.u32 (%p29_p4), %s482_s14, 2  ;;  %s432_s23 = smul.u32 (%p29_p4), 24, %s132_s21 }
  0x11   : > { %s136_s26 = scalar_lea.vmem (%p29_p4), %s574_s0, %s404_s22 }
  0x12   : > { %v153_v0 = vld [vmem:[%s136_s26] sm:$0xf] (%p29_p4)  ;;  %v155_v1 = vld [vmem:[%s136_s26 + $0x8] sm:$0xf] (%p29_p4)  ;;  %v157_v2 = vld [vmem:[%s136_s26 + $0x10] sm:$0xf] (%p29_p4) }
  0x13   : > { %s134_s27 = scalar_lea.vmem (%p29_p4), [#allocation2], %s432_s23  ;;  %v159_v3 = vld [vmem:[%s136_s26 + $0x18] sm:$0xf] (%p29_p4)  ;;  %v161_v4 = vld [vmem:[%s136_s26 + $0x20] sm:$0xf] (%p29_p4) }
  0x14   : > { %154 = vst [vmem:[%s134_s27] sm:$0xf] %v153_v0  ;;  %v163_v5 = vld [vmem:[%s136_s26 + $0x28] sm:$0xf] }
  0x15   : > { %156 = vst [vmem:[%s134_s27 + $0x4] sm:$0xf] %v155_v1 }
  0x16   : > { %158 = vst [vmem:[%s134_s27 + $0x8] sm:$0xf] %v157_v2 }
  0x17   : > { %160 = vst [vmem:[%s134_s27 + $0xc] sm:$0xf] %v159_v3 }
  0x18   : > { %162 = vst [vmem:[%s134_s27 + $0x10] sm:$0xf] %v161_v4 }
  0x19   : > { %164 = vst [vmem:[%s134_s27 + $0x14] sm:$0xf] %v163_v5 }
  0x1a PF: > { %p405_p7 = scmp.ge.s32.totalorder %s482_s14, 1  ;;  %p199_p8 = scmp.lt.s32.totalorder %s482_s14, 3 }
  0x1c   : > { %p200_p9 = pnand %p405_p7, %p199_p8 }
  0x1d   : > { %s206_s28 = sand.u32 (!%p200_p9), 1, %s474_s12  }
  0x1e   : > { %203 = sbr.rel (%p200_p9) target bundleno = 195 (0xc3), region = 69  ;;  %s406_s10 = sshll.u32 (!%p200_p9), %s206_s28, 4 }
  0x1f   : > { %s433_s4 = smul.u32 (!%p200_p9), 24, %s206_s28  ;;  %s227_s11 = scalar_lea.vmem (!%p200_p9), [#allocation3], %s406_s10 }
  0x21   : > { %s208_s5 = scalar_lea.vmem (!%p200_p9), [#allocation2], %s433_s4 }
  0x23   : > { %v237_v6 = vld [vmem:[%s576_s2] sm:$0xff]  ;;  %v484_v7 = vmov 0   ;;  %v431_v8 = vld [vmem:[%s208_s5 + $0x10] sm:$0xff]  ;;  %vm272_vm0 = vcmask 392192   ;;  %s425_s12 = sshll.u32 (%p535_p5), %s400_s15, 3 }
  0x24   : > { %459 = vset.pattern.permute.xlu0 %v484_v7  ;;  %281 = vmatpush.bf16.msra.mxu0 %v431_v8  ;;  %v430_v9 = vld [vmem:[%s208_s5 + $0x8] sm:$0xff]  ;;  %v429_v11 = vld [vmem:[%s208_s5] sm:$0xff]  ;;  %s306_s21 = scalar_lea.vmem (%p535_p5), %s577_s3, %s425_s12 }
  0x25   : > { %241 = vperm.xlu0 %459, %v237_v6   ;;  %v238_v10 = vld [vmem:[%s576_s2 + $0x8] sm:$0xff]  ;;  %v428_v12 = vld [vmem:[%s575_s1] sm:$0xff] }
  0x28   : > { %282 = vmatpush.bf16.msra.mxu0 %v430_v9 }
  0x2c   : > { %283 = vmatpush.bf16.msra.mxu0 %v429_v11 }
  0x2d   : > { %246 = vperm.xlu0 %459, %v238_v10  }
  0x2f   : > { %423 = vmatmul.msk.bf16.vlgmr.msra.gmra.mxu0 %vm272_vm0, %v428_v12 }
  0x97   : > { %v242_v13 = vpop.permute.xlu0 %241 }
  0x9f   : > { %v247_v18 = vpop.permute.xlu0 %246 }
  0xac   : > { %v285_v14 = vpop.f32.mrf.mxu0 }
  0xad   : > { %v286_v15 = vadd.f32 %v285_v14, %v242_v13 }
  0xaf   : > { %vm290_vm1 = vcmp.ge.f32.partialorder %v286_v15, 0.0  ;;  %v292_v16 = vmul.f32 0.2, %v286_v15 }
  0xb1   : > { %v294_v17 = vsel %vm290_vm1, %v286_v15, %v292_v16 }
  0xb2   : > { %296 = vst [vmem:[%s227_s11] sm:$0xff] %v294_v17 }
  0xb4   : > { %v287_v19 = vpop.f32.mrf.mxu0 }
  0xb5   : > { %v288_v20 = vadd.f32 %v287_v19, %v247_v18 }
  0xb6   : > { %304 = sbr.rel (!%p535_p5) target bundleno = 195 (0xc3), region = 77 }
  0xb7   : > { %vm291_vm2 = vcmp.ge.f32.partialorder %v288_v20, 0.0  ;;  %v293_v21 = vmul.f32 0.2, %v288_v20 }
  0xb9   : > { %v295_v22 = vsel %vm291_vm2, %v288_v20, %v293_v21  ;;  %v337_v23 = vld [vmem:[%s227_s11] sm:$0xff] (%p535_p5) }
  0xba   : > { %297 = vst [vmem:[%s227_s11 + $0x8] sm:$0xff] %v295_v22 }
  0xbb   : > { %338 = vst [vmem:[%s306_s21] sm:$0xff] %v337_v23 }
  0xc1   : > { %v339_v24 = vld [vmem:[%s227_s11 + $0x8] sm:$0xff] }
  0xc2   : > { %340 = vst [vmem:[%s306_s21 + $0x10] sm:$0xff] %v339_v24 }
  0xc3 PF: > { %p10_p10 = scmp.ge.s32.totalorder %s522_s16, 4   ;;  %s579_s12 = smov %s478_s13 }
  0xc4   : > { %s580_s13 = smov %s533_s19  ;;  %s581_s14 = smov %s522_s16 }
  0xc5   :  { %12 = sbr.rel (!%p10_p10) target bundleno = 2 (0x2), region = 146 }

// kernel: sbd_forward.32
= control target key start
LH: loop header
LB: loop body
LE: loop exit
PB: predicated region body
PF: predicated region fallthrough
CT: control target
= control target key end

     0   :  { %s759_s12 = smov 0   ;;  %s761_s13 = smov 0   ;;  %s890_s0 = inlined_call_operand.vmem [shape: bf16[3,48,256], index: 0, kind: input, shape index: {}]   ;;  %s891_s1 = inlined_call_operand.vmem [shape: bf16[3,16,48], index: 1, kind: input, shape index: {}]   ;;  %s892_s2 = inlined_call_operand.vmem [shape: f32[3,16,1], index: 2, kind: input, shape index: {}]   ;;  %s893_s3 = inlined_call_operand.vmem [shape: f32[16,256], index: 3, kind: output, shape index: {}]  }
   0x1   :  { %s763_s14 = smov 0  }
   0x2 LB: > { %s590_s15 = sadd.s32 4294967295, %s736_s14   ;;  %s776_s16 = sadd.s32 1, %s736_s14   ;;  %s736_s14 = sphi %s763_s14, %s897_s14   ;;  %s732_s13 = sphi %s761_s13, %s896_s13   ;;  %s728_s12 = sphi %s759_s12, %s895_s12  }
   0x3   : > { %s17_s17 = ssub.s32 %s736_s14, %s776_s16  ;;  %s20_s18 = sadd.s32 1, %s732_s13 }
   0x4   : > { %p18_p0 = scmp.eq.s32.totalorder %s17_s17, 0  ;;  %p27_p1 = scmp.ne.s32.totalorder %s732_s13, %s728_s12 }
   0x5   : > { %p28_p2 = scmp.eq.s32.totalorder %s736_s14, 0  ;;  %p99_p3 = scmp.eq.s32.totalorder %s590_s15, 1 }
   0x6   : > { %s787_s19 = scalar_select %p18_p0, %s732_s13, %s20_s18  }
   0x7   : > { %p29_p4 = por %p28_p2, %p27_p1  ;;  %p789_p5 = por %p99_p3, %p27_p1 }
   0x8   : > { %p593_p6 = scmp.ge.s32.totalorder %s736_s14, 2 }
   0xa   : > { %127 = sbr.rel (%p593_p6) target bundleno = 38 (0x26), region = 24 }
   0xf   : > { %130 = sbr.rel (!%p29_p4) target bundleno = 38 (0x26), region = 28  ;;  %s132_s21 = sand.u32 (%p29_p4), 1, %s732_s13  }
  0x10   : > { %s594_s22 = sshll.u32 (%p29_p4), %s736_s14, 2  ;;  %s684_s23 = smul.u32 (%p29_p4), 72, %s132_s21 }
  0x11   : > { %s799_s26 = scalar_lea.vmem (%p29_p4), %s890_s0, %s594_s22 }
  0x12   : > { %v153_v0 = vld [vmem:[%s799_s26] sm:$0xf] (%p29_p4)  ;;  %v155_v1 = vld [vmem:[%s799_s26 + $0x8] sm:$0xf] (%p29_p4)  ;;  %v157_v2 = vld [vmem:[%s799_s26 + $0x10] sm:$0xf] (%p29_p4) }
  0x13   : > { %s804_s27 = scalar_lea.vmem (%p29_p4), [#allocation2], %s684_s23  ;;  %v159_v3 = vld [vmem:[%s799_s26 + $0x18] sm:$0xf] (%p29_p4)  ;;  %v161_v4 = vld [vmem:[%s799_s26 + $0x20] sm:$0xf] (%p29_p4) }
  0x14   : > { %154 = vst [vmem:[%s804_s27] sm:$0xf] %v153_v0  ;;  %v163_v5 = vld [vmem:[%s799_s26 + $0x28] sm:$0xf]  ;;  %v165_v6 = vld [vmem:[%s799_s26 + $0x30] sm:$0xf] }
  0x15   : > { %156 = vst [vmem:[%s804_s27 + $0x4] sm:$0xf] %v155_v1  ;;  %v167_v7 = vld [vmem:[%s799_s26 + $0x38] sm:$0xf]  ;;  %v169_v8 = vld [vmem:[%s799_s26 + $0x40] sm:$0xf] }
  0x16   : > { %158 = vst [vmem:[%s804_s27 + $0x8] sm:$0xf] %v157_v2  ;;  %v171_v9 = vld [vmem:[%s799_s26 + $0x48] sm:$0xf]  ;;  %v173_v10 = vld [vmem:[%s799_s26 + $0x50] sm:$0xf] }
  0x17   : > { %160 = vst [vmem:[%s804_s27 + $0xc] sm:$0xf] %v159_v3  ;;  %v175_v11 = vld [vmem:[%s799_s26 + $0x58] sm:$0xf]  ;;  %v177_v12 = vld [vmem:[%s799_s26 + $0x60] sm:$0xf] }
  0x18   : > { %162 = vst [vmem:[%s804_s27 + $0x10] sm:$0xf] %v161_v4  ;;  %v179_v13 = vld [vmem:[%s799_s26 + $0x68] sm:$0xf]  ;;  %v181_v14 = vld [vmem:[%s799_s26 + $0x70] sm:$0xf] }
  0x19   : > { %164 = vst [vmem:[%s804_s27 + $0x14] sm:$0xf] %v163_v5  ;;  %v183_v15 = vld [vmem:[%s799_s26 + $0x78] sm:$0xf]  ;;  %v185_v16 = vld [vmem:[%s799_s26 + $0x80] sm:$0xf] }
  0x1a   : > { %166 = vst [vmem:[%s804_s27 + $0x18] sm:$0xf] %v165_v6  ;;  %v187_v17 = vld [vmem:[%s799_s26 + $0x88] sm:$0xf] }
  0x1b   : > { %168 = vst [vmem:[%s804_s27 + $0x1c] sm:$0xf] %v167_v7 }
  0x1c   : > { %170 = vst [vmem:[%s804_s27 + $0x20] sm:$0xf] %v169_v8 }
  0x1d   : > { %172 = vst [vmem:[%s804_s27 + $0x24] sm:$0xf] %v171_v9 }
  0x1e   : > { %174 = vst [vmem:[%s804_s27 + $0x28] sm:$0xf] %v173_v10 }
  0x1f   : > { %176 = vst [vmem:[%s804_s27 + $0x2c] sm:$0xf] %v175_v11 }
  0x20   : > { %178 = vst [vmem:[%s804_s27 + $0x30] sm:$0xf] %v177_v12 }
  0x21   : > { %180 = vst [vmem:[%s804_s27 + $0x34] sm:$0xf] %v179_v13 }
  0x22   : > { %182 = vst [vmem:[%s804_s27 + $0x38] sm:$0xf] %v181_v14 }
  0x23   : > { %184 = vst [vmem:[%s804_s27 + $0x3c] sm:$0xf] %v183_v15 }
  0x24   : > { %186 = vst [vmem:[%s804_s27 + $0x40] sm:$0xf] %v185_v16 }
  0x25   : > { %188 = vst [vmem:[%s804_s27 + $0x44] sm:$0xf] %v187_v17 }
  0x26 PF: > { %p595_p7 = scmp.ge.s32.totalorder %s736_s14, 1  ;;  %p247_p8 = scmp.lt.s32.totalorder %s736_s14, 3 }
  0x28   : > { %p248_p9 = pnand %p595_p7, %p247_p8 }
  0x29   : > { %s254_s28 = sand.u32 (!%p248_p9), 1, %s728_s12  }
  0x2a   : > { %251 = sbr.rel (%p248_p9) target bundleno = 219 (0xdb), region = 69  ;;  %s596_s30 = sshll.u32 (!%p248_p9), %s254_s28, 4 }
  0x2b   : > { %s685_s29 = smul.u32 (!%p248_p9), 72, %s254_s28  ;;  %s275_s4 = scalar_lea.vmem (!%p248_p9), [#allocation3], %s596_s30 }
  0x2d   : > { %s256_s9 = scalar_lea.vmem (!%p248_p9), [#allocation2], %s685_s29 }
  0x2f   : > { %v738_v18 = vmov 0   ;;  %v622_v19 = vld [vmem:[%s892_s2 + $0x10] sm:$0xff]  ;;  %v285_v20 = vld [vmem:[%s892_s2] sm:$0xff]  ;;  %v623_v28 = vld [vmem:[%s892_s2 + $0x18] sm:$0xff]  ;;  %vm320_vm0 = vcmask 392192   ;;  %s669_s12 = sshll.u32 (%p789_p5), %s590_s15, 3 }
  0x30   : > { %712 = vset.pattern.permute.xlu1 %v738_v18  ;;  %711 = vset.pattern.permute.xlu0 %v738_v18  ;;  %v649_v21 = vld [vmem:[%s892_s2 + $0x20] sm:$0xff]  ;;  %v675_v22 = vld [vmem:[%s256_s9 + $0x10] sm:$0xff]  ;;  %v679_v23 = vld [vmem:[%s256_s9 + $0x28] sm:$0xff]  ;;  %s496_s6 = scalar_lea.vmem (%p789_p5), %s893_s3, %s669_s12 }
  0x31   : > { %359 = vperm.xlu1 %712, %v622_v19   ;;  %289 = vperm.xlu0 %711, %v285_v20   ;;  %v683_v24 = vld [vmem:[%s256_s9 + $0x40] sm:$0xff]  ;;  %v674_v25 = vld [vmem:[%s256_s9 + $0x8] sm:$0xff]  ;;  %v682_v27 = vld [vmem:[%s256_s9 + $0x38] sm:$0xff] }
  0x32   : > { %713 = vset.pattern.permute.xlu2 %v738_v18  ;;  %329 = vmatpush.bf16.msra.mxu0 %v675_v22  ;;  %v678_v26 = vld [vmem:[%s256_s9 + $0x20] sm:$0xff]  ;;  %v677_v32 = vld [vmem:[%s256_s9 + $0x18] sm:$0xff]  ;;  %v681_v33 = vld [vmem:[%s256_s9 + $0x30] sm:$0xff] }
  0x33   : > { %430 = vperm.xlu2 %713, %v649_v21   ;;  %398 = vmatpush.bf16.msra.mxu1 %v679_v23  ;;  %v286_v29 = vld [vmem:[%s892_s2 + $0x8] sm:$0xff]  ;;  %v672_v34 = vld [vmem:[%s891_s1] sm:$0xff]  ;;  %v680_v36 = vld [vmem:[%s891_s1 + $0x10] sm:$0xff] }
  0x34   : > { %469 = vmatpush.bf16.msra.mxu2 %v683_v24  ;;  %v650_v30 = vld [vmem:[%s892_s2 + $0x28] sm:$0xff] }
  0x35   : > { %v673_v31 = vld [vmem:[%s256_s9] sm:$0xff] }
  0x36   : > { %330 = vmatpush.bf16.msra.mxu0 %v674_v25  ;;  %v676_v35 = vld [vmem:[%s891_s1 + $0x8] sm:$0xff] }
  0x37   : > { %399 = vmatpush.bf16.msra.mxu1 %v678_v26 }
  0x38   : > { %470 = vmatpush.bf16.msra.mxu2 %v682_v27 }
  0x39   : > { %364 = vperm.xlu1 %712, %v623_v28   ;;  %294 = vperm.xlu0 %711, %v286_v29  }
  0x3a   : > { %331 = vmatpush.bf16.msra.mxu0 %v673_v31 }
  0x3b   : > { %435 = vperm.xlu2 %713, %v650_v30   ;;  %400 = vmatpush.bf16.msra.mxu1 %v677_v32 }
  0x3c   : > { %471 = vmatpush.bf16.msra.mxu2 %v681_v33 }
  0x3d   : > { %613 = vmatmul.msk.bf16.vlgmr.msra.gmra.mxu0 %vm320_vm0, %v672_v34 }
  0x3e   : > { %640 = vmatmul.msk.bf16.vlgmr.msra.gmra.mxu1 %vm320_vm0, %v676_v35 }
  0x3f   : > { %667 = vmatmul.msk.bf16.vlgmr.msra.gmra.mxu2 %vm320_vm0, %v680_v36 }
  0x8d   : > { %v431_v45 = vpop.permute.xlu2 %430 }
  0x95   : > { %v436_v62 = vpop.permute.xlu2 %435 }
  0xa3   : > { %v360_v37 = vpop.permute.xlu1 %359  ;;  %v290_v38 = vpop.permute.xlu0 %289 }
  0xab   : > { %v365_v46 = vpop.permute.xlu1 %364  ;;  %v295_v47 = vpop.permute.xlu0 %294 }
  0xba   : > { %v333_v39 = vpop.f32.mrf.mxu0 }
  0xbb   : > { %v402_v40 = vpop.f32.mrf.mxu1  ;;  %v334_v41 = vadd.f32 %v333_v39, %v290_v38 }
  0xbc   : > { %v403_v42 = vadd.f32 %v402_v40, %v360_v37 }
  0xbd   : > { %v340_v43 = vmul.f32 0.2, %v334_v41  ;;  %vm338_vm1 = vcmp.ge.f32.partialorder %v334_v41, 0.0 }
  0xbe   : > { %v409_v44 = vmul.f32 0.2, %v403_v42  ;;  %vm407_vm2 = vcmp.ge.f32.partialorder %v403_v42, 0.0 }
  0xbf   : > { %v342_v49 = vsel %vm338_vm1, %v334_v41, %v340_v43 }
  0xc0   : > { %v411_v50 = vsel %vm407_vm2, %v403_v42, %v409_v44 }
  0xc1   : > { %v413_v57 = vadd.f32 %v411_v50, %v342_v49 }
  0xc2   : > { %v473_v48 = vpop.f32.mrf.mxu2  ;;  %v335_v52 = vpop.f32.mrf.mxu0 }
  0xc3   : > { %v474_v51 = vadd.f32 %v473_v48, %v431_v45  ;;  %v404_v53 = vpop.f32.mrf.mxu1  ;;  %v336_v54 = vadd.f32 %v335_v52, %v295_v47 }
  0xc4   : > { %v405_v55 = vadd.f32 %v404_v53, %v365_v46 }
  0xc5   : > { %vm478_vm3 = vcmp.ge.f32.partialorder %v474_v51, 0.0  ;;  %v480_v56 = vmul.f32 0.2, %v474_v51  ;;  %v341_v59 = vmul.f32 0.2, %v336_v54  ;;  %vm339_vm4 = vcmp.ge.f32.partialorder %v336_v54, 0.0 }
  0xc6   : > { %v410_v60 = vmul.f32 0.2, %v405_v55  ;;  %vm408_vm5 = vcmp.ge.f32.partialorder %v405_v55, 0.0 }
  0xc7   : > { %v482_v58 = vsel %vm478_vm3, %v474_v51, %v480_v56  ;;  %v343_v0 = vsel %vm339_vm4, %v336_v54, %v341_v59 }
  0xc8   : > { %v484_v61 = vadd.f32 %v482_v58, %v413_v57  ;;  %v412_v1 = vsel %vm408_vm5, %v405_v55, %v410_v60 }
  0xc9   : > { %v414_v4 = vadd.f32 %v412_v1, %v343_v0 }
  0xca   : > { %486 = vst [vmem:[%s275_s4] sm:$0xff] %v484_v61  ;;  %v475_v63 = vpop.f32.mrf.mxu2 }
  0xcb   : > { %v476_v2 = vadd.f32 %v475_v63, %v436_v62 }
  0xcd   : > { %vm479_vm6 = vcmp.ge.f32.partialorder %v476_v2, 0.0  ;;  %v481_v3 = vmul.f32 0.2, %v476_v2 }
  0xce   : > { %494 = sbr.rel (!%p789_p5) target bundleno = 219 (0xdb), region = 77 }
  0xcf   : > { %v483_v5 = vsel %vm479_vm6, %v476_v2, %v481_v3 }
  0xd0   : > { %v485_v6 = vadd.f32 %v483_v5, %v414_v4 }
  0xd1   : > { %v527_v7 = vld [vmem:[%s275_s4] sm:$0xff] (%p789_p5) }
  0xd2   : > { %487 = vst [vmem:[%s275_s4 + $0x8] sm:$0xff] %v485_v6 }
  0xd3   : > { %528 = vst [vmem:[%s496_s6] sm:$0xff] %v527_v7 }
  0xd9   : > { %v529_v8 = vld [vmem:[%s275_s4 + $0x8] sm:$0xff] }
  0xda   : > { %530 = vst [vmem:[%s496_s6 + $0x10] sm:$0xff] %v529_v8 }
  0xdb PF: > { %p10_p10 = scmp.ge.s32.totalorder %s776_s16, 4   ;;  %s895_s12 = smov %s732_s13 }
  0xdc   : > { %s896_s13 = smov %s787_s19  ;;  %s897_s14 = smov %s776_s16 }
  0xdd   :  { %12 = sbr.rel (!%p10_p10) target bundleno = 2 (0x2), region = 152 }

// kernel: sbd_forward.34
= control target key start
LH: loop header
LB: loop body
LE: loop exit
PB: predicated region body
PF: predicated region fallthrough
CT: control target
= control target key end

     0   :  { %s439_s12 = smov 0   ;;  %s441_s13 = smov 0   ;;  %s499_s0 = inlined_call_operand.vmem [shape: bf16[1,48,256], index: 0, kind: input, shape index: {}]   ;;  %s500_s1 = inlined_call_operand.vmem [shape: bf16[1,8,48], index: 1, kind: input, shape index: {}]   ;;  %s501_s2 = inlined_call_operand.vmem [shape: f32[1,8,1], index: 2, kind: input, shape index: {}]   ;;  %s502_s3 = inlined_call_operand.vmem [shape: f32[8,256], index: 3, kind: output, shape index: {}]  }
   0x1   :  { %s443_s14 = smov 0  }
   0x2 LB: > { %s341_s15 = sadd.s32 4294967295, %s416_s14   ;;  %s456_s16 = sadd.s32 1, %s416_s14   ;;  %s416_s14 = sphi %s443_s14, %s505_s14   ;;  %s412_s13 = sphi %s441_s13, %s504_s13   ;;  %s408_s12 = sphi %s439_s12, %s503_s12  }
   0x3   : > { %s17_s17 = ssub.s32 %s416_s14, %s456_s16  ;;  %s20_s18 = sadd.s32 1, %s412_s13 }
   0x4   : > { %p18_p0 = scmp.eq.s32.totalorder %s17_s17, 0  ;;  %p27_p1 = scmp.ne.s32.totalorder %s412_s13, %s408_s12 }
   0x5   : > { %p28_p2 = scmp.eq.s32.totalorder %s416_s14, 0  ;;  %p344_p4 = scmp.ge.s32.totalorder %s416_s14, 2 }
   0x6   : > { %s465_s19 = scalar_select %p18_p0, %s412_s13, %s20_s18  }
   0x7   : > { %p29_p3 = por %p28_p2, %p27_p1  ;;  %127 = sbr.rel (%p344_p4) target bundleno = 23 (0x17), region = 24 }
   0xc   : > { %130 = sbr.rel (!%p29_p3) target bundleno = 23 (0x17), region = 28  ;;  %s132_s20 = sand.u32 (%p29_p3), 1, %s412_s13  }
   0xd   : > { %s345_s21 = sshll.u32 (%p29_p3), %s416_s14, 2  ;;  %s366_s22 = smul.u32 (%p29_p3), 24, %s132_s20 }
   0xe   : > { %s136_s25 = scalar_lea.vmem (%p29_p3), %s499_s0, %s345_s21 }
   0xf   : > { %v153_v0 = vld [vmem:[%s136_s25] sm:$0xf] (%p29_p3)  ;;  %v155_v1 = vld [vmem:[%s136_s25 + $0x8] sm:$0xf] (%p29_p3)  ;;  %v157_v2 = vld [vmem:[%s136_s25 + $0x10] sm:$0xf] (%p29_p3) }
  0x10   : > { %s134_s26 = scalar_lea.vmem (%p29_p3), [#allocation2], %s366_s22  ;;  %v159_v3 = vld [vmem:[%s136_s25 + $0x18] sm:$0xf] (%p29_p3)  ;;  %v161_v4 = vld [vmem:[%s136_s25 + $0x20] sm:$0xf] (%p29_p3) }
  0x11   : > { %154 = vst [vmem:[%s134_s26] sm:$0xf] %v153_v0  ;;  %v163_v5 = vld [vmem:[%s136_s25 + $0x28] sm:$0xf] }
  0x12   : > { %156 = vst [vmem:[%s134_s26 + $0x4] sm:$0xf] %v155_v1 }
  0x13   : > { %158 = vst [vmem:[%s134_s26 + $0x8] sm:$0xf] %v157_v2 }
  0x14   : > { %160 = vst [vmem:[%s134_s26 + $0xc] sm:$0xf] %v159_v3 }
  0x15   : > { %162 = vst [vmem:[%s134_s26 + $0x10] sm:$0xf] %v161_v4 }
  0x16   : > { %164 = vst [vmem:[%s134_s26 + $0x14] sm:$0xf] %v163_v5 }
  0x17 PF: > { %p346_p5 = scmp.ge.s32.totalorder %s416_s14, 1  ;;  %p199_p6 = scmp.lt.s32.totalorder %s416_s14, 3 }
  0x19   : > { %p200_p7 = pnand %p346_p5, %p199_p6 }
  0x1a   : > { %s206_s27 = sand.u32 (!%p200_p7), 1, %s408_s12   ;;  %p228_p8 = scmp.lt.s32.totalorder (!%p200_p7), %s341_s15, 1 }
  0x1b   : > { %203 = sbr.rel (%p200_p7) target bundleno = 178 (0xb2), region = 69 }
  0x1c   : > { %s367_s30 = smul.u32 (!%p200_p7), 24, %s206_s27 }
  0x1e   : > { %s208_s4 = scalar_lea.vmem (!%p200_p7), [#allocation2], %s367_s30 }
  0x20   : > { %v240_v6 = vld [vmem:[%s501_s2] sm:$0xff]  ;;  %v418_v7 = vmov 0   ;;  %v365_v8 = vld [vmem:[%s208_s4 + $0x10] sm:$0xff]  ;;  %vm264_vm0 = vcmask 392192   ;;  %s507_s15 = smov (!%p228_p8, %s341_s15), 1 }
  0x21   : > { %393 = vset.pattern.permute.xlu0 %v418_v7  ;;  %273 = vmatpush.bf16.msra.mxu0 %v365_v8  ;;  %v364_v9 = vld [vmem:[%s208_s4 + $0x8] sm:$0xff]  ;;  %v363_v10 = vld [vmem:[%s208_s4] sm:$0xff]  ;;  %s347_s7 = sshll.u32 %s507_s15, 3 }
  0x22   : > { %243 = vperm.xlu0 %393, %v240_v6   ;;  %v233_v11 = vld [vmem:[%s500_s1] sm:$0xf]  ;;  %s231_s10 = scalar_lea.vmem %s502_s3, %s347_s7 }
  0x25   : > { %274 = vmatpush.bf16.msra.mxu0 %v364_v9 }
  0x29   : > { %275 = vmatpush.bf16.msra.mxu0 %v363_v10 }
  0x2c   : > { %360 = vmatmul.msk.bf16.vlgmr.msra.gmra.mxu0 %vm264_vm0, %v233_v11 }
  0x94   : > { %v244_v12 = vpop.permute.xlu0 %243 }
  0xa9   : > { %v277_v13 = vpop.f32.mrf.mxu0 }
  0xaa   : > { %v278_v14 = vadd.f32 %v277_v13, %v244_v12 }
  0xac   : > { %281 = vst [vmem:[%s231_s10] sm:$0xff] %v278_v14 }
  0xb1   : > { %v279_v15 = vpop.f32.mrf.mxu0 }
  0xb2 PF: > { %p10_p9 = scmp.ge.s32.totalorder %s456_s16, 4   ;;  %s503_s12 = smov %s412_s13 }
  0xb3   : > { %s504_s13 = smov %s465_s19  ;;  %s505_s14 = smov %s456_s16 }
  0xb4   :  { %12 = sbr.rel (!%p10_p9) target bundleno = 2 (0x2), region = 108 }

// kernel: sbd_forward.35
= control target key start
LH: loop header
LB: loop body
LE: loop exit
PB: predicated region body
PF: predicated region fallthrough
CT: control target
= control target key end

     0   :  { %v375_v3 = vmov 0   ;;  %vm70_vm0 = vcmask 785408   ;;  %s471_s0 = inlined_call_operand.vmem [shape: bf16[3,96,128], index: 0, kind: input, shape index: {}]   ;;  %s472_s2 = inlined_call_operand.vmem [shape: f32[3,8,1], index: 2, kind: input, shape index: {}]   ;;  %s473_s1 = inlined_call_operand.vmem [shape: bf16[3,8,96], index: 1, kind: input, shape index: {}]   ;;  %s474_s3 = inlined_call_operand.vmem [shape: f32[8,128], index: 3, kind: output, shape index: {}]  }
   0x1   :  { %v359_v0 = vld [vmem:[%s471_s0 + $0x28] sm:$0xff]  ;;  %v365_v1 = vld [vmem:[%s471_s0 + $0x58] sm:$0xff]  ;;  %373 = vset.pattern.permute.xlu0 %v375_v3  ;;  %374 = vset.pattern.permute.xlu1 %v375_v3  ;;  %v358_v4 = vld [vmem:[%s471_s0 + $0x20] sm:$0xff] }
   0x2   :  { %v371_v2 = vld [vmem:[%s471_s0 + $0x88] sm:$0xff]  ;;  %76 = vmatpush.bf16.msra.mxu0 %v359_v0  ;;  %153 = vmatpush.bf16.msra.mxu1 %v365_v1  ;;  %v364_v5 = vld [vmem:[%s471_s0 + $0x50] sm:$0xff]  ;;  %v370_v6 = vld [vmem:[%s471_s0 + $0x80] sm:$0xff] }
   0x3   :  { %231 = vmatpush.bf16.msra.mxu2 %v371_v2  ;;  %v357_v7 = vld [vmem:[%s471_s0 + $0x18] sm:$0xff]  ;;  %v363_v8 = vld [vmem:[%s471_s0 + $0x48] sm:$0xff]  ;;  %v28_v9 = vld [vmem:[%s472_s2] sm:$0xff] }
   0x4   :  { %v369_v10 = vld [vmem:[%s471_s0 + $0x78] sm:$0xff]  ;;  %31 = vperm.xlu0 %373, %v28_v9   ;;  %v328_v11 = vld [vmem:[%s472_s2 + $0x10] sm:$0xff]  ;;  %v362_v13 = vld [vmem:[%s471_s0 + $0x40] sm:$0xff] }
   0x5   :  { %187 = vperm.xlu1 %374, %v328_v11   ;;  %v356_v12 = vld [vmem:[%s471_s0 + $0x10] sm:$0xff]  ;;  %v289_v15 = vld [vmem:[%s472_s2 + $0x8] sm:$0xff]  ;;  %v361_v17 = vld [vmem:[%s471_s0 + $0x38] sm:$0xff] }
   0x6   :  { %77 = vmatpush.bf16.msra.mxu0 %v358_v4  ;;  %154 = vmatpush.bf16.msra.mxu1 %v364_v5  ;;  %v368_v14 = vld [vmem:[%s471_s0 + $0x70] sm:$0xff]  ;;  %v355_v16 = vld [vmem:[%s471_s0 + $0x8] sm:$0xff]  ;;  %v354_v19 = vld [vmem:[%s471_s0] sm:$0xff] }
   0x7   :  { %232 = vmatpush.bf16.msra.mxu2 %v370_v6  ;;  %v367_v18 = vld [vmem:[%s471_s0 + $0x68] sm:$0xff]  ;;  %v360_v20 = vld [vmem:[%s471_s0 + $0x30] sm:$0xff]  ;;  %v366_v21 = vld [vmem:[%s471_s0 + $0x60] sm:$0xff] }
   0x8   :  { %v15_v22 = vld [vmem:[%s473_s1] sm:$0xf]  ;;  %v276_v23 = vld [vmem:[%s473_s1 + $0x4] sm:$0xf]  ;;  %v315_v24 = vld [vmem:[%s473_s1 + $0x8] sm:$0xf] }
   0xa   :  { %78 = vmatpush.bf16.msra.mxu0 %v357_v7  ;;  %155 = vmatpush.bf16.msra.mxu1 %v363_v8 }
   0xb   :  { %233 = vmatpush.bf16.msra.mxu2 %v369_v10 }
   0xc   :  { %109 = vperm.xlu0 %373, %v289_v15  }
   0xe   :  { %79 = vmatpush.bf16.msra.mxu0 %v356_v12  ;;  %156 = vmatpush.bf16.msra.mxu1 %v362_v13 }
   0xf   :  { %234 = vmatpush.bf16.msra.mxu2 %v368_v14 }
  0x12   :  { %80 = vmatpush.bf16.msra.mxu0 %v355_v16  ;;  %157 = vmatpush.bf16.msra.mxu1 %v361_v17 }
  0x13   :  { %235 = vmatpush.bf16.msra.mxu2 %v367_v18 }
  0x16   :  { %81 = vmatpush.bf16.msra.mxu0 %v354_v19  ;;  %158 = vmatpush.bf16.msra.mxu1 %v360_v20 }
  0x17   :  { %236 = vmatpush.bf16.msra.mxu2 %v366_v21 }
  0x19   :  { %275 = vmatmul.msk.bf16.vlgmr.msra.gmra.mxu0 %vm70_vm0, %v15_v22  ;;  %314 = vmatmul.msk.bf16.vlgmr.msra.gmra.mxu1 %vm70_vm0, %v276_v23 }
  0x1a   :  { %353 = vmatmul.msk.bf16.vlgmr.msra.gmra.mxu2 %vm70_vm0, %v315_v24 }
  0x76   :  { %v32_v25 = vpop.permute.xlu0 %31 }
  0x77   :  { %v188_v33 = vpop.permute.xlu1 %187 }
  0x7e   :  { %v110_v26 = vpop.permute.xlu0 %109 }
  0x96   :  { %v83_v27 = vpop.f32.mrf.mxu0  ;;  %v160_v28 = vpop.f32.mrf.mxu1 }
  0x97   :  { %v84_v29 = vadd.f32 %v83_v27, %v32_v25  ;;  %v161_v30 = vadd.f32 %v160_v28, %v110_v26 }
  0x99   :  { %v88_v31 = vmul.f32 0.2, %v84_v29  ;;  %v165_v32 = vmul.f32 0.2, %v161_v30  ;;  %vm87_vm1 = vcmp.ge.f32.partialorder %v84_v29, 0.0  ;;  %vm164_vm2 = vcmp.ge.f32.partialorder %v161_v30, 0.0 }
  0x9b   :  { %v89_v35 = vsel %vm87_vm1, %v84_v29, %v88_v31  ;;  %v166_v36 = vsel %vm164_vm2, %v161_v30, %v165_v32 }
  0x9c   :  { %v167_v41 = vadd.f32 %v166_v36, %v89_v35 }
  0x9d   :  { %v238_v34 = vpop.f32.mrf.mxu2 }
  0x9e   :  { %v239_v37 = vadd.f32 %v238_v34, %v188_v33  ;;  %v85_v38 = vpop.f32.mrf.mxu0  ;;  %v162_v39 = vpop.f32.mrf.mxu1 }
  0xa0   :  { %vm242_vm3 = vcmp.ge.f32.partialorder %v239_v37, 0.0  ;;  %v243_v40 = vmul.f32 0.2, %v239_v37 }
  0xa2   :  { %v244_v42 = vsel %vm242_vm3, %v239_v37, %v243_v40 }
  0xa3   :  { %v245_v43 = vadd.f32 %v244_v42, %v167_v41 }
  0xa5   :  { %246 = vst [vmem:[%s474_s3] sm:$0xff] %v245_v43  ;;  %v240_v44 = vpop.f32.mrf.mxu2 }

// kernel: sbd_forward.36
= control target key start
LH: loop header
LB: loop body
LE: loop exit
PB: predicated region body
PF: predicated region fallthrough
CT: control target
= control target key end

     0   :  { %v76_v1 = vmov 0   ;;  %vm38_vm0 = vcmask 261120   ;;  %s112_s0 = inlined_call_operand.vmem [shape: bf16[1,32,128], index: 0, kind: input, shape index: {}]   ;;  %s113_s2 = inlined_call_operand.vmem [shape: f32[1,8,1], index: 2, kind: input, shape index: {}]   ;;  %s114_s1 = inlined_call_operand.vmem [shape: bf16[1,8,32], index: 1, kind: input, shape index: {}]   ;;  %s115_s3 = inlined_call_operand.vmem [shape: f32[8,128], index: 3, kind: output, shape index: {}]  }
   0x1   :  { %v73_v0 = vld [vmem:[%s112_s0 + $0x8] sm:$0xff]  ;;  %75 = vset.pattern.permute.xlu0 %v76_v1  ;;  %v20_v2 = vld [vmem:[%s113_s2] sm:$0xff] }
   0x2   :  { %48 = vmatpush.bf16.msra.mxu0 %v73_v0  ;;  %v72_v3 = vld [vmem:[%s112_s0] sm:$0xff]  ;;  %23 = vperm.xlu0 %75, %v20_v2  }
   0x3   :  { %v15_v4 = vld [vmem:[%s114_s1] sm:$0xf] }
   0x6   :  { %49 = vmatpush.bf16.msra.mxu0 %v72_v3 }
   0x9   :  { %71 = vmatmul.msk.bf16.vlgmr.msra.gmra.mxu0 %vm38_vm0, %v15_v4 }
  0x74   :  { %v24_v5 = vpop.permute.xlu0 %23 }
  0x86   :  { %v51_v6 = vpop.f32.mrf.mxu0 }
  0x87   :  { %v52_v7 = vadd.f32 %v51_v6, %v24_v5 }
  0x89   :  { %vm55_vm1 = vcmp.ge.f32.partialorder %v52_v7, 0.0  ;;  %v56_v8 = vmul.f32 0.2, %v52_v7 }
  0x8b   :  { %v57_v9 = vsel %vm55_vm1, %v52_v7, %v56_v8 }
  0x8c   :  { %58 = vst [vmem:[%s115_s3] sm:$0xff] %v57_v9 }
  0x8e   :  { %v53_v10 = vpop.f32.mrf.mxu0 }

// kernel: sbd_forward.37
= control target key start
LH: loop header
LB: loop body
LE: loop exit
PB: predicated region body
PF: predicated region fallthrough
CT: control target
= control target key end

     0   :  { %v274_v3 = vmov 0   ;;  %vm50_vm0 = vcmask 261120   ;;  %s346_s0 = inlined_call_operand.vmem [shape: bf16[3,32,128], index: 0, kind: input, shape index: {}]   ;;  %s347_s2 = inlined_call_operand.vmem [shape: f32[3,16,1], index: 2, kind: input, shape index: {}]   ;;  %s348_s1 = inlined_call_operand.vmem [shape: bf16[3,16,32], index: 1, kind: input, shape index: {}]   ;;  %s349_s3 = inlined_call_operand.vmem [shape: f32[16,128], index: 3, kind: output, shape index: {}]  }
   0x1   :  { %v263_v0 = vld [vmem:[%s346_s0 + $0x8] sm:$0xff]  ;;  %v266_v1 = vld [vmem:[%s346_s0 + $0x18] sm:$0xff]  ;;  %272 = vset.pattern.permute.xlu1 %v274_v3  ;;  %271 = vset.pattern.permute.xlu0 %v274_v3  ;;  %v262_v4 = vld [vmem:[%s346_s0] sm:$0xff] }
   0x2   :  { %v269_v2 = vld [vmem:[%s346_s0 + $0x28] sm:$0xff]  ;;  %273 = vset.pattern.permute.xlu2 %v274_v3  ;;  %60 = vmatpush.bf16.msra.mxu0 %v263_v0  ;;  %v265_v5 = vld [vmem:[%s346_s0 + $0x10] sm:$0xff]  ;;  %v268_v6 = vld [vmem:[%s346_s0 + $0x20] sm:$0xff] }
   0x3   :  { %121 = vmatpush.bf16.msra.mxu1 %v266_v1  ;;  %184 = vmatpush.bf16.msra.mxu2 %v269_v2  ;;  %v225_v7 = vld [vmem:[%s347_s2 + $0x10] sm:$0xff]  ;;  %v21_v8 = vld [vmem:[%s347_s2] sm:$0xff]  ;;  %v264_v11 = vld [vmem:[%s348_s1 + $0x8] sm:$0xff] }
   0x4   :  { %87 = vperm.xlu1 %272, %v225_v7   ;;  %25 = vperm.xlu0 %271, %v21_v8   ;;  %v246_v9 = vld [vmem:[%s347_s2 + $0x20] sm:$0xff]  ;;  %v267_v12 = vld [vmem:[%s348_s1 + $0x10] sm:$0xff]  ;;  %v226_v13 = vld [vmem:[%s347_s2 + $0x18] sm:$0xff] }
   0x5   :  { %v261_v10 = vld [vmem:[%s348_s1] sm:$0xff]  ;;  %150 = vperm.xlu2 %273, %v246_v9   ;;  %v22_v14 = vld [vmem:[%s347_s2 + $0x8] sm:$0xff] }
   0x6   :  { %61 = vmatpush.bf16.msra.mxu0 %v262_v4  ;;  %v247_v15 = vld [vmem:[%s347_s2 + $0x28] sm:$0xff] }
   0x7   :  { %122 = vmatpush.bf16.msra.mxu1 %v265_v5  ;;  %185 = vmatpush.bf16.msra.mxu2 %v268_v6 }
   0x9   :  { %218 = vmatmul.msk.bf16.vlgmr.msra.gmra.mxu0 %vm50_vm0, %v261_v10 }
   0xa   :  { %239 = vmatmul.msk.bf16.vlgmr.msra.gmra.mxu1 %vm50_vm0, %v264_v11  ;;  %260 = vmatmul.msk.bf16.vlgmr.msra.gmra.mxu2 %vm50_vm0, %v267_v12 }
   0xc   :  { %92 = vperm.xlu1 %272, %v226_v13   ;;  %30 = vperm.xlu0 %271, %v22_v14  }
   0xd   :  { %155 = vperm.xlu2 %273, %v247_v15  }
  0x5f   :  { %v151_v24 = vpop.permute.xlu2 %150 }
  0x67   :  { %v156_v41 = vpop.permute.xlu2 %155 }
  0x76   :  { %v88_v16 = vpop.permute.xlu1 %87  ;;  %v26_v17 = vpop.permute.xlu0 %25 }
  0x7e   :  { %v93_v25 = vpop.permute.xlu1 %92  ;;  %v31_v26 = vpop.permute.xlu0 %30 }
  0x86   :  { %v63_v18 = vpop.f32.mrf.mxu0 }
  0x87   :  { %v124_v19 = vpop.f32.mrf.mxu1  ;;  %v64_v20 = vadd.f32 %v63_v18, %v26_v17 }
  0x88   :  { %v125_v21 = vadd.f32 %v124_v19, %v88_v16 }
  0x89   :  { %v70_v22 = vmul.f32 0.2, %v64_v20  ;;  %vm68_vm1 = vcmp.ge.f32.partialorder %v64_v20, 0.0 }
  0x8a   :  { %v131_v23 = vmul.f32 0.2, %v125_v21  ;;  %vm129_vm2 = vcmp.ge.f32.partialorder %v125_v21, 0.0 }
  0x8b   :  { %v72_v28 = vsel %vm68_vm1, %v64_v20, %v70_v22 }
  0x8c   :  { %v133_v29 = vsel %vm129_vm2, %v125_v21, %v131_v23 }
  0x8d   :  { %v187_v27 = vpop.f32.mrf.mxu2  ;;  %v135_v36 = vadd.f32 %v133_v29, %v72_v28 }
  0x8e   :  { %v188_v30 = vadd.f32 %v187_v27, %v151_v24  ;;  %v65_v31 = vpop.f32.mrf.mxu0 }
  0x8f   :  { %v126_v32 = vpop.f32.mrf.mxu1  ;;  %v66_v33 = vadd.f32 %v65_v31, %v31_v26 }
  0x90   :  { %v127_v34 = vadd.f32 %v126_v32, %v93_v25  ;;  %vm192_vm3 = vcmp.ge.f32.partialorder %v188_v30, 0.0  ;;  %v194_v35 = vmul.f32 0.2, %v188_v30 }
  0x91   :  { %v71_v38 = vmul.f32 0.2, %v66_v33  ;;  %vm69_vm4 = vcmp.ge.f32.partialorder %v66_v33, 0.0 }
  0x92   :  { %v196_v37 = vsel %vm192_vm3, %v188_v30, %v194_v35  ;;  %v132_v39 = vmul.f32 0.2, %v127_v34  ;;  %vm130_vm5 = vcmp.ge.f32.partialorder %v127_v34, 0.0 }
  0x93   :  { %v198_v40 = vadd.f32 %v196_v37, %v135_v36  ;;  %v73_v43 = vsel %vm69_vm4, %v66_v33, %v71_v38 }
  0x94   :  { %v134_v44 = vsel %vm130_vm5, %v127_v34, %v132_v39 }
  0x95   :  { %200 = vst [vmem:[%s349_s3] sm:$0xff] %v198_v40  ;;  %v189_v42 = vpop.f32.mrf.mxu2  ;;  %v136_v47 = vadd.f32 %v134_v44, %v73_v43 }
  0x96   :  { %v190_v45 = vadd.f32 %v189_v42, %v156_v41 }
  0x98   :  { %vm193_vm6 = vcmp.ge.f32.partialorder %v190_v45, 0.0  ;;  %v195_v46 = vmul.f32 0.2, %v190_v45 }
  0x9a   :  { %v197_v48 = vsel %vm193_vm6, %v190_v45, %v195_v46 }
  0x9b   :  { %v199_v49 = vadd.f32 %v197_v48, %v136_v47 }
  0x9d   :  { %201 = vst [vmem:[%s349_s3 + $0x8] sm:$0xff] %v199_v49 }

// kernel: sbd_forward.38
= control target key start
LH: loop header
LB: loop body
LE: loop exit
PB: predicated region body
PF: predicated region fallthrough
CT: control target
= control target key end

     0   :  { %v111_v1 = vmov 0   ;;  %vm58_vm0 = vcmask 392192   ;;  %s156_s0 = inlined_call_operand.vmem [shape: bf16[1,48,128], index: 0, kind: input, shape index: {}]   ;;  %s157_s2 = inlined_call_operand.vmem [shape: f32[1,16,1], index: 2, kind: input, shape index: {}]   ;;  %s158_s1 = inlined_call_operand.vmem [shape: bf16[1,16,48], index: 1, kind: input, shape index: {}]   ;;  %s159_s3 = inlined_call_operand.vmem [shape: f32[16,128], index: 3, kind: output, shape index: {}]  }
   0x1   :  { %v108_v0 = vld [vmem:[%s156_s0 + $0x10] sm:$0xff]  ;;  %110 = vset.pattern.permute.xlu0 %v111_v1  ;;  %v23_v2 = vld [vmem:[%s157_s2] sm:$0xff]  ;;  %v107_v3 = vld [vmem:[%s156_s0 + $0x8] sm:$0xff] }
   0x2   :  { %67 = vmatpush.bf16.msra.mxu0 %v108_v0  ;;  %27 = vperm.xlu0 %110, %v23_v2   ;;  %v106_v4 = vld [vmem:[%s156_s0] sm:$0xff]  ;;  %v24_v5 = vld [vmem:[%s157_s2 + $0x8] sm:$0xff] }
   0x3   :  { %v105_v6 = vld [vmem:[%s158_s1] sm:$0xff] }
   0x6   :  { %68 = vmatpush.bf16.msra.mxu0 %v107_v3 }
   0xa   :  { %69 = vmatpush.bf16.msra.mxu0 %v106_v4  ;;  %32 = vperm.xlu0 %110, %v24_v5  }
   0xd   :  { %104 = vmatmul.msk.bf16.vlgmr.msra.gmra.mxu0 %vm58_vm0, %v105_v6 }
  0x74   :  { %v28_v7 = vpop.permute.xlu0 %27 }
  0x7c   :  { %v33_v12 = vpop.permute.xlu0 %32 }
  0x8a   :  { %v71_v8 = vpop.f32.mrf.mxu0 }
  0x8b   :  { %v72_v9 = vadd.f32 %v71_v8, %v28_v7 }
  0x8d   :  { %vm76_vm1 = vcmp.ge.f32.partialorder %v72_v9, 0.0  ;;  %v78_v10 = vmul.f32 0.2, %v72_v9 }
  0x8f   :  { %v80_v11 = vsel %vm76_vm1, %v72_v9, %v78_v10 }
  0x90   :  { %82 = vst [vmem:[%s159_s3] sm:$0xff] %v80_v11 }
  0x92   :  { %v73_v13 = vpop.f32.mrf.mxu0 }
  0x93   :  { %v74_v14 = vadd.f32 %v73_v13, %v33_v12 }
  0x95   :  { %vm77_vm2 = vcmp.ge.f32.partialorder %v74_v14, 0.0  ;;  %v79_v15 = vmul.f32 0.2, %v74_v14 }
  0x97   :  { %v81_v16 = vsel %vm77_vm2, %v74_v14, %v79_v15 }
  0x98   :  { %83 = vst [vmem:[%s159_s3 + $0x8] sm:$0xff] %v81_v16 }

// kernel: sbd_forward.39
= control target key start
LH: loop header
LB: loop body
LE: loop exit
PB: predicated region body
PF: predicated region fallthrough
CT: control target
= control target key end

     0   :  { %v317_v3 = vmov 0   ;;  %vm58_vm0 = vcmask 392192   ;;  %s398_s0 = inlined_call_operand.vmem [shape: bf16[3,48,128], index: 0, kind: input, shape index: {}]   ;;  %s399_s2 = inlined_call_operand.vmem [shape: f32[3,16,1], index: 2, kind: input, shape index: {}]   ;;  %s400_s1 = inlined_call_operand.vmem [shape: bf16[3,16,48], index: 1, kind: input, shape index: {}]   ;;  %s401_s3 = inlined_call_operand.vmem [shape: f32[16,128], index: 3, kind: output, shape index: {}]  }
   0x1   :  { %v304_v0 = vld [vmem:[%s398_s0 + $0x10] sm:$0xff]  ;;  %v308_v1 = vld [vmem:[%s398_s0 + $0x28] sm:$0xff]  ;;  %v312_v2 = vld [vmem:[%s398_s0 + $0x40] sm:$0xff]  ;;  %315 = vset.pattern.permute.xlu1 %v317_v3  ;;  %314 = vset.pattern.permute.xlu0 %v317_v3 }
   0x2   :  { %316 = vset.pattern.permute.xlu2 %v317_v3  ;;  %67 = vmatpush.bf16.msra.mxu0 %v304_v0  ;;  %v303_v4 = vld [vmem:[%s398_s0 + $0x8] sm:$0xff]  ;;  %v307_v5 = vld [vmem:[%s398_s0 + $0x20] sm:$0xff]  ;;  %v311_v6 = vld [vmem:[%s398_s0 + $0x38] sm:$0xff] }
   0x3   :  { %136 = vmatpush.bf16.msra.mxu1 %v308_v1  ;;  %207 = vmatpush.bf16.msra.mxu2 %v312_v2  ;;  %v255_v7 = vld [vmem:[%s399_s2 + $0x10] sm:$0xff]  ;;  %v23_v8 = vld [vmem:[%s399_s2] sm:$0xff]  ;;  %v306_v11 = vld [vmem:[%s398_s0 + $0x18] sm:$0xff] }
   0x4   :  { %97 = vperm.xlu1 %315, %v255_v7   ;;  %27 = vperm.xlu0 %314, %v23_v8   ;;  %v282_v9 = vld [vmem:[%s399_s2 + $0x20] sm:$0xff]  ;;  %v310_v12 = vld [vmem:[%s398_s0 + $0x30] sm:$0xff]  ;;  %v305_v14 = vld [vmem:[%s400_s1 + $0x8] sm:$0xff] }
   0x5   :  { %v302_v10 = vld [vmem:[%s398_s0] sm:$0xff]  ;;  %168 = vperm.xlu2 %316, %v282_v9   ;;  %v309_v15 = vld [vmem:[%s400_s1 + $0x10] sm:$0xff]  ;;  %v256_v16 = vld [vmem:[%s399_s2 + $0x18] sm:$0xff] }
   0x6   :  { %68 = vmatpush.bf16.msra.mxu0 %v303_v4  ;;  %v301_v13 = vld [vmem:[%s400_s1] sm:$0xff]  ;;  %v24_v17 = vld [vmem:[%s399_s2 + $0x8] sm:$0xff] }
   0x7   :  { %137 = vmatpush.bf16.msra.mxu1 %v307_v5  ;;  %208 = vmatpush.bf16.msra.mxu2 %v311_v6  ;;  %v283_v18 = vld [vmem:[%s399_s2 + $0x28] sm:$0xff] }
   0xa   :  { %69 = vmatpush.bf16.msra.mxu0 %v302_v10 }
   0xb   :  { %138 = vmatpush.bf16.msra.mxu1 %v306_v11  ;;  %209 = vmatpush.bf16.msra.mxu2 %v310_v12 }
   0xc   :  { %102 = vperm.xlu1 %315, %v256_v16   ;;  %32 = vperm.xlu0 %314, %v24_v17  }
   0xd   :  { %246 = vmatmul.msk.bf16.vlgmr.msra.gmra.mxu0 %vm58_vm0, %v301_v13  ;;  %173 = vperm.xlu2 %316, %v283_v18  }
   0xe   :  { %273 = vmatmul.msk.bf16.vlgmr.msra.gmra.mxu1 %vm58_vm0, %v305_v14  ;;  %300 = vmatmul.msk.bf16.vlgmr.msra.gmra.mxu2 %vm58_vm0, %v309_v15 }
  0x5f   :  { %v169_v27 = vpop.permute.xlu2 %168 }
  0x67   :  { %v174_v44 = vpop.permute.xlu2 %173 }
  0x76   :  { %v98_v19 = vpop.permute.xlu1 %97  ;;  %v28_v20 = vpop.permute.xlu0 %27 }
  0x7e   :  { %v103_v28 = vpop.permute.xlu1 %102  ;;  %v33_v29 = vpop.permute.xlu0 %32 }
  0x8a   :  { %v71_v21 = vpop.f32.mrf.mxu0 }
  0x8b   :  { %v140_v22 = vpop.f32.mrf.mxu1  ;;  %v72_v23 = vadd.f32 %v71_v21, %v28_v20 }
  0x8c   :  { %v141_v24 = vadd.f32 %v140_v22, %v98_v19 }
  0x8d   :  { %v78_v25 = vmul.f32 0.2, %v72_v23  ;;  %vm76_vm1 = vcmp.ge.f32.partialorder %v72_v23, 0.0 }
  0x8e   :  { %v147_v26 = vmul.f32 0.2, %v141_v24  ;;  %vm145_vm2 = vcmp.ge.f32.partialorder %v141_v24, 0.0 }
  0x8f   :  { %v80_v31 = vsel %vm76_vm1, %v72_v23, %v78_v25 }
  0x90   :  { %v149_v32 = vsel %vm145_vm2, %v141_v24, %v147_v26 }
  0x91   :  { %v211_v30 = vpop.f32.mrf.mxu2  ;;  %v151_v39 = vadd.f32 %v149_v32, %v80_v31 }
  0x92   :  { %v212_v33 = vadd.f32 %v211_v30, %v169_v27  ;;  %v73_v34 = vpop.f32.mrf.mxu0 }
  0x93   :  { %v142_v35 = vpop.f32.mrf.mxu1  ;;  %v74_v36 = vadd.f32 %v73_v34, %v33_v29 }
  0x94   :  { %v143_v37 = vadd.f32 %v142_v35, %v103_v28  ;;  %vm216_vm3 = vcmp.ge.f32.partialorder %v212_v33, 0.0  ;;  %v218_v38 = vmul.f32 0.2, %v212_v33 }
  0x95   :  { %v79_v41 = vmul.f32 0.2, %v74_v36  ;;  %vm77_vm4 = vcmp.ge.f32.partialorder %v74_v36, 0.0 }
  0x96   :  { %v220_v40 = vsel %vm216_vm3, %v212_v33, %v218_v38  ;;  %v148_v42 = vmul.f32 0.2, %v143_v37  ;;  %vm146_vm5 = vcmp.ge.f32.partialorder %v143_v37, 0.0 }
  0x97   :  { %v222_v43 = vadd.f32 %v220_v40, %v151_v39  ;;  %v81_v46 = vsel %vm77_vm4, %v74_v36, %v79_v41 }
  0x98   :  { %v150_v47 = vsel %vm146_vm5, %v143_v37, %v148_v42 }
  0x99   :  { %224 = vst [vmem:[%s401_s3] sm:$0xff] %v222_v43  ;;  %v213_v45 = vpop.f32.mrf.mxu2  ;;  %v152_v50 = vadd.f32 %v150_v47, %v81_v46 }
  0x9a   :  { %v214_v48 = vadd.f32 %v213_v45, %v174_v44 }
  0x9c   :  { %vm217_vm6 = vcmp.ge.f32.partialorder %v214_v48, 0.0  ;;  %v219_v49 = vmul.f32 0.2, %v214_v48 }
  0x9e   :  { %v221_v51 = vsel %vm217_vm6, %v214_v48, %v219_v49 }
  0x9f   :  { %v223_v52 = vadd.f32 %v221_v51, %v152_v50 }
  0xa1   :  { %225 = vst [vmem:[%s401_s3 + $0x8] sm:$0xff] %v223_v52 }

// kernel: sbd_forward.41
= control target key start
LH: loop header
LB: loop body
LE: loop exit
PB: predicated region body
PF: predicated region fallthrough
CT: control target
= control target key end

     0   :  { %v86_v1 = vmov 0   ;;  %vm46_vm0 = vcmask 392192   ;;  %s125_s0 = inlined_call_operand.vmem [shape: bf16[1,48,128], index: 0, kind: input, shape index: {}]   ;;  %s126_s2 = inlined_call_operand.vmem [shape: f32[1,8,1], index: 2, kind: input, shape index: {}]   ;;  %s127_s1 = inlined_call_operand.vmem [shape: bf16[1,8,48], index: 1, kind: input, shape index: {}]   ;;  %s128_s3 = inlined_call_operand.vmem [shape: f32[8,128], index: 3, kind: output, shape index: {}]  }
   0x1   :  { %v83_v0 = vld [vmem:[%s125_s0 + $0x10] sm:$0xff]  ;;  %85 = vset.pattern.permute.xlu0 %v86_v1  ;;  %v22_v2 = vld [vmem:[%s126_s2] sm:$0xff]  ;;  %v82_v3 = vld [vmem:[%s125_s0 + $0x8] sm:$0xff] }
   0x2   :  { %55 = vmatpush.bf16.msra.mxu0 %v83_v0  ;;  %25 = vperm.xlu0 %85, %v22_v2   ;;  %v81_v4 = vld [vmem:[%s125_s0] sm:$0xff] }
   0x3   :  { %v15_v5 = vld [vmem:[%s127_s1] sm:$0xf] }
   0x6   :  { %56 = vmatpush.bf16.msra.mxu0 %v82_v3 }
   0xa   :  { %57 = vmatpush.bf16.msra.mxu0 %v81_v4 }
   0xd   :  { %80 = vmatmul.msk.bf16.vlgmr.msra.gmra.mxu0 %vm46_vm0, %v15_v5 }
  0x74   :  { %v26_v6 = vpop.permute.xlu0 %25 }
  0x8a   :  { %v59_v7 = vpop.f32.mrf.mxu0 }
  0x8b   :  { %v60_v8 = vadd.f32 %v59_v7, %v26_v6 }
  0x8d   :  { %63 = vst [vmem:[%s128_s3] sm:$0xff] %v60_v8 }
  0x92   :  { %v61_v9 = vpop.f32.mrf.mxu0 }

// kernel: sbd_forward.24
= control target key start
LH: loop header
LB: loop body
LE: loop exit
PB: predicated region body
PF: predicated region fallthrough
CT: control target
= control target key end

     0   :  { %s505_s12 = smov 0   ;;  %s507_s13 = smov 0   ;;  %s574_s0 = inlined_call_operand.vmem [shape: bf16[1,48,384], index: 0, kind: input, shape index: {}]   ;;  %s575_s1 = inlined_call_operand.vmem [shape: bf16[1,16,48], index: 1, kind: input, shape index: {}]   ;;  %s576_s2 = inlined_call_operand.vmem [shape: f32[1,16,1], index: 2, kind: input, shape index: {}]   ;;  %s577_s3 = inlined_call_operand.vmem [shape: f32[16,384], index: 3, kind: output, shape index: {}]  }
   0x1   :  { %s509_s14 = smov 0  }
   0x2 LB: > { %s400_s15 = sadd.s32 4294967295, %s482_s14   ;;  %s522_s16 = sadd.s32 1, %s482_s14   ;;  %s482_s14 = sphi %s509_s14, %s581_s14   ;;  %s478_s13 = sphi %s507_s13, %s580_s13   ;;  %s474_s12 = sphi %s505_s12, %s579_s12  }
   0x3   : > { %s17_s17 = ssub.s32 %s482_s14, %s522_s16  ;;  %s20_s18 = sadd.s32 1, %s478_s13 }
   0x4   : > { %p18_p0 = scmp.eq.s32.totalorder %s17_s17, 0  ;;  %p27_p1 = scmp.ne.s32.totalorder %s478_s13, %s474_s12 }
   0x5   : > { %p28_p2 = scmp.eq.s32.totalorder %s482_s14, 0  ;;  %p99_p3 = scmp.eq.s32.totalorder %s400_s15, 2 }
   0x6   : > { %s533_s19 = scalar_select %p18_p0, %s478_s13, %s20_s18  }
   0x7   : > { %p29_p4 = por %p28_p2, %p27_p1  ;;  %p535_p5 = por %p99_p3, %p27_p1 }
   0x8   : > { %p403_p6 = scmp.ge.s32.totalorder %s482_s14, 3 }
   0xa   : > { %127 = sbr.rel (%p403_p6) target bundleno = 26 (0x1a), region = 24 }
   0xf   : > { %130 = sbr.rel (!%p29_p4) target bundleno = 26 (0x1a), region = 28  ;;  %s132_s21 = sand.u32 (%p29_p4), 1, %s478_s13  }
  0x10   : > { %s404_s22 = sshll.u32 (%p29_p4), %s482_s14, 2  ;;  %s432_s23 = smul.u32 (%p29_p4), 24, %s132_s21 }
  0x11   : > { %s136_s26 = scalar_lea.vmem (%p29_p4), %s574_s0, %s404_s22 }
  0x12   : > { %v153_v0 = vld [vmem:[%s136_s26] sm:$0xf] (%p29_p4)  ;;  %v155_v1 = vld [vmem:[%s136_s26 + $0xc] sm:$0xf] (%p29_p4)  ;;  %v157_v2 = vld [vmem:[%s136_s26 + $0x18] sm:$0xf] (%p29_p4) }
  0x13   : > { %s134_s27 = scalar_lea.vmem (%p29_p4), [#allocation2], %s432_s23  ;;  %v159_v3 = vld [vmem:[%s136_s26 + $0x24] sm:$0xf] (%p29_p4)  ;;  %v161_v4 = vld [vmem:[%s136_s26 + $0x30] sm:$0xf] (%p29_p4) }
  0x14   : > { %154 = vst [vmem:[%s134_s27] sm:$0xf] %v153_v0  ;;  %v163_v5 = vld [vmem:[%s136_s26 + $0x3c] sm:$0xf] }
  0x15   : > { %156 = vst [vmem:[%s134_s27 + $0x4] sm:$0xf] %v155_v1 }
  0x16   : > { %158 = vst [vmem:[%s134_s27 + $0x8] sm:$0xf] %v157_v2 }
  0x17   : > { %160 = vst [vmem:[%s134_s27 + $0xc] sm:$0xf] %v159_v3 }
  0x18   : > { %162 = vst [vmem:[%s134_s27 + $0x10] sm:$0xf] %v161_v4 }
  0x19   : > { %164 = vst [vmem:[%s134_s27 + $0x14] sm:$0xf] %v163_v5 }
  0x1a PF: > { %p405_p7 = scmp.ge.s32.totalorder %s482_s14, 1  ;;  %p199_p8 = scmp.lt.s32.totalorder %s482_s14, 4 }
  0x1c   : > { %p200_p9 = pnand %p405_p7, %p199_p8 }
  0x1d   : > { %s206_s28 = sand.u32 (!%p200_p9), 1, %s474_s12  }
  0x1e   : > { %203 = sbr.rel (%p200_p9) target bundleno = 195 (0xc3), region = 69  ;;  %s406_s10 = sshll.u32 (!%p200_p9), %s206_s28, 4 }
  0x1f   : > { %s433_s4 = smul.u32 (!%p200_p9), 24, %s206_s28  ;;  %s227_s11 = scalar_lea.vmem (!%p200_p9), [#allocation3], %s406_s10 }
  0x21   : > { %s208_s5 = scalar_lea.vmem (!%p200_p9), [#allocation2], %s433_s4 }
  0x23   : > { %v237_v6 = vld [vmem:[%s576_s2] sm:$0xff]  ;;  %v484_v7 = vmov 0   ;;  %v431_v8 = vld [vmem:[%s208_s5 + $0x10] sm:$0xff]  ;;  %vm272_vm0 = vcmask 392192   ;;  %s425_s12 = sshll.u32 (%p535_p5), %s400_s15, 3 }
  0x24   : > { %459 = vset.pattern.permute.xlu0 %v484_v7  ;;  %281 = vmatpush.bf16.msra.mxu0 %v431_v8  ;;  %v430_v9 = vld [vmem:[%s208_s5 + $0x8] sm:$0xff]  ;;  %v429_v11 = vld [vmem:[%s208_s5] sm:$0xff]  ;;  %s306_s21 = scalar_lea.vmem (%p535_p5), %s577_s3, %s425_s12 }
  0x25   : > { %241 = vperm.xlu0 %459, %v237_v6   ;;  %v238_v10 = vld [vmem:[%s576_s2 + $0x8] sm:$0xff]  ;;  %v428_v12 = vld [vmem:[%s575_s1] sm:$0xff] }
  0x28   : > { %282 = vmatpush.bf16.msra.mxu0 %v430_v9 }
  0x2c   : > { %283 = vmatpush.bf16.msra.mxu0 %v429_v11 }
  0x2d   : > { %246 = vperm.xlu0 %459, %v238_v10  }
  0x2f   : > { %423 = vmatmul.msk.bf16.vlgmr.msra.gmra.mxu0 %vm272_vm0, %v428_v12 }
  0x97   : > { %v242_v13 = vpop.permute.xlu0 %241 }
  0x9f   : > { %v247_v18 = vpop.permute.xlu0 %246 }
  0xac   : > { %v285_v14 = vpop.f32.mrf.mxu0 }
  0xad   : > { %v286_v15 = vadd.f32 %v285_v14, %v242_v13 }
  0xaf   : > { %vm290_vm1 = vcmp.ge.f32.partialorder %v286_v15, 0.0  ;;  %v292_v16 = vmul.f32 0.2, %v286_v15 }
  0xb1   : > { %v294_v17 = vsel %vm290_vm1, %v286_v15, %v292_v16 }
  0xb2   : > { %296 = vst [vmem:[%s227_s11] sm:$0xff] %v294_v17 }
  0xb4   : > { %v287_v19 = vpop.f32.mrf.mxu0 }
  0xb5   : > { %v288_v20 = vadd.f32 %v287_v19, %v247_v18 }
  0xb6   : > { %304 = sbr.rel (!%p535_p5) target bundleno = 195 (0xc3), region = 77 }
  0xb7   : > { %vm291_vm2 = vcmp.ge.f32.partialorder %v288_v20, 0.0  ;;  %v293_v21 = vmul.f32 0.2, %v288_v20 }
  0xb9   : > { %v295_v22 = vsel %vm291_vm2, %v288_v20, %v293_v21  ;;  %v337_v23 = vld [vmem:[%s227_s11] sm:$0xff] (%p535_p5) }
  0xba   : > { %297 = vst [vmem:[%s227_s11 + $0x8] sm:$0xff] %v295_v22 }
  0xbb   : > { %338 = vst [vmem:[%s306_s21] sm:$0xff] %v337_v23 }
  0xc1   : > { %v339_v24 = vld [vmem:[%s227_s11 + $0x8] sm:$0xff] }
  0xc2   : > { %340 = vst [vmem:[%s306_s21 + $0x18] sm:$0xff] %v339_v24 }
  0xc3 PF: > { %p10_p10 = scmp.ge.s32.totalorder %s522_s16, 5   ;;  %s579_s12 = smov %s478_s13 }
  0xc4   : > { %s580_s13 = smov %s533_s19  ;;  %s581_s14 = smov %s522_s16 }
  0xc5   :  { %12 = sbr.rel (!%p10_p10) target bundleno = 2 (0x2), region = 146 }

// kernel: sbd_forward.25
= control target key start
LH: loop header
LB: loop body
LE: loop exit
PB: predicated region body
PF: predicated region fallthrough
CT: control target
= control target key end

     0   :  { %s759_s12 = smov 0   ;;  %s761_s13 = smov 0   ;;  %s890_s0 = inlined_call_operand.vmem [shape: bf16[3,48,384], index: 0, kind: input, shape index: {}]   ;;  %s891_s1 = inlined_call_operand.vmem [shape: bf16[3,16,48], index: 1, kind: input, shape index: {}]   ;;  %s892_s2 = inlined_call_operand.vmem [shape: f32[3,16,1], index: 2, kind: input, shape index: {}]   ;;  %s893_s3 = inlined_call_operand.vmem [shape: f32[16,384], index: 3, kind: output, shape index: {}]  }
   0x1   :  { %s763_s14 = smov 0  }
   0x2 LB: > { %s590_s15 = sadd.s32 4294967295, %s736_s14   ;;  %s776_s16 = sadd.s32 1, %s736_s14   ;;  %s736_s14 = sphi %s763_s14, %s897_s14   ;;  %s732_s13 = sphi %s761_s13, %s896_s13   ;;  %s728_s12 = sphi %s759_s12, %s895_s12  }
   0x3   : > { %s17_s17 = ssub.s32 %s736_s14, %s776_s16  ;;  %s20_s18 = sadd.s32 1, %s732_s13 }
   0x4   : > { %p18_p0 = scmp.eq.s32.totalorder %s17_s17, 0  ;;  %p27_p1 = scmp.ne.s32.totalorder %s732_s13, %s728_s12 }
   0x5   : > { %p28_p2 = scmp.eq.s32.totalorder %s736_s14, 0  ;;  %p99_p3 = scmp.eq.s32.totalorder %s590_s15, 2 }
   0x6   : > { %s787_s19 = scalar_select %p18_p0, %s732_s13, %s20_s18  }
   0x7   : > { %p29_p4 = por %p28_p2, %p27_p1  ;;  %p789_p5 = por %p99_p3, %p27_p1 }
   0x8   : > { %p593_p6 = scmp.ge.s32.totalorder %s736_s14, 3 }
   0xa   : > { %127 = sbr.rel (%p593_p6) target bundleno = 38 (0x26), region = 24 }
   0xf   : > { %130 = sbr.rel (!%p29_p4) target bundleno = 38 (0x26), region = 28  ;;  %s132_s21 = sand.u32 (%p29_p4), 1, %s732_s13  }
  0x10   : > { %s594_s22 = sshll.u32 (%p29_p4), %s736_s14, 2  ;;  %s684_s23 = smul.u32 (%p29_p4), 72, %s132_s21 }
  0x11   : > { %s799_s26 = scalar_lea.vmem (%p29_p4), %s890_s0, %s594_s22 }
  0x12   : > { %v153_v0 = vld [vmem:[%s799_s26] sm:$0xf] (%p29_p4)  ;;  %v155_v1 = vld [vmem:[%s799_s26 + $0xc] sm:$0xf] (%p29_p4)  ;;  %v157_v2 = vld [vmem:[%s799_s26 + $0x18] sm:$0xf] (%p29_p4) }
  0x13   : > { %s804_s27 = scalar_lea.vmem (%p29_p4), [#allocation2], %s684_s23  ;;  %v159_v3 = vld [vmem:[%s799_s26 + $0x24] sm:$0xf] (%p29_p4)  ;;  %v161_v4 = vld [vmem:[%s799_s26 + $0x30] sm:$0xf] (%p29_p4) }
  0x14   : > { %154 = vst [vmem:[%s804_s27] sm:$0xf] %v153_v0  ;;  %v163_v5 = vld [vmem:[%s799_s26 + $0x3c] sm:$0xf]  ;;  %v165_v6 = vld [vmem:[%s799_s26 + $0x48] sm:$0xf] }
  0x15   : > { %156 = vst [vmem:[%s804_s27 + $0x4] sm:$0xf] %v155_v1  ;;  %v167_v7 = vld [vmem:[%s799_s26 + $0x54] sm:$0xf]  ;;  %v169_v8 = vld [vmem:[%s799_s26 + $0x60] sm:$0xf] }
  0x16   : > { %158 = vst [vmem:[%s804_s27 + $0x8] sm:$0xf] %v157_v2  ;;  %v171_v9 = vld [vmem:[%s799_s26 + $0x6c] sm:$0xf]  ;;  %v173_v10 = vld [vmem:[%s799_s26 + $0x78] sm:$0xf] }
  0x17   : > { %160 = vst [vmem:[%s804_s27 + $0xc] sm:$0xf] %v159_v3  ;;  %v175_v11 = vld [vmem:[%s799_s26 + $0x84] sm:$0xf]  ;;  %v177_v12 = vld [vmem:[%s799_s26 + $0x90] sm:$0xf] }
  0x18   : > { %162 = vst [vmem:[%s804_s27 + $0x10] sm:$0xf] %v161_v4  ;;  %v179_v13 = vld [vmem:[%s799_s26 + $0x9c] sm:$0xf]  ;;  %v181_v14 = vld [vmem:[%s799_s26 + $0xa8] sm:$0xf] }
  0x19   : > { %164 = vst [vmem:[%s804_s27 + $0x14] sm:$0xf] %v163_v5  ;;  %v183_v15 = vld [vmem:[%s799_s26 + $0xb4] sm:$0xf]  ;;  %v185_v16 = vld [vmem:[%s799_s26 + $0xc0] sm:$0xf] }
  0x1a   : > { %166 = vst [vmem:[%s804_s27 + $0x18] sm:$0xf] %v165_v6  ;;  %v187_v17 = vld [vmem:[%s799_s26 + $0xcc] sm:$0xf] }
  0x1b   : > { %168 = vst [vmem:[%s804_s27 + $0x1c] sm:$0xf] %v167_v7 }
  0x1c   : > { %170 = vst [vmem:[%s804_s27 + $0x20] sm:$0xf] %v169_v8 }
  0x1d   : > { %172 = vst [vmem:[%s804_s27 + $0x24] sm:$0xf] %v171_v9 }
  0x1e   : > { %174 = vst [vmem:[%s804_s27 + $0x28] sm:$0xf] %v173_v10 }
  0x1f   : > { %176 = vst [vmem:[%s804_s27 + $0x2c] sm:$0xf] %v175_v11 }
  0x20   : > { %178 = vst [vmem:[%s804_s27 + $0x30] sm:$0xf] %v177_v12 }
  0x21   : > { %180 = vst [vmem:[%s804_s27 + $0x34] sm:$0xf] %v179_v13 }
  0x22   : > { %182 = vst [vmem:[%s804_s27 + $0x38] sm:$0xf] %v181_v14 }
  0x23   : > { %184 = vst [vmem:[%s804_s27 + $0x3c] sm:$0xf] %v183_v15 }
  0x24   : > { %186 = vst [vmem:[%s804_s27 + $0x40] sm:$0xf] %v185_v16 }
  0x25   : > { %188 = vst [vmem:[%s804_s27 + $0x44] sm:$0xf] %v187_v17 }
  0x26 PF: > { %p595_p7 = scmp.ge.s32.totalorder %s736_s14, 1  ;;  %p247_p8 = scmp.lt.s32.totalorder %s736_s14, 4 }
  0x28   : > { %p248_p9 = pnand %p595_p7, %p247_p8 }
  0x29   : > { %s254_s28 = sand.u32 (!%p248_p9), 1, %s728_s12  }
  0x2a   : > { %251 = sbr.rel (%p248_p9) target bundleno = 219 (0xdb), region = 69  ;;  %s596_s30 = sshll.u32 (!%p248_p9), %s254_s28, 4 }
  0x2b   : > { %s685_s29 = smul.u32 (!%p248_p9), 72, %s254_s28  ;;  %s275_s4 = scalar_lea.vmem (!%p248_p9), [#allocation3], %s596_s30 }
  0x2d   : > { %s256_s9 = scalar_lea.vmem (!%p248_p9), [#allocation2], %s685_s29 }
  0x2f   : > { %v738_v18 = vmov 0   ;;  %v622_v19 = vld [vmem:[%s892_s2 + $0x10] sm:$0xff]  ;;  %v285_v20 = vld [vmem:[%s892_s2] sm:$0xff]  ;;  %v623_v28 = vld [vmem:[%s892_s2 + $0x18] sm:$0xff]  ;;  %vm320_vm0 = vcmask 392192   ;;  %s669_s12 = sshll.u32 (%p789_p5), %s590_s15, 3 }
  0x30   : > { %712 = vset.pattern.permute.xlu1 %v738_v18  ;;  %711 = vset.pattern.permute.xlu0 %v738_v18  ;;  %v649_v21 = vld [vmem:[%s892_s2 + $0x20] sm:$0xff]  ;;  %v675_v22 = vld [vmem:[%s256_s9 + $0x10] sm:$0xff]  ;;  %v679_v23 = vld [vmem:[%s256_s9 + $0x28] sm:$0xff]  ;;  %s496_s6 = scalar_lea.vmem (%p789_p5), %s893_s3, %s669_s12 }
  0x31   : > { %359 = vperm.xlu1 %712, %v622_v19   ;;  %289 = vperm.xlu0 %711, %v285_v20   ;;  %v683_v24 = vld [vmem:[%s256_s9 + $0x40] sm:$0xff]  ;;  %v674_v25 = vld [vmem:[%s256_s9 + $0x8] sm:$0xff]  ;;  %v682_v27 = vld [vmem:[%s256_s9 + $0x38] sm:$0xff] }
  0x32   : > { %713 = vset.pattern.permute.xlu2 %v738_v18  ;;  %329 = vmatpush.bf16.msra.mxu0 %v675_v22  ;;  %v678_v26 = vld [vmem:[%s256_s9 + $0x20] sm:$0xff]  ;;  %v677_v32 = vld [vmem:[%s256_s9 + $0x18] sm:$0xff]  ;;  %v681_v33 = vld [vmem:[%s256_s9 + $0x30] sm:$0xff] }
  0x33   : > { %430 = vperm.xlu2 %713, %v649_v21   ;;  %398 = vmatpush.bf16.msra.mxu1 %v679_v23  ;;  %v286_v29 = vld [vmem:[%s892_s2 + $0x8] sm:$0xff]  ;;  %v672_v34 = vld [vmem:[%s891_s1] sm:$0xff]  ;;  %v680_v36 = vld [vmem:[%s891_s1 + $0x10] sm:$0xff] }
  0x34   : > { %469 = vmatpush.bf16.msra.mxu2 %v683_v24  ;;  %v650_v30 = vld [vmem:[%s892_s2 + $0x28] sm:$0xff] }
  0x35   : > { %v673_v31 = vld [vmem:[%s256_s9] sm:$0xff] }
  0x36   : > { %330 = vmatpush.bf16.msra.mxu0 %v674_v25  ;;  %v676_v35 = vld [vmem:[%s891_s1 + $0x8] sm:$0xff] }
  0x37   : > { %399 = vmatpush.bf16.msra.mxu1 %v678_v26 }
  0x38   : > { %470 = vmatpush.bf16.msra.mxu2 %v682_v27 }
  0x39   : > { %364 = vperm.xlu1 %712, %v623_v28   ;;  %294 = vperm.xlu0 %711, %v286_v29  }
  0x3a   : > { %331 = vmatpush.bf16.msra.mxu0 %v673_v31 }
  0x3b   : > { %435 = vperm.xlu2 %713, %v650_v30   ;;  %400 = vmatpush.bf16.msra.mxu1 %v677_v32 }
  0x3c   : > { %471 = vmatpush.bf16.msra.mxu2 %v681_v33 }
  0x3d   : > { %613 = vmatmul.msk.bf16.vlgmr.msra.gmra.mxu0 %vm320_vm0, %v672_v34 }
  0x3e   : > { %640 = vmatmul.msk.bf16.vlgmr.msra.gmra.mxu1 %vm320_vm0, %v676_v35 }
  0x3f   : > { %667 = vmatmul.msk.bf16.vlgmr.msra.gmra.mxu2 %vm320_vm0, %v680_v36 }
  0x8d   : > { %v431_v45 = vpop.permute.xlu2 %430 }
  0x95   : > { %v436_v62 = vpop.permute.xlu2 %435 }
  0xa3   : > { %v360_v37 = vpop.permute.xlu1 %359  ;;  %v290_v38 = vpop.permute.xlu0 %289 }
  0xab   : > { %v365_v46 = vpop.permute.xlu1 %364  ;;  %v295_v47 = vpop.permute.xlu0 %294 }
  0xba   : > { %v333_v39 = vpop.f32.mrf.mxu0 }
  0xbb   : > { %v402_v40 = vpop.f32.mrf.mxu1  ;;  %v334_v41 = vadd.f32 %v333_v39, %v290_v38 }
  0xbc   : > { %v403_v42 = vadd.f32 %v402_v40, %v360_v37 }
  0xbd   : > { %v340_v43 = vmul.f32 0.2, %v334_v41  ;;  %vm338_vm1 = vcmp.ge.f32.partialorder %v334_v41, 0.0 }
  0xbe   : > { %v409_v44 = vmul.f32 0.2, %v403_v42  ;;  %vm407_vm2 = vcmp.ge.f32.partialorder %v403_v42, 0.0 }
  0xbf   : > { %v342_v49 = vsel %vm338_vm1, %v334_v41, %v340_v43 }
  0xc0   : > { %v411_v50 = vsel %vm407_vm2, %v403_v42, %v409_v44 }
  0xc1   : > { %v413_v57 = vadd.f32 %v411_v50, %v342_v49 }
  0xc2   : > { %v473_v48 = vpop.f32.mrf.mxu2  ;;  %v335_v52 = vpop.f32.mrf.mxu0 }
  0xc3   : > { %v474_v51 = vadd.f32 %v473_v48, %v431_v45  ;;  %v404_v53 = vpop.f32.mrf.mxu1  ;;  %v336_v54 = vadd.f32 %v335_v52, %v295_v47 }
  0xc4   : > { %v405_v55 = vadd.f32 %v404_v53, %v365_v46 }
  0xc5   : > { %vm478_vm3 = vcmp.ge.f32.partialorder %v474_v51, 0.0  ;;  %v480_v56 = vmul.f32 0.2, %v474_v51  ;;  %v341_v59 = vmul.f32 0.2, %v336_v54  ;;  %vm339_vm4 = vcmp.ge.f32.partialorder %v336_v54, 0.0 }
  0xc6   : > { %v410_v60 = vmul.f32 0.2, %v405_v55  ;;  %vm408_vm5 = vcmp.ge.f32.partialorder %v405_v55, 0.0 }
  0xc7   : > { %v482_v58 = vsel %vm478_vm3, %v474_v51, %v480_v56  ;;  %v343_v0 = vsel %vm339_vm4, %v336_v54, %v341_v59 }
  0xc8   : > { %v484_v61 = vadd.f32 %v482_v58, %v413_v57  ;;  %v412_v1 = vsel %vm408_vm5, %v405_v55, %v410_v60 }
  0xc9   : > { %v414_v4 = vadd.f32 %v412_v1, %v343_v0 }
  0xca   : > { %486 = vst [vmem:[%s275_s4] sm:$0xff] %v484_v61  ;;  %v475_v63 = vpop.f32.mrf.mxu2 }
  0xcb   : > { %v476_v2 = vadd.f32 %v475_v63, %v436_v62 }
  0xcd   : > { %vm479_vm6 = vcmp.ge.f32.partialorder %v476_v2, 0.0  ;;  %v481_v3 = vmul.f32 0.2, %v476_v2 }
  0xce   : > { %494 = sbr.rel (!%p789_p5) target bundleno = 219 (0xdb), region = 77 }
  0xcf   : > { %v483_v5 = vsel %vm479_vm6, %v476_v2, %v481_v3 }
  0xd0   : > { %v485_v6 = vadd.f32 %v483_v5, %v414_v4 }
  0xd1   : > { %v527_v7 = vld [vmem:[%s275_s4] sm:$0xff] (%p789_p5) }
  0xd2   : > { %487 = vst [vmem:[%s275_s4 + $0x8] sm:$0xff] %v485_v6 }
  0xd3   : > { %528 = vst [vmem:[%s496_s6] sm:$0xff] %v527_v7 }
  0xd9   : > { %v529_v8 = vld [vmem:[%s275_s4 + $0x8] sm:$0xff] }
  0xda   : > { %530 = vst [vmem:[%s496_s6 + $0x18] sm:$0xff] %v529_v8 }
  0xdb PF: > { %p10_p10 = scmp.ge.s32.totalorder %s776_s16, 5   ;;  %s895_s12 = smov %s732_s13 }
  0xdc   : > { %s896_s13 = smov %s787_s19  ;;  %s897_s14 = smov %s776_s16 }
  0xdd   :  { %12 = sbr.rel (!%p10_p10) target bundleno = 2 (0x2), region = 152 }

</bundles_post_ra>
